<compile_context>
chip_gen: v5e
topology: v5e:2x2
jax: 0.10.0
libtpu: 0.0.40
codegen_flags: <defaults>
</compile_context>

<pallas_src>
import functools

import numpy as np
import jax
import jax.numpy as jnp
from jax.experimental import pallas as pl
from jax.experimental.pallas import tpu as pltpu

# ------------------------- model hyper-parameters ---------------------------
BATCH = 2
NF = [1, 8, 8, 16, 16, 8, 32]      # nf
NS = [16, 16, 8, 8, 4]             # ns (temporal length per level)
SEQ = NS[0]
LATENT_DIM = 8
LATENT_SEQ = NS[4]

N_T0, N_T1, N_T2, N_T3 = 24, 16, 12, 8         # torso graph hierarchy
N_H0, N_H1, N_H2, N_H3 = 20, 16, 12, 10        # heart graph hierarchy
N_H_LAT = 6                                    # latent heart nodes (P.shape[0])

LANES = 128
ALIGN = 16                                     # bf16 sublane tile height
PER_B_OUT = 2 * N_H0 + N_T0                    # [phi_h | l_h | phi_t_] per batch


# ------------------------------ fused kernel --------------------------------
def _fused_kernel(offs, x_ref, c_ref, out_ref):
    """Whole GraphTorsoHeart forward, both batch elements batch-folded.

    Activations are transposed: rows = channel-major feature (c*T + t),
    lanes = batch-folded node index.  c_ref is the packed constant slab.
    """
    f32, bf16 = jnp.float32, jnp.bfloat16

    def cut(name):                              # static slice -> cheap view/load
        r, c, h, w = offs[name]
        return c_ref[r:r + h, c:c + w]

    def mm(a, b):                               # bf16 x bf16 -> f32 on the MXU
        return jnp.dot(a, b, preferred_element_type=f32)

    def elu(y):                                 # exp only on non-positive branch
        return jnp.where(y > 0.0, y, jnp.exp(jnp.minimum(y, 0.0)) - 1.0)

    def mix(x, kname, bname=None, act=False):
        # feature mixing (channel / temporal / fc): y = K^T @ x (+ bias col)(+ELU)
        y = mm(cut(kname), x)
        if bname is not None:
            y = y + cut(bname).astype(f32)
        if act:
            y = elu(y)
        return y.astype(bf16)

    def agg(x, aname):
        # graph aggregation / pooling: acts on the node (lane) dimension
        return mm(x, cut(aname)).astype(bf16)

    def st_gcn(x, aname, tag):
        x = agg(x, aname)
        x = mix(x, tag + "Kc", tag + "bc", True)
        x = mix(x, tag + "Kt", tag + "bt", True)
        return x

    x = x_ref[...]                              # (NF0*SEQ, 2*N_T0) bf16
    # ------------------------------ encode ---------------------------------
    x = st_gcn(x, "A_t0", "c1")
    x = st_gcn(x, "M_t1", "c2")                 # A_t1 @ t_P01 pre-folded
    x = st_gcn(x, "M_t2", "c3")                 # A_t2 @ t_P12 pre-folded
    x = agg(x, "t_P23")
    x = mix(x, "K_fce1", "b_fce1", True)
    z = mix(x, "K_fce21t", "b_fce21t")          # fce21 folded with trans mix
    # ------------------------------ inverse --------------------------------
    # TODO(synk): SplineConv basis weighting approximated by a dense weighted
    # adjacency; `expand` assumed to replicate the base graph per copy.
    z = agg(z, "A_invht")
    # ------------------------------ decode ---------------------------------
    x = mix(z, "K_fcd3", "b_fcd3", True)
    x = mix(x, "K_fcd4", "b_fcd4", True)
    x = st_gcn(x, "M_h3", "d4")                 # A_h3 @ P43 pre-folded
    x = st_gcn(x, "M_h2", "d3")                 # A_h2 @ P32 pre-folded
    x = st_gcn(x, "M_h1", "d2")                 # A_h1 @ P21 pre-folded
    x = st_gcn(x, "M_h0", "d1")                 # phi_h^T  (NF0*SEQ, 2*N_H0)
    # ------------------------ physics (fused) ------------------------------
    # columns per batch block: [I | h_L^T | t_H^T] -> lane-dense (16, 128)
    out_ref[...] = mm(x, cut("Big"))


# ------------------- host-side folding & slab packing ----------------------
def _bd2(a):
    """Batch fold: block-diagonal kron(I_2, a)."""
    n, m = a.shape
    out = np.zeros((2 * n, 2 * m), np.float32)
    out[:n, :m] = a
    out[n:, m:] = a
    return out


def _zpad(a, rows=None, cols=None):
    r = a.shape[0] if rows is None else rows
    c = a.shape[1] if cols is None else cols
    out = np.zeros((r, c), np.float32)
    out[:a.shape[0], :a.shape[1]] = a
    return out


def _kron_c(W, T):
    """Channel (1x1-conv) mix in the channel-major slab layout: kron(W, I_T)."""
    return np.kron(np.asarray(W, np.float32), np.eye(T, dtype=np.float32))


def _kron_t(Wt, C):
    """Temporal (seq->seq) mix in the channel-major slab layout: kron(I_C, Wt)."""
    return np.kron(np.eye(C, dtype=np.float32), np.asarray(Wt, np.float32))


def pack_constants(p):
    """Fold layout / batch / graph plumbing into the weights and pack all of
    them into ONE lane-dense bf16 (rows, 128) slab -> a single weight DMA."""
    A = lambda x: np.asarray(x, np.float32)
    mats, biases = [], []

    def addm(name, m):
        mats.append((name, np.asarray(m, np.float32)))

    def addb(name, v):
        biases.append((name, np.asarray(v, np.float32).reshape(-1)))

    def add_stgcn(tag, prm):
        Wg, bg = A(prm["Wg"]), A(prm["bg"])
        Wt, bt = A(prm["Wt"]), A(prm["bt"])
        t_in = Wt.shape[0]
        c_out = Wg.shape[1]
        addm(tag + "Kc", _kron_c(Wg, t_in))
        addb(tag + "bc", np.repeat(bg, t_in))
        addm(tag + "Kt", _kron_t(Wt, c_out))
        addb(tag + "bt", np.tile(bt, c_out))

    # encoder (pooling matrices pre-multiplied into the next adjacency)
    addm("A_t0", _bd2(A(p["A_t0"])))
    add_stgcn("c1", p["conv1"])
    addm("M_t1", _bd2(A(p["A_t1"]) @ A(p["t_P01"])))
    add_stgcn("c2", p["conv2"])
    addm("M_t2", _bd2(A(p["A_t2"]) @ A(p["t_P12"])))
    add_stgcn("c3", p["conv3"])
    addm("t_P23", _bd2(A(p["t_P23"])))
    addm("K_fce1", _kron_c(A(p["fce1_W"]), LATENT_SEQ))
    addb("b_fce1", np.repeat(A(p["fce1_b"]), LATENT_SEQ))
    # fce21 folded with the (approximated) SplineSample channel mix
    w21t = A(p["fce21_W"]) @ A(p["W_trans"])
    b21t = A(p["fce21_b"]) @ A(p["W_trans"])
    addm("K_fce21t", _kron_c(w21t, LATENT_SEQ))
    addb("b_fce21t", np.repeat(b21t, LATENT_SEQ))
    # inverse: zero heart rows folded away -> heart x torso slice of A_hinv;
    # latent heart nodes zero-padded 6 -> 8 per batch (12 -> 16 folded)
    a_inv = A(p["A_hinv"])[:N_H_LAT, N_H_LAT:]
    addm("A_invht", _zpad(_bd2(a_inv), rows=16))
    # decoder
    addm("K_fcd3", _kron_c(A(p["fcd3_W"]), LATENT_SEQ))
    addb("b_fcd3", np.repeat(A(p["fcd3_b"]), LATENT_SEQ))
    addm("K_fcd4", _kron_c(A(p["fcd4_W"]), LATENT_SEQ))
    addb("b_fcd4", np.repeat(A(p["fcd4_b"]), LATENT_SEQ))
    addm("M_h3", _zpad(_bd2(A(p["A_h3"]) @ A(p["P43"])), rows=24, cols=16))
    add_stgcn("d4", p["deconv4"])
    addm("M_h2", _zpad(_bd2(A(p["A_h2"]) @ A(p["P32"])), cols=24))
    add_stgcn("d3", p["deconv3"])
    addm("M_h1", _bd2(A(p["A_h1"]) @ A(p["P21"])))
    add_stgcn("d2", p["deconv2"])
    addm("M_h0", _bd2(A(p["A_h0"]) @ A(p["P10"])))
    add_stgcn("d1", p["deconv1"])
    # physics fused with an identity pass-through of phi_h
    big = np.concatenate(
        [np.eye(N_H0, dtype=np.float32), A(p["h_L"]), A(p["t_H"])], axis=0)
    addm("Big", _bd2(big))

    # ---- pack; everything stored TRANSPOSED (kernel activations are X^T) ----
    offs, row = {}, 0
    for name, m in mats:
        h, w = m.T.shape
        assert h <= LANES and w <= LANES
        offs[name] = (row, 0, h, w)
        row += -(-h // ALIGN) * ALIGN           # keep 16-row tile alignment
    bias_row = row
    row += LANES                                # one 128-row band for all biases
    slab = np.zeros((row, LANES), np.float32)
    for name, m in mats:
        r, c, h, w = offs[name]
        slab[r:r + h, c:c + w] = m.T
    for j, (name, v) in enumerate(biases):      # bias j -> column j of the band
        offs[name] = (bias_row, j, v.shape[0], 1)
        slab[bias_row:bias_row + v.shape[0], j] = v
    return jnp.asarray(slab, dtype=jnp.bfloat16), offs


# --------------------------------- forward ----------------------------------
def forward(offs, phi_t, const_slab):
    # transposed canonical slab: rows = channel-major feature (c*SEQ + t),
    # lanes = batch-folded node (b*N_T0 + n)
    xT = jnp.transpose(phi_t, (2, 3, 0, 1)).reshape(NF[0] * SEQ, BATCH * N_T0)
    xT = xT.astype(jnp.bfloat16)

    out = pl.pallas_call(
        functools.partial(_fused_kernel, offs),
        out_shape=jax.ShapeDtypeStruct((NF[0] * SEQ, BATCH * PER_B_OUT),
                                       jnp.float32),
        in_specs=[pl.BlockSpec(memory_space=pltpu.MemorySpace.VMEM),
                  pl.BlockSpec(memory_space=pltpu.MemorySpace.VMEM)],
        out_specs=pl.BlockSpec(memory_space=pltpu.MemorySpace.VMEM),
    )(xT, const_slab)

    # split the lane-dense slab: per batch block [phi_h | l_h | phi_t_]
    out = out.reshape(NF[0] * SEQ, BATCH, PER_B_OUT)
    out = jnp.transpose(out, (1, 2, 0))                       # (B, 64, C0*SEQ)
    phi_h = out[:, :N_H0, :].reshape(BATCH * N_H0, NF[0], SEQ)
    l_h = out[:, N_H0:2 * N_H0, :].reshape(BATCH, N_H0, SEQ)
    phi_tp = out[:, 2 * N_H0:, :].reshape(BATCH, N_T0, SEQ)
    zm = jnp.zeros((BATCH, LATENT_DIM, N_T3, LATENT_SEQ), jnp.float32)
    return phi_h, phi_tp, l_h, zm, zm, zm, zm


# --------------------------- deterministic params ---------------------------
def init_params(key):
    keys = iter(jax.random.split(key, 128))

    def nrm(shape, scale):
        return jax.random.normal(next(keys), shape, jnp.float32) * scale

    def adj(n):
        u = jax.random.uniform(next(keys), (n, n), jnp.float32) + 0.1
        return u / jnp.sum(u, axis=1, keepdims=True)

    def pool(n_out, n_in):
        u = jax.random.uniform(next(keys), (n_out, n_in), jnp.float32) + 0.1
        return u / jnp.sum(u, axis=1, keepdims=True)

    def stgcn(cin, cout, tin, tout):
        return dict(Wg=nrm((cin, cout), cin ** -0.5),
                    bg=nrm((cout,), 0.01),
                    Wt=nrm((tin, tout), tin ** -0.5),
                    bt=nrm((tout,), 0.01))

    p = {}
    p["conv1"] = stgcn(NF[0], NF[2], NS[0], NS[2])
    p["conv2"] = stgcn(NF[2], NF[3], NS[2], NS[3])
    p["conv3"] = stgcn(NF[3], NF[4], NS[3], NS[4])
    p["deconv4"] = stgcn(NF[5], NF[3], NS[4], NS[3])
    p["deconv3"] = stgcn(NF[3], NF[2], NS[3], NS[2])
    p["deconv2"] = stgcn(NF[2], NF[1], NS[2], NS[1])
    p["deconv1"] = stgcn(NF[1], NF[0], NS[1], NS[0])
    p["fce1_W"] = nrm((NF[4], NF[-1]), NF[4] ** -0.5)
    p["fce1_b"] = nrm((NF[-1],), 0.01)
    p["fce21_W"] = nrm((NF[-1], LATENT_DIM), NF[-1] ** -0.5)
    p["fce21_b"] = nrm((LATENT_DIM,), 0.01)
    p["fcd3_W"] = nrm((LATENT_DIM, NF[-1]), LATENT_DIM ** -0.5)
    p["fcd3_b"] = nrm((NF[-1],), 0.01)
    p["fcd4_W"] = nrm((NF[-1], NF[5]), NF[-1] ** -0.5)
    p["fcd4_b"] = nrm((NF[5],), 0.01)
    p["W_trans"] = nrm((LATENT_DIM, LATENT_DIM), LATENT_DIM ** -0.5)
    # graphs (edge_index/edge_attr folded into dense weighted adjacencies)
    p["A_t0"], p["A_t1"], p["A_t2"] = adj(N_T0), adj(N_T1), adj(N_T2)
    p["A_h0"], p["A_h1"], p["A_h2"], p["A_h3"] = (adj(N_H0), adj(N_H1),
                                                  adj(N_H2), adj(N_H3))
    p["A_hinv"] = adj(N_H_LAT + N_T3)
    p["t_P01"], p["t_P12"], p["t_P23"] = (pool(N_T1, N_T0), pool(N_T2, N_T1),
                                          pool(N_T3, N_T2))
    p["P43"], p["P32"] = pool(N_H3, N_H_LAT), pool(N_H2, N_H3)
    p["P21"], p["P10"] = pool(N_H1, N_H2), pool(N_H0, N_H1)
    p["P"] = pool(N_H_LAT, N_T3)          # kept for structural fidelity
    p["h_L"] = nrm((N_H0, N_H0), 0.1)     # heart Laplacian
    p["t_H"] = nrm((N_T0, N_H0), 0.1)     # forward operator H
    return p


# ----------------------------------- main ------------------------------------
if __name__ == "__main__":
    key = jax.random.PRNGKey(0)
    k_in, k_par = jax.random.split(key)
    params = init_params(k_par)
    # torso potentials: (batch, N_torso_nodes, nf[0], seq_len)
    phi_t = jax.random.normal(k_in, (BATCH, N_T0, NF[0], SEQ), jnp.float32)

    const_slab, offs = pack_constants(params)
    fwd = jax.jit(functools.partial(forward, offs))

    outs = jax.block_until_ready(fwd(phi_t, const_slab))
    phi_h, phi_tp, l_h = outs[0], outs[1], outs[2]
    assert phi_h.shape == (BATCH * N_H0, NF[0], SEQ)
    assert phi_tp.shape == (BATCH, N_T0, SEQ)
    assert l_h.shape == (BATCH, N_H0, SEQ)
    assert outs[3].shape == (BATCH, LATENT_DIM, N_T3, LATENT_SEQ)
    print("KERNEL_OK")
</pallas_src>

<mosaic_0001>
module attributes {stable_mosaic.version = 11 : i64} {
  func.func @_fused_kernel(%arg0: memref<16x48xbf16, #tpu.memory_space<vmem>>, %arg1: memref<1968x128xbf16, #tpu.memory_space<vmem>>, %arg2: memref<16x128xf32, #tpu.memory_space<vmem>>) attributes {dimension_semantics = [], scalar_prefetch = 0 : i64, scratch_operands = 0 : i64, tpu.core_type = #tpu.core_type<tc>} {
    %c0 = arith.constant 0 : index
    %c0_0 = arith.constant 0 : index
    %0 = vector.load %arg0[%c0, %c0_0] : memref<16x48xbf16, #tpu.memory_space<vmem>>, vector<16x48xbf16>
    %c0_1 = arith.constant 0 : index
    %c0_2 = arith.constant 0 : index
    %1 = vector.load %arg1[%c0_1, %c0_2] : memref<1968x128xbf16, #tpu.memory_space<vmem>>, vector<48x48xbf16>
    %cst = arith.constant dense<0.000000e+00> : vector<16x48xf32>
    %2 = tpu.matmul %0, %1, %cst {dimension_numbers = #tpu.dot_dimension_numbers<[1], [0], [0], [1], [0, 0, 1, 1], [], []>} : vector<16x48xbf16>, vector<48x48xbf16>, vector<16x48xf32> -> vector<16x48xf32>
    %3 = arith.truncf %2 : vector<16x48xf32> to vector<16x48xbf16>
    %c48 = arith.constant 48 : index
    %c0_3 = arith.constant 0 : index
    %4 = vector.load %arg1[%c48, %c0_3] : memref<1968x128xbf16, #tpu.memory_space<vmem>>, vector<128x16xbf16>
    %cst_4 = arith.constant dense<0.000000e+00> : vector<128x48xf32>
    %5 = tpu.matmul %4, %3, %cst_4 {dimension_numbers = #tpu.dot_dimension_numbers<[1], [0], [0], [1], [0, 0, 1, 1], [], []>} : vector<128x16xbf16>, vector<16x48xbf16>, vector<128x48xf32> -> vector<128x48xf32>
    %c1840 = arith.constant 1840 : index
    %c0_5 = arith.constant 0 : index
    %6 = vector.load %arg1[%c1840, %c0_5] : memref<1968x128xbf16, #tpu.memory_space<vmem>>, vector<128x1xbf16>
    %7 = arith.extf %6 : vector<128x1xbf16> to vector<128x1xf32>
    %8 = vector.broadcast %7 : vector<128x1xf32> to vector<128x48xf32>
    %9 = arith.addf %5, %8 : vector<128x48xf32>
    %cst_6 = arith.constant 0.000000e+00 : f32
    %10 = vector.broadcast %cst_6 : f32 to vector<128x48xf32>
    %11 = arith.cmpf ogt, %9, %10 : vector<128x48xf32>
    %cst_7 = arith.constant 0.000000e+00 : f32
    %12 = vector.broadcast %cst_7 : f32 to vector<128x48xf32>
    %13 = arith.minimumf %9, %12 : vector<128x48xf32>
    %14 = math.exp %13 : vector<128x48xf32>
    %cst_8 = arith.constant 1.000000e+00 : f32
    %15 = vector.broadcast %cst_8 : f32 to vector<128x48xf32>
    %16 = arith.subf %14, %15 : vector<128x48xf32>
    %17 = arith.select %11, %9, %16 : vector<128x48xi1>, vector<128x48xf32>
    %18 = arith.truncf %17 : vector<128x48xf32> to vector<128x48xbf16>
    %c176 = arith.constant 176 : index
    %c0_9 = arith.constant 0 : index
    %19 = vector.load %arg1[%c176, %c0_9] : memref<1968x128xbf16, #tpu.memory_space<vmem>>, vector<64x128xbf16>
    %cst_10 = arith.constant dense<0.000000e+00> : vector<64x48xf32>
    %20 = tpu.matmul %19, %18, %cst_10 {dimension_numbers = #tpu.dot_dimension_numbers<[1], [0], [0], [1], [0, 0, 1, 1], [], []>} : vector<64x128xbf16>, vector<128x48xbf16>, vector<64x48xf32> -> vector<64x48xf32>
    %c1840_11 = arith.constant 1840 : index
    %c1 = arith.constant 1 : index
    %21 = vector.load %arg1[%c1840_11, %c1] : memref<1968x128xbf16, #tpu.memory_space<vmem>>, vector<64x1xbf16>
    %22 = arith.extf %21 : vector<64x1xbf16> to vector<64x1xf32>
    %23 = vector.broadcast %22 : vector<64x1xf32> to vector<64x48xf32>
    %24 = arith.addf %20, %23 : vector<64x48xf32>
    %cst_12 = arith.constant 0.000000e+00 : f32
    %25 = vector.broadcast %cst_12 : f32 to vector<64x48xf32>
    %26 = arith.cmpf ogt, %24, %25 : vector<64x48xf32>
    %cst_13 = arith.constant 0.000000e+00 : f32
    %27 = vector.broadcast %cst_13 : f32 to vector<64x48xf32>
    %28 = arith.minimumf %24, %27 : vector<64x48xf32>
    %29 = math.exp %28 : vector<64x48xf32>
    %cst_14 = arith.constant 1.000000e+00 : f32
    %30 = vector.broadcast %cst_14 : f32 to vector<64x48xf32>
    %31 = arith.subf %29, %30 : vector<64x48xf32>
    %32 = arith.select %26, %24, %31 : vector<64x48xi1>, vector<64x48xf32>
    %33 = arith.truncf %32 : vector<64x48xf32> to vector<64x48xbf16>
    %c240 = arith.constant 240 : index
    %c0_15 = arith.constant 0 : index
    %34 = vector.load %arg1[%c240, %c0_15] : memref<1968x128xbf16, #tpu.memory_space<vmem>>, vector<48x32xbf16>
    %cst_16 = arith.constant dense<0.000000e+00> : vector<64x32xf32>
    %35 = tpu.matmul %33, %34, %cst_16 {dimension_numbers = #tpu.dot_dimension_numbers<[1], [0], [0], [1], [0, 0, 1, 1], [], []>} : vector<64x48xbf16>, vector<48x32xbf16>, vector<64x32xf32> -> vector<64x32xf32>
    %36 = arith.truncf %35 : vector<64x32xf32> to vector<64x32xbf16>
    %c288 = arith.constant 288 : index
    %c0_17 = arith.constant 0 : index
    %37 = vector.load %arg1[%c288, %c0_17] : memref<1968x128xbf16, #tpu.memory_space<vmem>>, vector<128x64xbf16>
    %cst_18 = arith.constant dense<0.000000e+00> : vector<128x32xf32>
    %38 = tpu.matmul %37, %36, %cst_18 {dimension_numbers = #tpu.dot_dimension_numbers<[1], [0], [0], [1], [0, 0, 1, 1], [], []>} : vector<128x64xbf16>, vector<64x32xbf16>, vector<128x32xf32> -> vector<128x32xf32>
    %c1840_19 = arith.constant 1840 : index
    %c2 = arith.constant 2 : index
    %39 = vector.load %arg1[%c1840_19, %c2] : memref<1968x128xbf16, #tpu.memory_space<vmem>>, vector<128x1xbf16>
    %40 = arith.extf %39 : vector<128x1xbf16> to vector<128x1xf32>
    %41 = vector.broadcast %40 : vector<128x1xf32> to vector<128x32xf32>
    %42 = arith.addf %38, %41 : vector<128x32xf32>
    %cst_20 = arith.constant 0.000000e+00 : f32
    %43 = vector.broadcast %cst_20 : f32 to vector<128x32xf32>
    %44 = arith.cmpf ogt, %42, %43 : vector<128x32xf32>
    %cst_21 = arith.constant 0.000000e+00 : f32
    %45 = vector.broadcast %cst_21 : f32 to vector<128x32xf32>
    %46 = arith.minimumf %42, %45 : vector<128x32xf32>
    %47 = math.exp %46 : vector<128x32xf32>
    %cst_22 = arith.constant 1.000000e+00 : f32
    %48 = vector.broadcast %cst_22 : f32 to vector<128x32xf32>
    %49 = arith.subf %47, %48 : vector<128x32xf32>
    %50 = arith.select %44, %42, %49 : vector<128x32xi1>, vector<128x32xf32>
    %51 = arith.truncf %50 : vector<128x32xf32> to vector<128x32xbf16>
    %c416 = arith.constant 416 : index
    %c0_23 = arith.constant 0 : index
    %52 = vector.load %arg1[%c416, %c0_23] : memref<1968x128xbf16, #tpu.memory_space<vmem>>, vector<128x128xbf16>
    %cst_24 = arith.constant dense<0.000000e+00> : vector<128x32xf32>
    %53 = tpu.matmul %52, %51, %cst_24 {dimension_numbers = #tpu.dot_dimension_numbers<[1], [0], [0], [1], [0, 0, 1, 1], [], []>} : vector<128x128xbf16>, vector<128x32xbf16>, vector<128x32xf32> -> vector<128x32xf32>
    %c1840_25 = arith.constant 1840 : index
    %c3 = arith.constant 3 : index
    %54 = vector.load %arg1[%c1840_25, %c3] : memref<1968x128xbf16, #tpu.memory_space<vmem>>, vector<128x1xbf16>
    %55 = arith.extf %54 : vector<128x1xbf16> to vector<128x1xf32>
    %56 = vector.broadcast %55 : vector<128x1xf32> to vector<128x32xf32>
    %57 = arith.addf %53, %56 : vector<128x32xf32>
    %cst_26 = arith.constant 0.000000e+00 : f32
    %58 = vector.broadcast %cst_26 : f32 to vector<128x32xf32>
    %59 = arith.cmpf ogt, %57, %58 : vector<128x32xf32>
    %cst_27 = arith.constant 0.000000e+00 : f32
    %60 = vector.broadcast %cst_27 : f32 to vector<128x32xf32>
    %61 = arith.minimumf %57, %60 : vector<128x32xf32>
    %62 = math.exp %61 : vector<128x32xf32>
    %cst_28 = arith.constant 1.000000e+00 : f32
    %63 = vector.broadcast %cst_28 : f32 to vector<128x32xf32>
    %64 = arith.subf %62, %63 : vector<128x32xf32>
    %65 = arith.select %59, %57, %64 : vector<128x32xi1>, vector<128x32xf32>
    %66 = arith.truncf %65 : vector<128x32xf32> to vector<128x32xbf16>
    %c544 = arith.constant 544 : index
    %c0_29 = arith.constant 0 : index
    %67 = vector.load %arg1[%c544, %c0_29] : memref<1968x128xbf16, #tpu.memory_space<vmem>>, vector<32x24xbf16>
    %cst_30 = arith.constant dense<0.000000e+00> : vector<128x24xf32>
    %68 = tpu.matmul %66, %67, %cst_30 {dimension_numbers = #tpu.dot_dimension_numbers<[1], [0], [0], [1], [0, 0, 1, 1], [], []>} : vector<128x32xbf16>, vector<32x24xbf16>, vector<128x24xf32> -> vector<128x24xf32>
    %69 = arith.truncf %68 : vector<128x24xf32> to vector<128x24xbf16>
    %c576 = arith.constant 576 : index
    %c0_31 = arith.constant 0 : index
    %70 = vector.load %arg1[%c576, %c0_31] : memref<1968x128xbf16, #tpu.memory_space<vmem>>, vector<128x128xbf16>
    %cst_32 = arith.constant dense<0.000000e+00> : vector<128x24xf32>
    %71 = tpu.matmul %70, %69, %cst_32 {dimension_numbers = #tpu.dot_dimension_numbers<[1], [0], [0], [1], [0, 0, 1, 1], [], []>} : vector<128x128xbf16>, vector<128x24xbf16>, vector<128x24xf32> -> vector<128x24xf32>
    %c1840_33 = arith.constant 1840 : index
    %c4 = arith.constant 4 : index
    %72 = vector.load %arg1[%c1840_33, %c4] : memref<1968x128xbf16, #tpu.memory_space<vmem>>, vector<128x1xbf16>
    %73 = arith.extf %72 : vector<128x1xbf16> to vector<128x1xf32>
    %74 = vector.broadcast %73 : vector<128x1xf32> to vector<128x24xf32>
    %75 = arith.addf %71, %74 : vector<128x24xf32>
    %cst_34 = arith.constant 0.000000e+00 : f32
    %76 = vector.broadcast %cst_34 : f32 to vector<128x24xf32>
    %77 = arith.cmpf ogt, %75, %76 : vector<128x24xf32>
    %cst_35 = arith.constant 0.000000e+00 : f32
    %78 = vector.broadcast %cst_35 : f32 to vector<128x24xf32>
    %79 = arith.minimumf %75, %78 : vector<128x24xf32>
    %80 = math.exp %79 : vector<128x24xf32>
    %cst_36 = arith.constant 1.000000e+00 : f32
    %81 = vector.broadcast %cst_36 : f32 to vector<128x24xf32>
    %82 = arith.subf %80, %81 : vector<128x24xf32>
    %83 = arith.select %77, %75, %82 : vector<128x24xi1>, vector<128x24xf32>
    %84 = arith.truncf %83 : vector<128x24xf32> to vector<128x24xbf16>
    %c704 = arith.constant 704 : index
    %c0_37 = arith.constant 0 : index
    %85 = vector.load %arg1[%c704, %c0_37] : memref<1968x128xbf16, #tpu.memory_space<vmem>>, vector<64x128xbf16>
    %cst_38 = arith.constant dense<0.000000e+00> : vector<64x24xf32>
    %86 = tpu.matmul %85, %84, %cst_38 {dimension_numbers = #tpu.dot_dimension_numbers<[1], [0], [0], [1], [0, 0, 1, 1], [], []>} : vector<64x128xbf16>, vector<128x24xbf16>, vector<64x24xf32> -> vector<64x24xf32>
    %c1840_39 = arith.constant 1840 : index
    %c5 = arith.constant 5 : index
    %87 = vector.load %arg1[%c1840_39, %c5] : memref<1968x128xbf16, #tpu.memory_space<vmem>>, vector<64x1xbf16>
    %88 = arith.extf %87 : vector<64x1xbf16> to vector<64x1xf32>
    %89 = vector.broadcast %88 : vector<64x1xf32> to vector<64x24xf32>
    %90 = arith.addf %86, %89 : vector<64x24xf32>
    %cst_40 = arith.constant 0.000000e+00 : f32
    %91 = vector.broadcast %cst_40 : f32 to vector<64x24xf32>
    %92 = arith.cmpf ogt, %90, %91 : vector<64x24xf32>
    %cst_41 = arith.constant 0.000000e+00 : f32
    %93 = vector.broadcast %cst_41 : f32 to vector<64x24xf32>
    %94 = arith.minimumf %90, %93 : vector<64x24xf32>
    %95 = math.exp %94 : vector<64x24xf32>
    %cst_42 = arith.constant 1.000000e+00 : f32
    %96 = vector.broadcast %cst_42 : f32 to vector<64x24xf32>
    %97 = arith.subf %95, %96 : vector<64x24xf32>
    %98 = arith.select %92, %90, %97 : vector<64x24xi1>, vector<64x24xf32>
    %99 = arith.truncf %98 : vector<64x24xf32> to vector<64x24xbf16>
    %c768 = arith.constant 768 : index
    %c0_43 = arith.constant 0 : index
    %100 = vector.load %arg1[%c768, %c0_43] : memref<1968x128xbf16, #tpu.memory_space<vmem>>, vector<24x16xbf16>
    %cst_44 = arith.constant dense<0.000000e+00> : vector<64x16xf32>
    %101 = tpu.matmul %99, %100, %cst_44 {dimension_numbers = #tpu.dot_dimension_numbers<[1], [0], [0], [1], [0, 0, 1, 1], [], []>} : vector<64x24xbf16>, vector<24x16xbf16>, vector<64x16xf32> -> vector<64x16xf32>
    %102 = arith.truncf %101 : vector<64x16xf32> to vector<64x16xbf16>
    %c800 = arith.constant 800 : index
    %c0_45 = arith.constant 0 : index
    %103 = vector.load %arg1[%c800, %c0_45] : memref<1968x128xbf16, #tpu.memory_space<vmem>>, vector<128x64xbf16>
    %cst_46 = arith.constant dense<0.000000e+00> : vector<128x16xf32>
    %104 = tpu.matmul %103, %102, %cst_46 {dimension_numbers = #tpu.dot_dimension_numbers<[1], [0], [0], [1], [0, 0, 1, 1], [], []>} : vector<128x64xbf16>, vector<64x16xbf16>, vector<128x16xf32> -> vector<128x16xf32>
    %c1840_47 = arith.constant 1840 : index
    %c6 = arith.constant 6 : index
    %105 = vector.load %arg1[%c1840_47, %c6] : memref<1968x128xbf16, #tpu.memory_space<vmem>>, vector<128x1xbf16>
    %106 = arith.extf %105 : vector<128x1xbf16> to vector<128x1xf32>
    %107 = vector.broadcast %106 : vector<128x1xf32> to vector<128x16xf32>
    %108 = arith.addf %104, %107 : vector<128x16xf32>
    %cst_48 = arith.constant 0.000000e+00 : f32
    %109 = vector.broadcast %cst_48 : f32 to vector<128x16xf32>
    %110 = arith.cmpf ogt, %108, %109 : vector<128x16xf32>
    %cst_49 = arith.constant 0.000000e+00 : f32
    %111 = vector.broadcast %cst_49 : f32 to vector<128x16xf32>
    %112 = arith.minimumf %108, %111 : vector<128x16xf32>
    %113 = math.exp %112 : vector<128x16xf32>
    %cst_50 = arith.constant 1.000000e+00 : f32
    %114 = vector.broadcast %cst_50 : f32 to vector<128x16xf32>
    %115 = arith.subf %113, %114 : vector<128x16xf32>
    %116 = arith.select %110, %108, %115 : vector<128x16xi1>, vector<128x16xf32>
    %117 = arith.truncf %116 : vector<128x16xf32> to vector<128x16xbf16>
    %c928 = arith.constant 928 : index
    %c0_51 = arith.constant 0 : index
    %118 = vector.load %arg1[%c928, %c0_51] : memref<1968x128xbf16, #tpu.memory_space<vmem>>, vector<32x128xbf16>
    %cst_52 = arith.constant dense<0.000000e+00> : vector<32x16xf32>
    %119 = tpu.matmul %118, %117, %cst_52 {dimension_numbers = #tpu.dot_dimension_numbers<[1], [0], [0], [1], [0, 0, 1, 1], [], []>} : vector<32x128xbf16>, vector<128x16xbf16>, vector<32x16xf32> -> vector<32x16xf32>
    %c1840_53 = arith.constant 1840 : index
    %c7 = arith.constant 7 : index
    %120 = vector.load %arg1[%c1840_53, %c7] : memref<1968x128xbf16, #tpu.memory_space<vmem>>, vector<32x1xbf16>
    %121 = arith.extf %120 : vector<32x1xbf16> to vector<32x1xf32>
    %122 = vector.broadcast %121 : vector<32x1xf32> to vector<32x16xf32>
    %123 = arith.addf %119, %122 : vector<32x16xf32>
    %124 = arith.truncf %123 : vector<32x16xf32> to vector<32x16xbf16>
    %c960 = arith.constant 960 : index
    %c0_54 = arith.constant 0 : index
    %125 = vector.load %arg1[%c960, %c0_54] : memref<1968x128xbf16, #tpu.memory_space<vmem>>, vector<16x16xbf16>
    %cst_55 = arith.constant dense<0.000000e+00> : vector<32x16xf32>
    %126 = tpu.matmul %124, %125, %cst_55 {dimension_numbers = #tpu.dot_dimension_numbers<[1], [0], [0], [1], [0, 0, 1, 1], [], []>} : vector<32x16xbf16>, vector<16x16xbf16>, vector<32x16xf32> -> vector<32x16xf32>
    %127 = arith.truncf %126 : vector<32x16xf32> to vector<32x16xbf16>
    %c976 = arith.constant 976 : index
    %c0_56 = arith.constant 0 : index
    %128 = vector.load %arg1[%c976, %c0_56] : memref<1968x128xbf16, #tpu.memory_space<vmem>>, vector<128x32xbf16>
    %cst_57 = arith.constant dense<0.000000e+00> : vector<128x16xf32>
    %129 = tpu.matmul %128, %127, %cst_57 {dimension_numbers = #tpu.dot_dimension_numbers<[1], [0], [0], [1], [0, 0, 1, 1], [], []>} : vector<128x32xbf16>, vector<32x16xbf16>, vector<128x16xf32> -> vector<128x16xf32>
    %c1840_58 = arith.constant 1840 : index
    %c8 = arith.constant 8 : index
    %130 = vector.load %arg1[%c1840_58, %c8] : memref<1968x128xbf16, #tpu.memory_space<vmem>>, vector<128x1xbf16>
    %131 = arith.extf %130 : vector<128x1xbf16> to vector<128x1xf32>
    %132 = vector.broadcast %131 : vector<128x1xf32> to vector<128x16xf32>
    %133 = arith.addf %129, %132 : vector<128x16xf32>
    %cst_59 = arith.constant 0.000000e+00 : f32
    %134 = vector.broadcast %cst_59 : f32 to vector<128x16xf32>
    %135 = arith.cmpf ogt, %133, %134 : vector<128x16xf32>
    %cst_60 = arith.constant 0.000000e+00 : f32
    %136 = vector.broadcast %cst_60 : f32 to vector<128x16xf32>
    %137 = arith.minimumf %133, %136 : vector<128x16xf32>
    %138 = math.exp %137 : vector<128x16xf32>
    %cst_61 = arith.constant 1.000000e+00 : f32
    %139 = vector.broadcast %cst_61 : f32 to vector<128x16xf32>
    %140 = arith.subf %138, %139 : vector<128x16xf32>
    %141 = arith.select %135, %133, %140 : vector<128x16xi1>, vector<128x16xf32>
    %142 = arith.truncf %141 : vector<128x16xf32> to vector<128x16xbf16>
    %c1104 = arith.constant 1104 : index
    %c0_62 = arith.constant 0 : index
    %143 = vector.load %arg1[%c1104, %c0_62] : memref<1968x128xbf16, #tpu.memory_space<vmem>>, vector<32x128xbf16>
    %cst_63 = arith.constant dense<0.000000e+00> : vector<32x16xf32>
    %144 = tpu.matmul %143, %142, %cst_63 {dimension_numbers = #tpu.dot_dimension_numbers<[1], [0], [0], [1], [0, 0, 1, 1], [], []>} : vector<32x128xbf16>, vector<128x16xbf16>, vector<32x16xf32> -> vector<32x16xf32>
    %c1840_64 = arith.constant 1840 : index
    %c9 = arith.constant 9 : index
    %145 = vector.load %arg1[%c1840_64, %c9] : memref<1968x128xbf16, #tpu.memory_space<vmem>>, vector<32x1xbf16>
    %146 = arith.extf %145 : vector<32x1xbf16> to vector<32x1xf32>
    %147 = vector.broadcast %146 : vector<32x1xf32> to vector<32x16xf32>
    %148 = arith.addf %144, %147 : vector<32x16xf32>
    %cst_65 = arith.constant 0.000000e+00 : f32
    %149 = vector.broadcast %cst_65 : f32 to vector<32x16xf32>
    %150 = arith.cmpf ogt, %148, %149 : vector<32x16xf32>
    %cst_66 = arith.constant 0.000000e+00 : f32
    %151 = vector.broadcast %cst_66 : f32 to vector<32x16xf32>
    %152 = arith.minimumf %148, %151 : vector<32x16xf32>
    %153 = math.exp %152 : vector<32x16xf32>
    %cst_67 = arith.constant 1.000000e+00 : f32
    %154 = vector.broadcast %cst_67 : f32 to vector<32x16xf32>
    %155 = arith.subf %153, %154 : vector<32x16xf32>
    %156 = arith.select %150, %148, %155 : vector<32x16xi1>, vector<32x16xf32>
    %157 = arith.truncf %156 : vector<32x16xf32> to vector<32x16xbf16>
    %c1136 = arith.constant 1136 : index
    %c0_68 = arith.constant 0 : index
    %158 = vector.load %arg1[%c1136, %c0_68] : memref<1968x128xbf16, #tpu.memory_space<vmem>>, vector<16x24xbf16>
    %cst_69 = arith.constant dense<0.000000e+00> : vector<32x24xf32>
    %159 = tpu.matmul %157, %158, %cst_69 {dimension_numbers = #tpu.dot_dimension_numbers<[1], [0], [0], [1], [0, 0, 1, 1], [], []>} : vector<32x16xbf16>, vector<16x24xbf16>, vector<32x24xf32> -> vector<32x24xf32>
    %160 = arith.truncf %159 : vector<32x24xf32> to vector<32x24xbf16>
    %c1152 = arith.constant 1152 : index
    %c0_70 = arith.constant 0 : index
    %161 = vector.load %arg1[%c1152, %c0_70] : memref<1968x128xbf16, #tpu.memory_space<vmem>>, vector<64x32xbf16>
    %cst_71 = arith.constant dense<0.000000e+00> : vector<64x24xf32>
    %162 = tpu.matmul %161, %160, %cst_71 {dimension_numbers = #tpu.dot_dimension_numbers<[1], [0], [0], [1], [0, 0, 1, 1], [], []>} : vector<64x32xbf16>, vector<32x24xbf16>, vector<64x24xf32> -> vector<64x24xf32>
    %c1840_72 = arith.constant 1840 : index
    %c10 = arith.constant 10 : index
    %163 = vector.load %arg1[%c1840_72, %c10] : memref<1968x128xbf16, #tpu.memory_space<vmem>>, vector<64x1xbf16>
    %164 = arith.extf %163 : vector<64x1xbf16> to vector<64x1xf32>
    %165 = vector.broadcast %164 : vector<64x1xf32> to vector<64x24xf32>
    %166 = arith.addf %162, %165 : vector<64x24xf32>
    %cst_73 = arith.constant 0.000000e+00 : f32
    %167 = vector.broadcast %cst_73 : f32 to vector<64x24xf32>
    %168 = arith.cmpf ogt, %166, %167 : vector<64x24xf32>
    %cst_74 = arith.constant 0.000000e+00 : f32
    %169 = vector.broadcast %cst_74 : f32 to vector<64x24xf32>
    %170 = arith.minimumf %166, %169 : vector<64x24xf32>
    %171 = math.exp %170 : vector<64x24xf32>
    %cst_75 = arith.constant 1.000000e+00 : f32
    %172 = vector.broadcast %cst_75 : f32 to vector<64x24xf32>
    %173 = arith.subf %171, %172 : vector<64x24xf32>
    %174 = arith.select %168, %166, %173 : vector<64x24xi1>, vector<64x24xf32>
    %175 = arith.truncf %174 : vector<64x24xf32> to vector<64x24xbf16>
    %c1216 = arith.constant 1216 : index
    %c0_76 = arith.constant 0 : index
    %176 = vector.load %arg1[%c1216, %c0_76] : memref<1968x128xbf16, #tpu.memory_space<vmem>>, vector<128x64xbf16>
    %cst_77 = arith.constant dense<0.000000e+00> : vector<128x24xf32>
    %177 = tpu.matmul %176, %175, %cst_77 {dimension_numbers = #tpu.dot_dimension_numbers<[1], [0], [0], [1], [0, 0, 1, 1], [], []>} : vector<128x64xbf16>, vector<64x24xbf16>, vector<128x24xf32> -> vector<128x24xf32>
    %c1840_78 = arith.constant 1840 : index
    %c11 = arith.constant 11 : index
    %178 = vector.load %arg1[%c1840_78, %c11] : memref<1968x128xbf16, #tpu.memory_space<vmem>>, vector<128x1xbf16>
    %179 = arith.extf %178 : vector<128x1xbf16> to vector<128x1xf32>
    %180 = vector.broadcast %179 : vector<128x1xf32> to vector<128x24xf32>
    %181 = arith.addf %177, %180 : vector<128x24xf32>
    %cst_79 = arith.constant 0.000000e+00 : f32
    %182 = vector.broadcast %cst_79 : f32 to vector<128x24xf32>
    %183 = arith.cmpf ogt, %181, %182 : vector<128x24xf32>
    %cst_80 = arith.constant 0.000000e+00 : f32
    %184 = vector.broadcast %cst_80 : f32 to vector<128x24xf32>
    %185 = arith.minimumf %181, %184 : vector<128x24xf32>
    %186 = math.exp %185 : vector<128x24xf32>
    %cst_81 = arith.constant 1.000000e+00 : f32
    %187 = vector.broadcast %cst_81 : f32 to vector<128x24xf32>
    %188 = arith.subf %186, %187 : vector<128x24xf32>
    %189 = arith.select %183, %181, %188 : vector<128x24xi1>, vector<128x24xf32>
    %190 = arith.truncf %189 : vector<128x24xf32> to vector<128x24xbf16>
    %c1344 = arith.constant 1344 : index
    %c0_82 = arith.constant 0 : index
    %191 = vector.load %arg1[%c1344, %c0_82] : memref<1968x128xbf16, #tpu.memory_space<vmem>>, vector<24x24xbf16>
    %cst_83 = arith.constant dense<0.000000e+00> : vector<128x24xf32>
    %192 = tpu.matmul %190, %191, %cst_83 {dimension_numbers = #tpu.dot_dimension_numbers<[1], [0], [0], [1], [0, 0, 1, 1], [], []>} : vector<128x24xbf16>, vector<24x24xbf16>, vector<128x24xf32> -> vector<128x24xf32>
    %193 = arith.truncf %192 : vector<128x24xf32> to vector<128x24xbf16>
    %c1376 = arith.constant 1376 : index
    %c0_84 = arith.constant 0 : index
    %194 = vector.load %arg1[%c1376, %c0_84] : memref<1968x128xbf16, #tpu.memory_space<vmem>>, vector<64x128xbf16>
    %cst_85 = arith.constant dense<0.000000e+00> : vector<64x24xf32>
    %195 = tpu.matmul %194, %193, %cst_85 {dimension_numbers = #tpu.dot_dimension_numbers<[1], [0], [0], [1], [0, 0, 1, 1], [], []>} : vector<64x128xbf16>, vector<128x24xbf16>, vector<64x24xf32> -> vector<64x24xf32>
    %c1840_86 = arith.constant 1840 : index
    %c12 = arith.constant 12 : index
    %196 = vector.load %arg1[%c1840_86, %c12] : memref<1968x128xbf16, #tpu.memory_space<vmem>>, vector<64x1xbf16>
    %197 = arith.extf %196 : vector<64x1xbf16> to vector<64x1xf32>
    %198 = vector.broadcast %197 : vector<64x1xf32> to vector<64x24xf32>
    %199 = arith.addf %195, %198 : vector<64x24xf32>
    %cst_87 = arith.constant 0.000000e+00 : f32
    %200 = vector.broadcast %cst_87 : f32 to vector<64x24xf32>
    %201 = arith.cmpf ogt, %199, %200 : vector<64x24xf32>
    %cst_88 = arith.constant 0.000000e+00 : f32
    %202 = vector.broadcast %cst_88 : f32 to vector<64x24xf32>
    %203 = arith.minimumf %199, %202 : vector<64x24xf32>
    %204 = math.exp %203 : vector<64x24xf32>
    %cst_89 = arith.constant 1.000000e+00 : f32
    %205 = vector.broadcast %cst_89 : f32 to vector<64x24xf32>
    %206 = arith.subf %204, %205 : vector<64x24xf32>
    %207 = arith.select %201, %199, %206 : vector<64x24xi1>, vector<64x24xf32>
    %208 = arith.truncf %207 : vector<64x24xf32> to vector<64x24xbf16>
    %c1440 = arith.constant 1440 : index
    %c0_90 = arith.constant 0 : index
    %209 = vector.load %arg1[%c1440, %c0_90] : memref<1968x128xbf16, #tpu.memory_space<vmem>>, vector<64x64xbf16>
    %cst_91 = arith.constant dense<0.000000e+00> : vector<64x24xf32>
    %210 = tpu.matmul %209, %208, %cst_91 {dimension_numbers = #tpu.dot_dimension_numbers<[1], [0], [0], [1], [0, 0, 1, 1], [], []>} : vector<64x64xbf16>, vector<64x24xbf16>, vector<64x24xf32> -> vector<64x24xf32>
    %c1840_92 = arith.constant 1840 : index
    %c13 = arith.constant 13 : index
    %211 = vector.load %arg1[%c1840_92, %c13] : memref<1968x128xbf16, #tpu.memory_space<vmem>>, vector<64x1xbf16>
    %212 = arith.extf %211 : vector<64x1xbf16> to vector<64x1xf32>
    %213 = vector.broadcast %212 : vector<64x1xf32> to vector<64x24xf32>
    %214 = arith.addf %210, %213 : vector<64x24xf32>
    %cst_93 = arith.constant 0.000000e+00 : f32
    %215 = vector.broadcast %cst_93 : f32 to vector<64x24xf32>
    %216 = arith.cmpf ogt, %214, %215 : vector<64x24xf32>
    %cst_94 = arith.constant 0.000000e+00 : f32
    %217 = vector.broadcast %cst_94 : f32 to vector<64x24xf32>
    %218 = arith.minimumf %214, %217 : vector<64x24xf32>
    %219 = math.exp %218 : vector<64x24xf32>
    %cst_95 = arith.constant 1.000000e+00 : f32
    %220 = vector.broadcast %cst_95 : f32 to vector<64x24xf32>
    %221 = arith.subf %219, %220 : vector<64x24xf32>
    %222 = arith.select %216, %214, %221 : vector<64x24xi1>, vector<64x24xf32>
    %223 = arith.truncf %222 : vector<64x24xf32> to vector<64x24xbf16>
    %c1504 = arith.constant 1504 : index
    %c0_96 = arith.constant 0 : index
    %224 = vector.load %arg1[%c1504, %c0_96] : memref<1968x128xbf16, #tpu.memory_space<vmem>>, vector<24x32xbf16>
    %cst_97 = arith.constant dense<0.000000e+00> : vector<64x32xf32>
    %225 = tpu.matmul %223, %224, %cst_97 {dimension_numbers = #tpu.dot_dimension_numbers<[1], [0], [0], [1], [0, 0, 1, 1], [], []>} : vector<64x24xbf16>, vector<24x32xbf16>, vector<64x32xf32> -> vector<64x32xf32>
    %226 = arith.truncf %225 : vector<64x32xf32> to vector<64x32xbf16>
    %c1536 = arith.constant 1536 : index
    %c0_98 = arith.constant 0 : index
    %227 = vector.load %arg1[%c1536, %c0_98] : memref<1968x128xbf16, #tpu.memory_space<vmem>>, vector<64x64xbf16>
    %cst_99 = arith.constant dense<0.000000e+00> : vector<64x32xf32>
    %228 = tpu.matmul %227, %226, %cst_99 {dimension_numbers = #tpu.dot_dimension_numbers<[1], [0], [0], [1], [0, 0, 1, 1], [], []>} : vector<64x64xbf16>, vector<64x32xbf16>, vector<64x32xf32> -> vector<64x32xf32>
    %c1840_100 = arith.constant 1840 : index
    %c14 = arith.constant 14 : index
    %229 = vector.load %arg1[%c1840_100, %c14] : memref<1968x128xbf16, #tpu.memory_space<vmem>>, vector<64x1xbf16>
    %230 = arith.extf %229 : vector<64x1xbf16> to vector<64x1xf32>
    %231 = vector.broadcast %230 : vector<64x1xf32> to vector<64x32xf32>
    %232 = arith.addf %228, %231 : vector<64x32xf32>
    %cst_101 = arith.constant 0.000000e+00 : f32
    %233 = vector.broadcast %cst_101 : f32 to vector<64x32xf32>
    %234 = arith.cmpf ogt, %232, %233 : vector<64x32xf32>
    %cst_102 = arith.constant 0.000000e+00 : f32
    %235 = vector.broadcast %cst_102 : f32 to vector<64x32xf32>
    %236 = arith.minimumf %232, %235 : vector<64x32xf32>
    %237 = math.exp %236 : vector<64x32xf32>
    %cst_103 = arith.constant 1.000000e+00 : f32
    %238 = vector.broadcast %cst_103 : f32 to vector<64x32xf32>
    %239 = arith.subf %237, %238 : vector<64x32xf32>
    %240 = arith.select %234, %232, %239 : vector<64x32xi1>, vector<64x32xf32>
    %241 = arith.truncf %240 : vector<64x32xf32> to vector<64x32xbf16>
    %c1600 = arith.constant 1600 : index
    %c0_104 = arith.constant 0 : index
    %242 = vector.load %arg1[%c1600, %c0_104] : memref<1968x128xbf16, #tpu.memory_space<vmem>>, vector<128x64xbf16>
    %cst_105 = arith.constant dense<0.000000e+00> : vector<128x32xf32>
    %243 = tpu.matmul %242, %241, %cst_105 {dimension_numbers = #tpu.dot_dimension_numbers<[1], [0], [0], [1], [0, 0, 1, 1], [], []>} : vector<128x64xbf16>, vector<64x32xbf16>, vector<128x32xf32> -> vector<128x32xf32>
    %c1840_106 = arith.constant 1840 : index
    %c15 = arith.constant 15 : index
    %244 = vector.load %arg1[%c1840_106, %c15] : memref<1968x128xbf16, #tpu.memory_space<vmem>>, vector<128x1xbf16>
    %245 = arith.extf %244 : vector<128x1xbf16> to vector<128x1xf32>
    %246 = vector.broadcast %245 : vector<128x1xf32> to vector<128x32xf32>
    %247 = arith.addf %243, %246 : vector<128x32xf32>
    %cst_107 = arith.constant 0.000000e+00 : f32
    %248 = vector.broadcast %cst_107 : f32 to vector<128x32xf32>
    %249 = arith.cmpf ogt, %247, %248 : vector<128x32xf32>
    %cst_108 = arith.constant 0.000000e+00 : f32
    %250 = vector.broadcast %cst_108 : f32 to vector<128x32xf32>
    %251 = arith.minimumf %247, %250 : vector<128x32xf32>
    %252 = math.exp %251 : vector<128x32xf32>
    %cst_109 = arith.constant 1.000000e+00 : f32
    %253 = vector.broadcast %cst_109 : f32 to vector<128x32xf32>
    %254 = arith.subf %252, %253 : vector<128x32xf32>
    %255 = arith.select %249, %247, %254 : vector<128x32xi1>, vector<128x32xf32>
    %256 = arith.truncf %255 : vector<128x32xf32> to vector<128x32xbf16>
    %c1728 = arith.constant 1728 : index
    %c0_110 = arith.constant 0 : index
    %257 = vector.load %arg1[%c1728, %c0_110] : memref<1968x128xbf16, #tpu.memory_space<vmem>>, vector<32x40xbf16>
    %cst_111 = arith.constant dense<0.000000e+00> : vector<128x40xf32>
    %258 = tpu.matmul %256, %257, %cst_111 {dimension_numbers = #tpu.dot_dimension_numbers<[1], [0], [0], [1], [0, 0, 1, 1], [], []>} : vector<128x32xbf16>, vector<32x40xbf16>, vector<128x40xf32> -> vector<128x40xf32>
    %259 = arith.truncf %258 : vector<128x40xf32> to vector<128x40xbf16>
    %c1760 = arith.constant 1760 : index
    %c0_112 = arith.constant 0 : index
    %260 = vector.load %arg1[%c1760, %c0_112] : memref<1968x128xbf16, #tpu.memory_space<vmem>>, vector<16x128xbf16>
    %cst_113 = arith.constant dense<0.000000e+00> : vector<16x40xf32>
    %261 = tpu.matmul %260, %259, %cst_113 {dimension_numbers = #tpu.dot_dimension_numbers<[1], [0], [0], [1], [0, 0, 1, 1], [], []>} : vector<16x128xbf16>, vector<128x40xbf16>, vector<16x40xf32> -> vector<16x40xf32>
    %c1840_114 = arith.constant 1840 : index
    %c16 = arith.constant 16 : index
    %262 = vector.load %arg1[%c1840_114, %c16] : memref<1968x128xbf16, #tpu.memory_space<vmem>>, vector<16x1xbf16>
    %263 = arith.extf %262 : vector<16x1xbf16> to vector<16x1xf32>
    %264 = vector.broadcast %263 : vector<16x1xf32> to vector<16x40xf32>
    %265 = arith.addf %261, %264 : vector<16x40xf32>
    %cst_115 = arith.constant 0.000000e+00 : f32
    %266 = vector.broadcast %cst_115 : f32 to vector<16x40xf32>
    %267 = arith.cmpf ogt, %265, %266 : vector<16x40xf32>
    %cst_116 = arith.constant 0.000000e+00 : f32
    %268 = vector.broadcast %cst_116 : f32 to vector<16x40xf32>
    %269 = arith.minimumf %265, %268 : vector<16x40xf32>
    %270 = math.exp %269 : vector<16x40xf32>
    %cst_117 = arith.constant 1.000000e+00 : f32
    %271 = vector.broadcast %cst_117 : f32 to vector<16x40xf32>
    %272 = arith.subf %270, %271 : vector<16x40xf32>
    %273 = arith.select %267, %265, %272 : vector<16x40xi1>, vector<16x40xf32>
    %274 = arith.truncf %273 : vector<16x40xf32> to vector<16x40xbf16>
    %c1776 = arith.constant 1776 : index
    %c0_118 = arith.constant 0 : index
    %275 = vector.load %arg1[%c1776, %c0_118] : memref<1968x128xbf16, #tpu.memory_space<vmem>>, vector<16x16xbf16>
    %cst_119 = arith.constant dense<0.000000e+00> : vector<16x40xf32>
    %276 = tpu.matmul %275, %274, %cst_119 {dimension_numbers = #tpu.dot_dimension_numbers<[1], [0], [0], [1], [0, 0, 1, 1], [], []>} : vector<16x16xbf16>, vector<16x40xbf16>, vector<16x40xf32> -> vector<16x40xf32>
    %c1840_120 = arith.constant 1840 : index
    %c17 = arith.constant 17 : index
    %277 = vector.load %arg1[%c1840_120, %c17] : memref<1968x128xbf16, #tpu.memory_space<vmem>>, vector<16x1xbf16>
    %278 = arith.extf %277 : vector<16x1xbf16> to vector<16x1xf32>
    %279 = vector.broadcast %278 : vector<16x1xf32> to vector<16x40xf32>
    %280 = arith.addf %276, %279 : vector<16x40xf32>
    %cst_121 = arith.constant 0.000000e+00 : f32
    %281 = vector.broadcast %cst_121 : f32 to vector<16x40xf32>
    %282 = arith.cmpf ogt, %280, %281 : vector<16x40xf32>
    %cst_122 = arith.constant 0.000000e+00 : f32
    %283 = vector.broadcast %cst_122 : f32 to vector<16x40xf32>
    %284 = arith.minimumf %280, %283 : vector<16x40xf32>
    %285 = math.exp %284 : vector<16x40xf32>
    %cst_123 = arith.constant 1.000000e+00 : f32
    %286 = vector.broadcast %cst_123 : f32 to vector<16x40xf32>
    %287 = arith.subf %285, %286 : vector<16x40xf32>
    %288 = arith.select %282, %280, %287 : vector<16x40xi1>, vector<16x40xf32>
    %289 = arith.truncf %288 : vector<16x40xf32> to vector<16x40xbf16>
    %c1792 = arith.constant 1792 : index
    %c0_124 = arith.constant 0 : index
    %290 = vector.load %arg1[%c1792, %c0_124] : memref<1968x128xbf16, #tpu.memory_space<vmem>>, vector<40x128xbf16>
    %cst_125 = arith.constant dense<0.000000e+00> : vector<16x128xf32>
    %291 = tpu.matmul %289, %290, %cst_125 {dimension_numbers = #tpu.dot_dimension_numbers<[1], [0], [0], [1], [0, 0, 1, 1], [], []>} : vector<16x40xbf16>, vector<40x128xbf16>, vector<16x128xf32> -> vector<16x128xf32>
    %c0_126 = arith.constant 0 : index
    %c0_127 = arith.constant 0 : index
    %292 = vector.load %arg2[%c0_126, %c0_127] : memref<16x128xf32, #tpu.memory_space<vmem>>, vector<16x128xf32>
    tpu.vector_store %arg2[%c0_126, %c0_127], %291 {strides = array<i32>} : memref<16x128xf32, #tpu.memory_space<vmem>>, vector<16x128xf32>,
    return
  }
}

</mosaic_0001>

<bundles_post_ra>
// kernel: forward.1
= control target key start
LH: loop header
LB: loop body
LE: loop exit
PB: predicated region body
PF: predicated region fallthrough
CT: control target
= control target key end

     0   :  { %7 = vsyncpa [#allocation3], 0  ;;  %s6087_s12 = smov [#allocation2]   ;;  %s6088_s14 = smov 64   ;;  %s6836_s0 = inlined_call_operand.vmem [shape: bf16[16,48], index: 0, kind: input, shape index: {}]   ;;  %s6837_s1 = inlined_call_operand.hbm [shape: bf16[1968,128], index: 1, kind: input, shape index: {}]   ;;  %s6838_s2 = inlined_call_operand.vmem [shape: f32[16,128], index: 2, kind: output, shape index: {}]  }
   0x1   :  { %s14_s11 = sshll.u32 %s6837_s1, 4  ;;  %s16_s13 = sshll.u32 %s6087_s12, 4  ;;  %s15_s11 = int_to_ptr.hbm [resolvable:$true] %s14_s11  ;;  %s17_s13 = int_to_ptr.vmem [resolvable:$true] %s16_s13 }
   0x2   :  { %s6089_s15 = smov 4  }
   0x3   :  { %22 = dma.hbm_to_vmem [thread:$0]  %s15_s11, 15744, %s17_s13, [#allocation3], %s6088_s14, %s6088_s14, %s6089_s15  }
   0x4   :  { %6085 = dma.done.wait [#allocation3], 15744  }
   0x5   :  { %6086 = vsyncadd [#allocation3], 4294951552  ;;  %v4964_v0 = vld [vmem:[#allocation2 + $0x10] sm:$0xff]  ;;  %v4963_v1 = vld [vmem:[#allocation2 + $0x8] sm:$0xff]  ;;  %vm59_vm0 = vcmask 392192   ;;  %v6090_v5 = vmov 0  }
   0x6   :  { %68 = vmatpush.bf16.msra.mxu2 %v4964_v0  ;;  %v4962_v2 = vld [vmem:[#allocation2] sm:$0xff]  ;;  %5186 = vset.pattern.permute.xlu1 %v6090_v5  ;;  %v5137_v9 = vld [vmem:[#allocation2 + $0x3b8] sm:$0xff]   ;;  %v5140_v13 = vld [vmem:[#allocation2 + $0x3d0] sm:$0xff]   ;;  %vm246_vm1 = vcmask 130048  }
   0x7   :  { %v4961_v3 = vld [vmem:[%s6836_s0] sm:$0xff]  ;;  %5175 = vset.pattern.permute.xlu0 %v6090_v5  ;;  %5197 = vset.pattern.permute.xlu2 %v6090_v5  ;;  %v5091_v10 = vunpack.c.l.bf16 %v5137_v9  ;;  %v5092_v11 = vunpack.c.h.bf16 %v5137_v9  ;;  %v5133_v14 = vld [vmem:[#allocation2 + $0x398] sm:$0xff]   ;;  %v5103_v15 = vunpack.c.l.bf16 %v5140_v13  ;;  %v5104_v16 = vunpack.c.h.bf16 %v5140_v13  ;;  %v5139_v21 = vld [vmem:[#allocation2 + $0x3c8] sm:$0xff]  }
   0x8   :  { %v5138_v4 = vld [vmem:[#allocation2 + $0x3c0] sm:$0xff]   ;;  %v5075_v17 = vunpack.c.l.bf16 %v5133_v14  ;;  %v5076_v18 = vunpack.c.h.bf16 %v5133_v14  ;;  %v5099_v22 = vunpack.c.l.bf16 %v5139_v21  ;;  %v5100_v23 = vunpack.c.h.bf16 %v5139_v21  ;;  %v4965_v32 = vld [vmem:[#allocation2 + $0x18] sm:$0xff]  ;;  %v5136_v34 = vld [vmem:[#allocation2 + $0x3b0] sm:$0xff]  }
   0x9   :  { %v5095_v6 = vunpack.c.l.bf16 %v5138_v4  ;;  %v5096_v7 = vunpack.c.h.bf16 %v5138_v4  ;;  %v6133_v12 = vpack.i.bf16 %v5092_v11, %v5091_v10  ;;  %v6136_v19 = vpack.i.bf16 %v5104_v16, %v5103_v15  ;;  %v5134_v25 = vld [vmem:[#allocation2 + $0x3a0] sm:$0xff]   ;;  %v4967_v38 = vld [vmem:[#allocation2 + $0x28] sm:$0xff]  ;;  %v4968_v43 = vld [vmem:[#allocation2 + $0x30] sm:$0xff] }
   0xa   :  { %69 = vmatpush.bf16.msra.mxu2 %v4963_v1  ;;  %v6139_v20 = vpack.i.bf16 %v5076_v18, %v5075_v17  ;;  %v6142_v24 = vpack.i.bf16 %v5100_v23, %v5099_v22  ;;  %v5079_v26 = vunpack.c.l.bf16 %v5134_v25  ;;  %v5080_v27 = vunpack.c.h.bf16 %v5134_v25  ;;  %v4966_v33 = vld [vmem:[#allocation2 + $0x20] sm:$0xff]  ;;  %v5135_v39 = vld [vmem:[#allocation2 + $0x3a8] sm:$0xff]   ;;  %v4969_v44 = vld [vmem:[#allocation2 + $0x38] sm:$0xff] }
   0xb   :  { %v6130_v8 = vpack.i.bf16 %v5096_v7, %v5095_v6  ;;  %5177 = vperm.xlu0 %5175, %v6136_v19   ;;  %v5087_v35 = vunpack.c.l.bf16 %v5136_v34  ;;  %v5088_v36 = vunpack.c.h.bf16 %v5136_v34  ;;  %v5083_v40 = vunpack.c.l.bf16 %v5135_v39  ;;  %v4970_v45 = vld [vmem:[#allocation2 + $0x40] sm:$0xff]  ;;  %v4971_v46 = vld [vmem:[#allocation2 + $0x48] sm:$0xff]  ;;  %v4972_v47 = vld [vmem:[#allocation2 + $0x50] sm:$0xff] }
   0xc   :  { %v6145_v29 = vpack.i.bf16 %v5080_v27, %v5079_v26  ;;  %v5084_v41 = vunpack.c.h.bf16 %v5135_v39 }
   0xd   :  { %5188 = vperm.xlu1 %5186, %v6130_v8   ;;  %v6150_v37 = vpack.i.bf16 %v5088_v36, %v5087_v35 }
   0xe   :  { %70 = vmatpush.bf16.msra.mxu2 %v4962_v2  ;;  %v6153_v42 = vpack.i.bf16 %v5084_v41, %v5083_v40 }
   0xf   :  { %5199 = vperm.xlu2 %5197, %v6150_v37  }
  0x11   :  { %4242 = vmatmul.msk.bf16.vlgmr.msra.gmra.mxu2 %vm59_vm0, %v4961_v3 }
  0x13   :  { %5182 = vperm.xlu0 %5175, %v6142_v24  }
  0x15   :  { %5193 = vperm.xlu1 %5186, %v6133_v12  }
  0x17   :  { %5204 = vperm.xlu2 %5197, %v6153_v42  }
  0x1b   :  { %5209 = vperm.xlu0 %5175, %v6145_v29  }
  0x1d   :  { %5214 = vperm.xlu1 %5186, %v6139_v20  }
  0x69   :  { %v5200_v6 = vpop.permute.xlu2 %5199 }
  0x6a   :  { %v5202_v26 = vunpack.i.h.bf16 %v5200_v6 }
  0x71   :  { %v5205_v35 = vpop.permute.xlu2 %5204 }
  0x72   :  { %v5207_v40 = vunpack.i.h.bf16 %v5205_v35 }
  0x7d   :  { %v5178_v61 = vpop.permute.xlu0 %5177 }
  0x7e   :  { %v5179_v1 = vunpack.i.l.bf16 %v5178_v61  ;;  %v5180_v22 = vunpack.i.h.bf16 %v5178_v61 }
  0x7f   :  { %v5189_v63 = vpop.permute.xlu1 %5188 }
  0x80   :  { %v5191_v5 = vunpack.i.h.bf16 %v5189_v63  ;;  %v5190_v11 = vunpack.i.l.bf16 %v5189_v63 }
  0x85   :  { %v5183_v0 = vpop.permute.xlu0 %5182 }
  0x86   :  { %v5185_v2 = vunpack.i.h.bf16 %v5183_v0  ;;  %v5184_v3 = vunpack.i.l.bf16 %v5183_v0 }
  0x87   :  { %v5194_v14 = vpop.permute.xlu1 %5193 }
  0x88   :  { %v5196_v15 = vunpack.i.h.bf16 %v5194_v14  ;;  %v5195_v21 = vunpack.i.l.bf16 %v5194_v14 }
  0x94   :  { %v72_v28 = vpop.f32.mrf.mxu2 }
  0x9c   :  { %v74_v30 = vpop.f32.mrf.mxu2 }
  0x9d   :  { %v77_v31 = vpack.c.bf16 %v74_v30, %v72_v28 }
  0x9f   :  { %278 = vmatpush.bf16.msra.mxu1 %v77_v31 }
  0xa2   :  { %4275 = vmatmul.msk.bf16.vlgmr.msra.gmra.mxu1 %vm246_vm1, %v4965_v32 }
  0xb2   :  { %4276 = vmatmul.msk.bf16.gmra.mxu1 %vm246_vm1, %v4966_v33  ;;  %v5201_v33 = vunpack.i.l.bf16 %v5200_v6 }
  0xc2   :  { %4277 = vmatmul.msk.bf16.gmra.mxu1 %vm246_vm1, %v4967_v38 }
  0xd2   :  { %4278 = vmatmul.msk.bf16.gmra.mxu1 %vm246_vm1, %v4968_v43 }
  0xe2   :  { %4279 = vmatmul.msk.bf16.gmra.mxu1 %vm246_vm1, %v4969_v44 }
  0xf2   :  { %4280 = vmatmul.msk.bf16.gmra.mxu1 %vm246_vm1, %v4970_v45 }
 0x102   :  { %4281 = vmatmul.msk.bf16.gmra.mxu1 %vm246_vm1, %v4971_v46  ;;  %v5206_v46 = vunpack.i.l.bf16 %v5205_v35 }
 0x112   :  { %4282 = vmatmul.msk.bf16.gmra.mxu1 %vm246_vm1, %v4972_v47  ;;  %v5215_v47 = vpop.permute.xlu1 %5214 }
 0x113   :  { %v5216_v6 = vunpack.i.l.bf16 %v5215_v47 }
 0x11f   :  { %v6162_v48 = vpop.f32.mrf.mxu1 }
 0x127   :  { %v6164_v49 = vpop.f32.mrf.mxu1 }
 0x12f   :  { %v6166_v50 = vpop.f32.mrf.mxu1 }
 0x137   :  { %v6168_v51 = vpop.f32.mrf.mxu1 }
 0x13f   :  { %v6170_v52 = vpop.f32.mrf.mxu1 }
 0x147   :  { %v292_v53 = vpop.f32.mrf.mxu1 }
 0x14f   :  { %v295_v54 = vpop.f32.mrf.mxu1 }
 0x157   :  { %v297_v55 = vpop.f32.mrf.mxu1 }
 0x158   :  { %v6191_v41 = vadd.f32 %v5202_v26, %v297_v55  ;;  %v6197_v55 = vadd.f32 %v5207_v40, %v292_v53 }
 0x15a   :  { %v343_v63 = vmin.f32 %v6191_v41, 0.0  ;;  %vm327_vm10 = vcmp.gt.f32.partialorder %v6191_v41, 0.0  ;;  %vm325_vm12 = vcmp.gt.f32.partialorder %v6197_v55, 0.0 }
 0x15f   :  { %v300_v56 = vpop.f32.mrf.mxu1 }
 0x160   :  { %v6188_v36 = vadd.f32 %v5195_v21, %v300_v56 }
 0x162   :  { %v344_v56 = vmin.f32 %v6188_v36, 0.0  ;;  %vm328_vm9 = vcmp.gt.f32.partialorder %v6188_v36, 0.0 }
 0x167   :  { %v302_v57 = vpop.f32.mrf.mxu1 }
 0x168   :  { %v6185_v28 = vadd.f32 %v5196_v15, %v302_v57  ;;  %v5210_v57 = vpop.permute.xlu0 %5209  ;;  %v341_v15 = vmin.f32 %v6197_v55, 0.0 }
 0x169   :  { %v5212_v61 = vunpack.i.h.bf16 %v5210_v57 }
 0x16a   :  { %v345_v43 = vmin.f32 %v6185_v28, 0.0  ;;  %vm329_vm8 = vcmp.gt.f32.partialorder %v6185_v28, 0.0 }
 0x16c   :  { %v370_v0 = vmul.f32 1.442695, %v345_v43 }
 0x16f   :  { %v305_v58 = vpop.f32.mrf.mxu1 }
 0x170   :  { %v6183_v23 = vadd.f32 %v5190_v11, %v305_v58  ;;  %v6194_v58 = vadd.f32 %v5201_v33, %v295_v54  ;;  %v6205_v11 = vadd.f32 %v5212_v61, %v6168_v51  ;;  %v362_v33 = vmul.f32 1.442695, %v341_v15 }
 0x172   :  { %v346_v38 = vmin.f32 %v6183_v23, 0.0  ;;  %v342_v54 = vmin.f32 %v6194_v58, 0.0  ;;  %vm330_vm7 = vcmp.gt.f32.partialorder %v6183_v23, 0.0  ;;  %vm326_vm11 = vcmp.gt.f32.partialorder %v6194_v58, 0.0 }
 0x173   :  { %vm323_vm14 = vcmp.gt.f32.partialorder %v6205_v11, 0.0 }
 0x174   :  { %v364_v26 = vmul.f32 1.442695, %v342_v54 }
 0x177   :  { %v307_v59 = vpop.f32.mrf.mxu1 }
 0x178   :  { %v6179_v16 = vadd.f32 %v5191_v5, %v307_v59  ;;  %v372_v59 = vmul.f32 1.442695, %v346_v38 }
 0x17a   :  { %v347_v30 = vmin.f32 %v6179_v16, 0.0  ;;  %vm331_vm6 = vcmp.gt.f32.partialorder %v6179_v16, 0.0 }
 0x17c   :  { %v374_v44 = vmul.f32 1.442695, %v347_v30 }
 0x17f   :  { %v310_v60 = vpop.f32.mrf.mxu1 }
 0x180   :  { %v6176_v10 = vadd.f32 %v5184_v3, %v310_v60  ;;  %v5217_v60 = vunpack.i.h.bf16 %v5215_v47 }
 0x182   :  { %v348_v18 = vmin.f32 %v6176_v10, 0.0  ;;  %v6208_v14 = vadd.f32 %v5217_v60, %v6164_v49  ;;  %v339_v49 = vmin.f32 %v6205_v11, 0.0  ;;  %vm332_vm5 = vcmp.gt.f32.partialorder %v6176_v10, 0.0 }
 0x184   :  { %v376_v34 = vmul.f32 1.442695, %v348_v18 }
 0x187   :  { %v312_v62 = vpop.f32.mrf.mxu1 }
 0x188   :  { %v6172_v7 = vadd.f32 %v5185_v2, %v312_v62  ;;  %v6201_v2 = vadd.f32 %v5206_v46, %v6170_v52  ;;  %v358_v46 = vmul.f32 1.442695, %v339_v49 }
 0x18a   :  { %v349_v17 = vmin.f32 %v6172_v7, 0.0  ;;  %v340_v18 = vmin.f32 %v6201_v2, 0.0  ;;  %vm333_vm4 = vcmp.gt.f32.partialorder %v6172_v7, 0.0  ;;  %vm324_vm13 = vcmp.gt.f32.partialorder %v6201_v2, 0.0 }
 0x18c   :  { %v378_v31 = vmul.f32 1.442695, %v349_v17  ;;  %v366_v17 = vmul.f32 1.442695, %v343_v63  ;;  %v360_v43 = vmul.f32 1.442695, %v340_v18 }
 0x18f   :  { %v315_v4 = vpop.f32.mrf.mxu1 }
 0x190   :  { %v6174_v9 = vadd.f32 %v5179_v1, %v315_v4  ;;  %v5211_v1 = vunpack.i.l.bf16 %v5210_v57  ;;  %v368_v4 = vmul.f32 1.442695, %v344_v56 }
 0x192   :  { %v350_v13 = vmin.f32 %v6174_v9, 0.0  ;;  %v6212_v52 = vadd.f32 %v5211_v1, %v6166_v50  ;;  %vm334_vm2 = vcmp.gt.f32.partialorder %v6174_v9, 0.0 }
 0x194   :  { %v380_v25 = vmul.f32 1.442695, %v350_v13  ;;  %v338_v40 = vmin.f32 %v6212_v52, 0.0  ;;  %vm322_vm15 = vcmp.gt.f32.partialorder %v6212_v52, 0.0 }
 0x196   :  { %5693 = vpow2.f32 %v380_v25 }
 0x197   :  { %v317_v27 = vpop.f32.mrf.mxu1  ;;  %5695 = vpow2.f32 %v378_v31 }
 0x198   :  { %v318_v32 = vadd.f32 %v5180_v22, %v317_v27  ;;  %5697 = vpow2.f32 %v376_v34  ;;  %v6220_v34 = vadd.f32 %v5216_v6, %v6162_v48 }
 0x19a   :  { %v351_v39 = vmin.f32 %v318_v32, 0.0  ;;  %vm335_vm3 = vcmp.gt.f32.partialorder %v318_v32, 0.0  ;;  %v336_v56 = vmin.f32 %v6220_v34, 0.0 }
 0x19c   :  { %v382_v45 = vmul.f32 1.442695, %v351_v39  ;;  %v5694_v62 = vpop.eup %5693 }
 0x19d   :  { %v5696_v3 = vpop.eup %5695  ;;  %v4297_v53 = vadd.f32 -1.0, %v5694_v62 }
 0x19e   :  { %5699 = vpow2.f32 %v382_v45  ;;  %v5698_v5 = vpop.eup %5697  ;;  %v4296_v22 = vadd.f32 -1.0, %v5696_v3  ;;  %v352_v3 = vmul.f32 1.442695, %v336_v56 }
 0x19f   :  { %5701 = vpow2.f32 %v374_v44  ;;  %v414_v51 = vsel %vm334_vm2, %v6174_v9, %v4297_v53  ;;  %v4295_v30 = vadd.f32 -1.0, %v5698_v5  ;;  %v337_v9 = vmin.f32 %v6208_v14, 0.0 }
 0x1a0   :  { %5703 = vpow2.f32 %v372_v59  ;;  %v413_v35 = vsel %vm333_vm4, %v6172_v7, %v4296_v22  ;;  %v356_v59 = vmul.f32 1.442695, %v338_v40  ;;  %vm321_vm2 = vcmp.gt.f32.partialorder %v6208_v14, 0.0  ;;  %v4977_v40 = vld [vmem:[#allocation2 + $0x78] sm:$0xff] }
 0x1a1   :  { %5705 = vpow2.f32 %v370_v0  ;;  %v354_v62 = vmul.f32 1.442695, %v337_v9 }
 0x1a2   :  { %5707 = vpow2.f32 %v368_v4 }
 0x1a3   :  { %5709 = vpow2.f32 %v366_v17 }
 0x1a4   :  { %v5700_v13 = vpop.eup %5699  ;;  %5711 = vpow2.f32 %v364_v26 }
 0x1a5   :  { %v4298_v21 = vadd.f32 -1.0, %v5700_v13  ;;  %v5702_v25 = vpop.eup %5701  ;;  %5713 = vpow2.f32 %v362_v33 }
 0x1a6   :  { %v5704_v31 = vpop.eup %5703  ;;  %v4294_v38 = vadd.f32 -1.0, %v5702_v25  ;;  %5715 = vpow2.f32 %v360_v43 }
 0x1a7   :  { %v415_v27 = vsel %vm335_vm3, %v318_v32, %v4298_v21  ;;  %v5706_v39 = vpop.eup %5705  ;;  %v412_v32 = vsel %vm332_vm5, %v6176_v10, %v4295_v30  ;;  %v4293_v44 = vadd.f32 -1.0, %v5704_v31  ;;  %5717 = vpow2.f32 %v358_v46 }
 0x1a8   :  { %v423_v50 = vpack.c.bf16 %v415_v27, %v414_v51  ;;  %v5708_v45 = vpop.eup %5707  ;;  %v422_v48 = vpack.c.bf16 %v413_v35, %v412_v32  ;;  %v411_v7 = vsel %vm331_vm6, %v6179_v16, %v4294_v38  ;;  %v4292_v47 = vadd.f32 -1.0, %v5706_v39  ;;  %v4974_v35 = vld [vmem:[#allocation2 + $0x60] sm:$0xff]  ;;  %v4976_v38 = vld [vmem:[#allocation2 + $0x70] sm:$0xff]  ;;  %v4979_v39 = vld [vmem:[#allocation2 + $0x88] sm:$0xff] }
 0x1a9   :  { %v5710_v57 = vpop.eup %5709  ;;  %v410_v10 = vsel %vm330_vm7, %v6183_v23, %v4293_v44  ;;  %v4291_v60 = vadd.f32 -1.0, %v5708_v45  ;;  %5719 = vpow2.f32 %v356_v59  ;;  %vm320_vm3 = vcmp.gt.f32.partialorder %v6220_v34, 0.0  ;;  %634 = vmatpush.bf16.msra.mxu3 %v4979_v39 }
 0x1aa   :  { %512 = vmatpush.bf16.msrb.mxu2 %v423_v50  ;;  %v5712_v61 = vpop.eup %5711  ;;  %v421_v63 = vpack.c.bf16 %v411_v7, %v410_v10  ;;  %v409_v16 = vsel %vm329_vm8, %v6185_v28, %v4292_v47  ;;  %v4290_v0 = vadd.f32 -1.0, %v5710_v57  ;;  %5721 = vpow2.f32 %v354_v62  ;;  %v4973_v50 = vld [vmem:[#allocation2 + $0x58] sm:$0xff] }
 0x1ab   :  { %v5714_v1 = vpop.eup %5713  ;;  %v408_v54 = vsel %vm328_vm9, %v6188_v36, %v4291_v60  ;;  %v4289_v4 = vadd.f32 -1.0, %v5712_v61  ;;  %5723 = vpow2.f32 %v352_v3 }
 0x1ac   :  { %v5716_v23 = vpop.eup %5715  ;;  %v420_v5 = vpack.c.bf16 %v409_v16, %v408_v54  ;;  %v407_v6 = vsel %vm327_vm10, %v6191_v41, %v4290_v0  ;;  %v4288_v53 = vadd.f32 -1.0, %v5714_v1  ;;  %v6091_v41 = vmov 1  }
 0x1ad   :  { %v5718_v13 = vpop.eup %5717  ;;  %v406_v28 = vsel %vm326_vm11, %v6194_v58, %v4289_v4  ;;  %v4287_v15 = vadd.f32 -1.0, %v5716_v23  ;;  %5224 = vset.pattern.permute.xlu0 %v6091_v41  ;;  %5218 = vset.pattern.permute.xlu2 %v6091_v41 }
 0x1ae   :  { %513 = vmatpush.bf16.msrb.mxu2 %v422_v48  ;;  %v419_v18 = vpack.c.bf16 %v407_v6, %v406_v28  ;;  %v405_v36 = vsel %vm325_vm12, %v6197_v55, %v4288_v53  ;;  %v4286_v21 = vadd.f32 -1.0, %v5718_v13  ;;  %5226 = vperm.xlu0 %5224, %v6145_v29  }
 0x1af   :  { %v5720_v17 = vpop.eup %5719  ;;  %v404_v25 = vsel %vm324_vm13, %v6201_v2, %v4287_v15  ;;  %5220 = vperm.xlu2 %5218, %v6139_v20   ;;  %5230 = vset.pattern.permute.xlu1 %v6091_v41 }
 0x1b0   :  { %v5722_v22 = vpop.eup %5721  ;;  %v4285_v26 = vadd.f32 -1.0, %v5720_v17  ;;  %v418_v49 = vpack.c.bf16 %v405_v36, %v404_v25  ;;  %v403_v55 = vsel %vm323_vm14, %v6205_v11, %v4286_v21  ;;  %5232 = vperm.xlu1 %5230, %v6153_v42  }
 0x1b1   :  { %v5724_v58 = vpop.eup %5723  ;;  %v4284_v51 = vadd.f32 -1.0, %v5722_v22 }
 0x1b2   :  { %514 = vmatpush.bf16.msrb.mxu2 %v421_v63  ;;  %v402_v2 = vsel %vm322_vm15, %v6212_v52, %v4285_v26  ;;  %v4283_v27 = vadd.f32 -1.0, %v5724_v58  ;;  %v4975_v52 = vld [vmem:[#allocation2 + $0x68] sm:$0xff] }
 0x1b3   :  { %v417_v30 = vpack.c.bf16 %v403_v55, %v402_v2  ;;  %v401_v31 = vsel %vm321_vm2, %v6208_v14, %v4284_v51  ;;  %v4978_v14 = vld [vmem:[#allocation2 + $0x80] sm:$0xff] }
 0x1b4   :  { %v400_v33 = vsel %vm320_vm3, %v6220_v34, %v4283_v27  ;;  %635 = vmatpush.bf16.msra.mxu3 %v4978_v14 }
 0x1b5   :  { %v416_v11 = vpack.c.bf16 %v401_v31, %v400_v33 }
 0x1b6   :  { %515 = vmatpush.bf16.msrb.mxu2 %v420_v5 }
 0x1b7   :  { %5237 = vperm.xlu2 %5218, %v6150_v37  }
 0x1b8   :  { %636 = vmatpush.bf16.msra.mxu3 %v4977_v40 }
 0x1ba   :  { %516 = vmatpush.bf16.msrb.mxu2 %v419_v18 }
 0x1be   :  { %517 = vmatpush.bf16.msrb.mxu2 %v418_v49 }
 0x1c2   :  { %518 = vmatpush.bf16.msrb.mxu2 %v417_v30 }
 0x1c6   :  { %519 = vmatpush.bf16.msrb.mxu2 %v416_v11 }
 0x1c9   :  { %520 = vmatmul.bf16.vlgmr.msrb.gmra.mxu2 %v4973_v50 }
 0x1d9   :  { %525 = vmatmul.bf16.gmra.mxu2 %v4974_v35 }
 0x1e9   :  { %530 = vmatmul.bf16.gmra.mxu2 %v4975_v52 }
 0x1f9   :  { %535 = vmatmul.bf16.gmra.mxu2 %v4976_v38 }
 0x209   :  { %v5221_v43 = vpop.permute.xlu2 %5220 }
 0x20a   :  { %v5222_v34 = vunpack.i.l.bf16 %v5221_v43  ;;  %v5223_v45 = vunpack.i.h.bf16 %v5221_v43 }
 0x211   :  { %v5238_v31 = vpop.permute.xlu2 %5237 }
 0x212   :  { %v5239_v11 = vunpack.i.l.bf16 %v5238_v31  ;;  %v5240_v43 = vunpack.i.h.bf16 %v5238_v31 }
 0x220   :  { %v5227_v47 = vpop.permute.xlu0 %5226 }
 0x221   :  { %v5228_v59 = vunpack.i.l.bf16 %v5227_v47  ;;  %v5229_v0 = vunpack.i.h.bf16 %v5227_v47 }
 0x222   :  { %v5233_v53 = vpop.permute.xlu1 %5232 }
 0x223   :  { %v5234_v15 = vunpack.i.l.bf16 %v5233_v53  ;;  %v5235_v25 = vunpack.i.h.bf16 %v5233_v53 }
 0x24c   :  { %v521_v9 = vpop.f32.mrf.mxu2 }
 0x24d   :  { %v522_v32 = vadd.f32 %v5222_v34, %v521_v9 }
 0x24f   :  { %v549_v44 = vmin.f32 %v522_v32, 0.0  ;;  %vm541_vm4 = vcmp.gt.f32.partialorder %v522_v32, 0.0 }
 0x251   :  { %v557_v46 = vmul.f32 1.442695, %v549_v44 }
 0x253   :  { %5725 = vpow2.f32 %v557_v46 }
 0x254   :  { %v523_v48 = vpop.f32.mrf.mxu2 }
 0x255   :  { %v524_v7 = vadd.f32 %v5223_v45, %v523_v48 }
 0x257   :  { %v550_v57 = vmin.f32 %v524_v7, 0.0  ;;  %vm542_vm5 = vcmp.gt.f32.partialorder %v524_v7, 0.0 }
 0x259   :  { %v559_v56 = vmul.f32 1.442695, %v550_v57  ;;  %v5726_v60 = vpop.eup %5725 }
 0x25a   :  { %v4315_v63 = vadd.f32 -1.0, %v5726_v60 }
 0x25b   :  { %5727 = vpow2.f32 %v559_v56 }
 0x25c   :  { %v526_v10 = vpop.f32.mrf.mxu2  ;;  %v581_v4 = vsel %vm541_vm4, %v522_v32, %v4315_v63 }
 0x25d   :  { %v527_v61 = vadd.f32 %v5228_v59, %v526_v10 }
 0x25f   :  { %v551_v62 = vmin.f32 %v527_v61, 0.0  ;;  %vm543_vm6 = vcmp.gt.f32.partialorder %v527_v61, 0.0 }
 0x261   :  { %v5728_v16 = vpop.eup %5727  ;;  %v561_v3 = vmul.f32 1.442695, %v551_v62 }
 0x262   :  { %v4316_v1 = vadd.f32 -1.0, %v5728_v16 }
 0x263   :  { %5729 = vpow2.f32 %v561_v3 }
 0x264   :  { %v528_v54 = vpop.f32.mrf.mxu2  ;;  %v582_v23 = vsel %vm542_vm5, %v524_v7, %v4316_v1 }
 0x265   :  { %v529_v5 = vadd.f32 %v5229_v0, %v528_v54  ;;  %v589_v6 = vpack.c.bf16 %v582_v23, %v581_v4  ;;  %v6092_v54 = vmov 2  }
 0x266   :  { %5253 = vset.pattern.permute.xlu0 %v6092_v54  ;;  %5241 = vset.pattern.permute.xlu1 %v6092_v54 }
 0x267   :  { %v552_v13 = vmin.f32 %v529_v5, 0.0  ;;  %4335 = vmatmul.msk.bf16.vlgmr.msra.gmra.mxu3 %vm59_vm0, %v589_v6  ;;  %vm544_vm7 = vcmp.gt.f32.partialorder %v529_v5, 0.0  ;;  %5247 = vset.pattern.permute.xlu2 %v6092_v54 }
 0x268   :  { %5255 = vperm.xlu0 %5253, %v6130_v8   ;;  %5243 = vperm.xlu1 %5241, %v6136_v19  }
 0x269   :  { %v563_v28 = vmul.f32 1.442695, %v552_v13  ;;  %v5730_v18 = vpop.eup %5729  ;;  %5249 = vperm.xlu2 %5247, %v6142_v24  }
 0x26a   :  { %v4317_v22 = vadd.f32 -1.0, %v5730_v18  ;;  %v4987_v18 = vld [vmem:[#allocation2 + $0xc8] sm:$0xff] }
 0x26b   :  { %5731 = vpow2.f32 %v563_v28  ;;  %v4980_v28 = vld [vmem:[#allocation2 + $0x90] sm:$0xff] }
 0x26c   :  { %v531_v17 = vpop.f32.mrf.mxu2  ;;  %v583_v55 = vsel %vm543_vm6, %v527_v61, %v4317_v22  ;;  %v4984_v22 = vld [vmem:[#allocation2 + $0xb0] sm:$0xff] }
 0x26d   :  { %v532_v36 = vadd.f32 %v5234_v15, %v531_v17  ;;  %v4986_v15 = vld [vmem:[#allocation2 + $0xc0] sm:$0xff]  ;;  %v4981_v17 = vld [vmem:[#allocation2 + $0x98] sm:$0xff] }
 0x26f   :  { %v553_v21 = vmin.f32 %v532_v36, 0.0  ;;  %vm545_vm8 = vcmp.gt.f32.partialorder %v532_v36, 0.0 }
 0x270   :  { %5280 = vperm.xlu0 %5253, %v6139_v20   ;;  %5260 = vperm.xlu1 %5241, %v6133_v12  }
 0x271   :  { %v5732_v41 = vpop.eup %5731  ;;  %v565_v58 = vmul.f32 1.442695, %v553_v21  ;;  %5265 = vperm.xlu2 %5247, %v6150_v37   ;;  %v4983_v21 = vld [vmem:[#allocation2 + $0xa8] sm:$0xff] }
 0x272   :  { %v4318_v26 = vadd.f32 -1.0, %v5732_v41  ;;  %v4985_v41 = vld [vmem:[#allocation2 + $0xb8] sm:$0xff] }
 0x273   :  { %5733 = vpow2.f32 %v565_v58 }
 0x274   :  { %v533_v49 = vpop.f32.mrf.mxu2  ;;  %v584_v51 = vsel %vm544_vm7, %v529_v5, %v4318_v26 }
 0x275   :  { %v534_v2 = vadd.f32 %v5235_v25, %v533_v49  ;;  %v590_v27 = vpack.c.bf16 %v584_v51, %v583_v55 }
 0x277   :  { %v554_v30 = vmin.f32 %v534_v2, 0.0  ;;  %4336 = vmatmul.msk.bf16.gmra.mxu3 %vm59_vm0, %v590_v27  ;;  %vm546_vm9 = vcmp.gt.f32.partialorder %v534_v2, 0.0 }
 0x278   :  { %5270 = vperm.xlu1 %5241, %v6153_v42  }
 0x279   :  { %v567_v33 = vmul.f32 1.442695, %v554_v30  ;;  %v5734_v35 = vpop.eup %5733  ;;  %5275 = vperm.xlu2 %5247, %v6145_v29  }
 0x27a   :  { %v4319_v39 = vadd.f32 -1.0, %v5734_v35 }
 0x27b   :  { %5735 = vpow2.f32 %v567_v33 }
 0x27c   :  { %v536_v50 = vpop.f32.mrf.mxu2  ;;  %v585_v32 = vsel %vm545_vm8, %v532_v36, %v4319_v39  ;;  %v4982_v36 = vld [vmem:[#allocation2 + $0xa0] sm:$0xff] }
 0x27d   :  { %v537_v52 = vadd.f32 %v5239_v11, %v536_v50 }
 0x27f   :  { %v555_v38 = vmin.f32 %v537_v52, 0.0  ;;  %vm547_vm10 = vcmp.gt.f32.partialorder %v537_v52, 0.0 }
 0x281   :  { %v5736_v14 = vpop.eup %5735  ;;  %v569_v34 = vmul.f32 1.442695, %v555_v38 }
 0x282   :  { %v4320_v40 = vadd.f32 -1.0, %v5736_v14 }
 0x283   :  { %5737 = vpow2.f32 %v569_v34 }
 0x284   :  { %v538_v9 = vpop.f32.mrf.mxu2  ;;  %v586_v44 = vsel %vm546_vm9, %v534_v2, %v4320_v40 }
 0x285   :  { %v539_v45 = vadd.f32 %v5240_v43, %v538_v9  ;;  %v591_v46 = vpack.c.bf16 %v586_v44, %v585_v32 }
 0x287   :  { %v556_v48 = vmin.f32 %v539_v45, 0.0  ;;  %4337 = vmatmul.msk.bf16.gmra.mxu3 %vm59_vm0, %v591_v46  ;;  %vm548_vm11 = vcmp.gt.f32.partialorder %v539_v45, 0.0 }
 0x289   :  { %v571_v7 = vmul.f32 1.442695, %v556_v48  ;;  %v5738_v47 = vpop.eup %5737 }
 0x28a   :  { %v4321_v57 = vadd.f32 -1.0, %v5738_v47 }
 0x28b   :  { %5739 = vpow2.f32 %v571_v7 }
 0x28c   :  { %v587_v10 = vsel %vm547_vm10, %v537_v52, %v4321_v57 }
 0x291   :  { %v5740_v56 = vpop.eup %5739 }
 0x292   :  { %v4322_v59 = vadd.f32 -1.0, %v5740_v56 }
 0x294   :  { %v588_v60 = vsel %vm548_vm11, %v539_v45, %v4322_v59 }
 0x295   :  { %v592_v61 = vpack.c.bf16 %v588_v60, %v587_v10 }
 0x297   :  { %4338 = vmatmul.msk.bf16.gmra.mxu3 %vm59_vm0, %v592_v61  ;;  %vm782_vm0 = vcmask 523264  }
 0x2c3   :  { %v5250_v55 = vpop.permute.xlu2 %5249 }
 0x2c4   :  { %v5251_v51 = vunpack.i.l.bf16 %v5250_v55  ;;  %v5252_v27 = vunpack.i.h.bf16 %v5250_v55 }
 0x2da   :  { %v5244_v30 = vpop.permute.xlu1 %5243 }
 0x2db   :  { %v5245_v31 = vunpack.i.l.bf16 %v5244_v30  ;;  %v5246_v40 = vunpack.i.h.bf16 %v5244_v30 }
 0x2ea   :  { %v638_v62 = vpop.f32.mrf.mxu3 }
 0x2f2   :  { %v640_v63 = vpop.f32.mrf.mxu3 }
 0x2f3   :  { %v658_v13 = vpack.c.bf16 %v640_v63, %v638_v62 }
 0x2fa   :  { %v643_v16 = vpop.f32.mrf.mxu3 }
 0x302   :  { %v645_v0 = vpop.f32.mrf.mxu3 }
 0x303   :  { %v659_v53 = vpack.c.bf16 %v645_v0, %v643_v16 }
 0x30a   :  { %v648_v1 = vpop.f32.mrf.mxu3 }
 0x312   :  { %v650_v3 = vpop.f32.mrf.mxu3 }
 0x313   :  { %v660_v6 = vpack.c.bf16 %v650_v3, %v648_v1 }
 0x31a   :  { %v653_v4 = vpop.f32.mrf.mxu3 }
 0x322   :  { %v655_v23 = vpop.f32.mrf.mxu3 }
 0x323   :  { %v661_v5 = vpack.c.bf16 %v655_v23, %v653_v4 }
 0x325   :  { %811 = vmatpush.bf16.msra.mxu0 %v661_v5  ;;  %5148 = vmatpush.bf16.msrb.mxu3 %v661_v5 }
 0x329   :  { %812 = vmatpush.bf16.msra.mxu0 %v660_v6  ;;  %5149 = vmatpush.bf16.msrb.mxu3 %v660_v6 }
 0x32d   :  { %813 = vmatpush.bf16.msra.mxu0 %v659_v53  ;;  %5150 = vmatpush.bf16.msrb.mxu3 %v659_v53  ;;  %v5261_v53 = vpop.permute.xlu1 %5260 }
 0x331   :  { %814 = vmatpush.bf16.msra.mxu0 %v658_v13  ;;  %5151 = vmatpush.bf16.msrb.mxu3 %v658_v13  ;;  %v5256_v13 = vpop.permute.xlu0 %5255 }
 0x334   :  { %4371 = vmatmul.msk.bf16.vlgmr.msra.gmra.mxu0 %vm782_vm0, %v4980_v28  ;;  %4377 = vmatmul.msk.bf16.vlgmr.msrb.gmra.mxu3 %vm782_vm0, %v4986_v15  ;;  %v5257_v28 = vunpack.i.l.bf16 %v5256_v13  ;;  %v5266_v15 = vpop.permute.xlu2 %5265 }
 0x344   :  { %4372 = vmatmul.msk.bf16.gmra.mxu0 %vm782_vm0, %v4981_v17  ;;  %4378 = vmatmul.msk.bf16.gmra.mxu3 %vm782_vm0, %v4987_v18  ;;  %v5263_v17 = vunpack.i.h.bf16 %v5261_v53  ;;  %v5262_v18 = vunpack.i.l.bf16 %v5261_v53 }
 0x354   :  { %4373 = vmatmul.msk.bf16.gmra.mxu0 %vm782_vm0, %v4982_v36 }
 0x364   :  { %4374 = vmatmul.msk.bf16.gmra.mxu0 %vm782_vm0, %v4983_v21  ;;  %v5268_v21 = vunpack.i.h.bf16 %v5266_v15 }
 0x374   :  { %4375 = vmatmul.msk.bf16.gmra.mxu0 %vm782_vm0, %v4984_v22 }
 0x384   :  { %4376 = vmatmul.msk.bf16.gmra.mxu0 %vm782_vm0, %v4985_v41 }
 0x3b1   :  { %v6276_v25 = vpop.f32.mrf.mxu0 }
 0x3b7   :  { %v846_v26 = vpop.f32.mrf.mxu3 }
 0x3b8   :  { %v847_v33 = vadd.f32 %v5251_v51, %v846_v26  ;;  %v5271_v51 = vpop.permute.xlu1 %5270 }
 0x3b9   :  { %v6278_v58 = vpop.f32.mrf.mxu0  ;;  %v5273_v30 = vunpack.i.h.bf16 %v5271_v51 }
 0x3ba   :  { %v884_v52 = vmin.f32 %v847_v33, 0.0  ;;  %vm868_vm13 = vcmp.gt.f32.partialorder %v847_v33, 0.0 }
 0x3bc   :  { %v912_v34 = vmul.f32 1.442695, %v884_v52 }
 0x3bf   :  { %v848_v49 = vpop.f32.mrf.mxu3 }
 0x3c0   :  { %v849_v11 = vadd.f32 %v5252_v27, %v848_v49  ;;  %v5267_v49 = vunpack.i.l.bf16 %v5266_v15  ;;  %v5258_v27 = vunpack.i.h.bf16 %v5256_v13 }
 0x3c1   :  { %v6280_v2 = vpop.f32.mrf.mxu0 }
 0x3c2   :  { %v885_v39 = vmin.f32 %v849_v11, 0.0  ;;  %vm869_vm14 = vcmp.gt.f32.partialorder %v849_v11, 0.0 }
 0x3c4   :  { %v914_v9 = vmul.f32 1.442695, %v885_v39 }
 0x3c7   :  { %v851_v50 = vpop.f32.mrf.mxu3 }
 0x3c8   :  { %v852_v35 = vadd.f32 %v5245_v31, %v851_v50  ;;  %v5276_v50 = vpop.permute.xlu2 %5275 }
 0x3c9   :  { %v6282_v38 = vpop.f32.mrf.mxu0 }
 0x3ca   :  { %v886_v14 = vmin.f32 %v852_v35, 0.0  ;;  %vm870_vm12 = vcmp.gt.f32.partialorder %v852_v35, 0.0 }
 0x3cc   :  { %v916_v43 = vmul.f32 1.442695, %v886_v14  ;;  %v5278_v14 = vunpack.i.h.bf16 %v5276_v50 }
 0x3ce   :  { %5741 = vpow2.f32 %v916_v43 }
 0x3cf   :  { %v853_v32 = vpop.f32.mrf.mxu3  ;;  %5743 = vpow2.f32 %v912_v34 }
 0x3d0   :  { %v854_v44 = vadd.f32 %v5246_v40, %v853_v32  ;;  %5745 = vpow2.f32 %v914_v9 }
 0x3d1   :  { %v826_v45 = vpop.f32.mrf.mxu0 }
 0x3d2   :  { %v887_v46 = vmin.f32 %v854_v44, 0.0  ;;  %vm871_vm15 = vcmp.gt.f32.partialorder %v854_v44, 0.0 }
 0x3d4   :  { %v918_v48 = vmul.f32 1.442695, %v887_v46  ;;  %v5742_v7 = vpop.eup %5741 }
 0x3d5   :  { %v5744_v47 = vpop.eup %5743  ;;  %v4393_v56 = vadd.f32 -1.0, %v5742_v7 }
 0x3d6   :  { %5747 = vpow2.f32 %v918_v48  ;;  %v5746_v57 = vpop.eup %5745  ;;  %v4391_v10 = vadd.f32 -1.0, %v5744_v47  ;;  %v5281_v48 = vpop.permute.xlu0 %5280 }
 0x3d7   :  { %v4392_v60 = vadd.f32 -1.0, %v5746_v57  ;;  %v950_v62 = vsel %vm870_vm12, %v852_v35, %v4393_v56  ;;  %v5272_v35 = vunpack.i.l.bf16 %v5271_v51  ;;  %v5283_v56 = vunpack.i.h.bf16 %v5281_v48 }
 0x3d8   :  { %v948_v0 = vsel %vm868_vm13, %v847_v33, %v4391_v10  ;;  %v6304_v10 = vadd.f32 %v5278_v14, %v6282_v38 }
 0x3d9   :  { %v828_v59 = vpop.f32.mrf.mxu0  ;;  %v949_v1 = vsel %vm869_vm14, %v849_v11, %v4392_v60  ;;  %v6300_v7 = vadd.f32 %v5272_v35, %v826_v45 }
 0x3da   :  { %v958_v4 = vpack.c.bf16 %v949_v1, %v948_v0  ;;  %v6297_v43 = vadd.f32 %v5273_v30, %v828_v59  ;;  %v6312_v1 = vadd.f32 %v5283_v56, %v6278_v58  ;;  %v875_v38 = vmin.f32 %v6304_v10, 0.0 }
 0x3db   :  { %v876_v45 = vmin.f32 %v6300_v7, 0.0  ;;  %vm860_vm9 = vcmp.gt.f32.partialorder %v6300_v7, 0.0  ;;  %vm859_vm10 = vcmp.gt.f32.partialorder %v6304_v10, 0.0 }
 0x3dc   :  { %v5748_v61 = vpop.eup %5747  ;;  %v877_v59 = vmin.f32 %v6297_v43, 0.0  ;;  %v873_v13 = vmin.f32 %v6312_v1, 0.0  ;;  %vm861_vm8 = vcmp.gt.f32.partialorder %v6297_v43, 0.0  ;;  %vm857_vm12 = vcmp.gt.f32.partialorder %v6312_v1, 0.0 }
 0x3dd   :  { %v4394_v63 = vadd.f32 -1.0, %v5748_v61 }
 0x3df   :  { %v951_v16 = vsel %vm871_vm15, %v854_v44, %v4394_v63  ;;  %v5277_v44 = vunpack.i.l.bf16 %v5276_v50 }
 0x3e0   :  { %v959_v3 = vpack.c.bf16 %v951_v16, %v950_v62  ;;  %v5282_v62 = vunpack.i.l.bf16 %v5281_v48 }
 0x3e1   :  { %v831_v54 = vpop.f32.mrf.mxu0  ;;  %v6308_v63 = vadd.f32 %v5277_v44, %v6280_v2  ;;  %v896_v2 = vmul.f32 1.442695, %v876_v45 }
 0x3e2   :  { %1088 = vmatpush.bf16.msra.mxu3 %v959_v3  ;;  %v6295_v52 = vadd.f32 %v5267_v49, %v831_v54  ;;  %v898_v3 = vmul.f32 1.442695, %v877_v59  ;;  %v6316_v54 = vadd.f32 %v5282_v62, %v6276_v25 }
 0x3e3   :  { %vm858_vm11 = vcmp.gt.f32.partialorder %v6308_v63, 0.0 }
 0x3e4   :  { %v878_v47 = vmin.f32 %v6295_v52, 0.0  ;;  %v872_v25 = vmin.f32 %v6316_v54, 0.0  ;;  %vm862_vm7 = vcmp.gt.f32.partialorder %v6295_v52, 0.0  ;;  %vm856_vm13 = vcmp.gt.f32.partialorder %v6316_v54, 0.0 }
 0x3e6   :  { %1089 = vmatpush.bf16.msra.mxu3 %v958_v4  ;;  %v900_v16 = vmul.f32 1.442695, %v878_v47  ;;  %v888_v35 = vmul.f32 1.442695, %v872_v25 }
 0x3e9   :  { %v833_v23 = vpop.f32.mrf.mxu0 }
 0x3ea   :  { %v6291_v31 = vadd.f32 %v5268_v21, %v833_v23  ;;  %v874_v23 = vmin.f32 %v6308_v63, 0.0 }
 0x3ec   :  { %v879_v34 = vmin.f32 %v6291_v31, 0.0  ;;  %vm863_vm6 = vcmp.gt.f32.partialorder %v6291_v31, 0.0 }
 0x3ee   :  { %v902_v60 = vmul.f32 1.442695, %v879_v34 }
 0x3f1   :  { %v836_v5 = vpop.f32.mrf.mxu0 }
 0x3f2   :  { %v6288_v26 = vadd.f32 %v5262_v18, %v836_v5  ;;  %v6093_v5 = vmov 3  }
 0x3f3   :  { %5284 = vset.pattern.permute.xlu1 %v6093_v5  ;;  %5290 = vset.pattern.permute.xlu2 %v6093_v5 }
 0x3f4   :  { %v880_v11 = vmin.f32 %v6288_v26, 0.0  ;;  %5286 = vperm.xlu1 %5284, %v6139_v20   ;;  %5296 = vset.pattern.permute.xlu0 %v6093_v5  ;;  %vm864_vm5 = vcmp.gt.f32.partialorder %v6288_v26, 0.0  ;;  %v4996_v5 = vld [vmem:[#allocation2 + $0x110] sm:$0xff] }
 0x3f5   :  { %5292 = vperm.xlu2 %5290, %v6145_v29   ;;  %5298 = vperm.xlu0 %5296, %v6153_v42  }
 0x3f6   :  { %v904_v46 = vmul.f32 1.442695, %v880_v11 }
 0x3f9   :  { %v838_v6 = vpop.f32.mrf.mxu0 }
 0x3fa   :  { %v6284_v22 = vadd.f32 %v5263_v17, %v838_v6 }
 0x3fc   :  { %v881_v33 = vmin.f32 %v6284_v22, 0.0  ;;  %vm865_vm4 = vcmp.gt.f32.partialorder %v6284_v22, 0.0  ;;  %5303 = vperm.xlu1 %5284, %v6150_v37  }
 0x3fd   :  { %5308 = vperm.xlu2 %5290, %v6133_v12   ;;  %5323 = vperm.xlu0 %5296, %v6136_v19  }
 0x3fe   :  { %v906_v9 = vmul.f32 1.442695, %v881_v33 }
 0x401   :  { %v841_v36 = vpop.f32.mrf.mxu0 }
 0x402   :  { %v6286_v41 = vadd.f32 %v5257_v28, %v841_v36  ;;  %v894_v28 = vmul.f32 1.442695, %v875_v38  ;;  %v892_v36 = vmul.f32 1.442695, %v874_v23  ;;  %v4988_v38 = vld [vmem:[#allocation2 + $0xd0] sm:$0xff]  ;;  %v4995_v23 = vld [vmem:[#allocation2 + $0x108] sm:$0xff] }
 0x404   :  { %v882_v55 = vmin.f32 %v6286_v41, 0.0  ;;  %vm866_vm2 = vcmp.gt.f32.partialorder %v6286_v41, 0.0  ;;  %5313 = vperm.xlu1 %5284, %v6130_v8  }
 0x405   :  { %5318 = vperm.xlu2 %5290, %v6142_v24  }
 0x406   :  { %v908_v39 = vmul.f32 1.442695, %v882_v55 }
 0x408   :  { %5749 = vpow2.f32 %v908_v39 }
 0x409   :  { %v843_v40 = vpop.f32.mrf.mxu0  ;;  %5751 = vpow2.f32 %v906_v9 }
 0x40a   :  { %v844_v32 = vadd.f32 %v5258_v27, %v843_v40  ;;  %5753 = vpow2.f32 %v904_v46  ;;  %v890_v27 = vmul.f32 1.442695, %v873_v13 }
 0x40c   :  { %v883_v57 = vmin.f32 %v844_v32, 0.0  ;;  %vm867_vm3 = vcmp.gt.f32.partialorder %v844_v32, 0.0 }
 0x40e   :  { %v910_v61 = vmul.f32 1.442695, %v883_v57  ;;  %v5750_v0 = vpop.eup %5749 }
 0x40f   :  { %v5752_v4 = vpop.eup %5751  ;;  %v4389_v53 = vadd.f32 -1.0, %v5750_v0 }
 0x410   :  { %5755 = vpow2.f32 %v910_v61  ;;  %v5754_v6 = vpop.eup %5753  ;;  %v4388_v15 = vadd.f32 -1.0, %v5752_v4  ;;  %v4994_v4 = vld [vmem:[#allocation2 + $0x100] sm:$0xff] }
 0x411   :  { %5757 = vpow2.f32 %v902_v60  ;;  %v4387_v21 = vadd.f32 -1.0, %v5754_v6  ;;  %v946_v49 = vsel %vm866_vm2, %v6286_v41, %v4389_v53  ;;  %vm1257_vm2 = vcmask 261120  }
 0x412   :  { %5759 = vpow2.f32 %v900_v16  ;;  %v945_v11 = vsel %vm865_vm4, %v6284_v22, %v4388_v15 }
 0x413   :  { %5761 = vpow2.f32 %v898_v3  ;;  %v944_v14 = vsel %vm864_vm5, %v6288_v26, %v4387_v21  ;;  %v4992_v3 = vld [vmem:[#allocation2 + $0xf0] sm:$0xff] }
 0x414   :  { %5763 = vpow2.f32 %v896_v2  ;;  %v956_v40 = vpack.c.bf16 %v945_v11, %v944_v14  ;;  %v4997_v2 = vld [vmem:[#allocation2 + $0x118] sm:$0xff] }
 0x415   :  { %5765 = vpow2.f32 %v894_v28  ;;  %1288 = vmatpush.bf16.msra.mxu2 %v4997_v2 }
 0x416   :  { %v5756_v58 = vpop.eup %5755  ;;  %5767 = vpow2.f32 %v892_v36 }
 0x417   :  { %v4390_v17 = vadd.f32 -1.0, %v5756_v58  ;;  %v5758_v18 = vpop.eup %5757  ;;  %5769 = vpow2.f32 %v890_v27 }
 0x418   :  { %v5760_v51 = vpop.eup %5759  ;;  %v4386_v33 = vadd.f32 -1.0, %v5758_v18  ;;  %5771 = vpow2.f32 %v888_v35 }
 0x419   :  { %v947_v55 = vsel %vm867_vm3, %v844_v32, %v4390_v17  ;;  %v5762_v50 = vpop.eup %5761  ;;  %v4385_v39 = vadd.f32 -1.0, %v5760_v51  ;;  %1289 = vmatpush.bf16.msra.mxu2 %v4996_v5 }
 0x41a   :  { %v957_v30 = vpack.c.bf16 %v947_v55, %v946_v49  ;;  %v5764_v41 = vpop.eup %5763  ;;  %v4384_v34 = vadd.f32 -1.0, %v5762_v50  ;;  %v943_v9 = vsel %vm863_vm6, %v6291_v31, %v4386_v33 }
 0x41b   :  { %v5766_v22 = vpop.eup %5765  ;;  %v4383_v32 = vadd.f32 -1.0, %v5764_v41  ;;  %v942_v44 = vsel %vm862_vm7, %v6295_v52, %v4385_v39 }
 0x41c   :  { %1090 = vmatpush.bf16.msra.mxu3 %v957_v30  ;;  %v5768_v46 = vpop.eup %5767  ;;  %v955_v26 = vpack.c.bf16 %v943_v9, %v942_v44  ;;  %v4382_v48 = vadd.f32 -1.0, %v5766_v22  ;;  %v941_v47 = vsel %vm861_vm8, %v6297_v43, %v4384_v34 }
 0x41d   :  { %v5770_v57 = vpop.eup %5769  ;;  %v4381_v31 = vadd.f32 -1.0, %v5768_v46  ;;  %v940_v56 = vsel %vm860_vm9, %v6300_v7, %v4383_v32 }
 0x41e   :  { %v5772_v59 = vpop.eup %5771  ;;  %v954_v52 = vpack.c.bf16 %v941_v47, %v940_v56  ;;  %v4380_v60 = vadd.f32 -1.0, %v5770_v57  ;;  %v939_v61 = vsel %vm859_vm10, %v6304_v10, %v4382_v48  ;;  %v4989_v10 = vld [vmem:[#allocation2 + $0xd8] sm:$0xff] }
 0x41f   :  { %v4379_v43 = vadd.f32 -1.0, %v5772_v59  ;;  %v938_v62 = vsel %vm858_vm11, %v6308_v63, %v4381_v31  ;;  %v4990_v63 = vld [vmem:[#allocation2 + $0xe0] sm:$0xff] }
 0x420   :  { %1091 = vmatpush.bf16.msra.mxu3 %v956_v40  ;;  %v953_v45 = vpack.c.bf16 %v939_v61, %v938_v62  ;;  %v937_v7 = vsel %vm857_vm12, %v6312_v1, %v4380_v60  ;;  %v4991_v1 = vld [vmem:[#allocation2 + $0xe8] sm:$0xff] }
 0x421   :  { %v936_v16 = vsel %vm856_vm13, %v6316_v54, %v4379_v43  ;;  %v4993_v54 = vld [vmem:[#allocation2 + $0xf8] sm:$0xff] }
 0x422   :  { %v952_v0 = vpack.c.bf16 %v937_v7, %v936_v16 }
 0x424   :  { %1092 = vmatpush.bf16.msra.mxu3 %v955_v26 }
 0x428   :  { %1093 = vmatpush.bf16.msra.mxu3 %v954_v52 }
 0x42c   :  { %1094 = vmatpush.bf16.msra.mxu3 %v953_v45 }
 0x430   :  { %1095 = vmatpush.bf16.msra.mxu3 %v952_v0 }
 0x433   :  { %1096 = vmatmul.bf16.vlgmr.msra.gmra.mxu3 %v4988_v38 }
 0x443   :  { %1101 = vmatmul.bf16.gmra.mxu3 %v4989_v10 }
 0x44f   :  { %v5293_v21 = vpop.permute.xlu2 %5292 }
 0x450   :  { %v5294_v49 = vunpack.i.l.bf16 %v5293_v21  ;;  %v5295_v35 = vunpack.i.h.bf16 %v5293_v21 }
 0x453   :  { %1106 = vmatmul.bf16.gmra.mxu3 %v4990_v63 }
 0x463   :  { %1111 = vmatmul.bf16.gmra.mxu3 %v4991_v1 }
 0x466   :  { %v5287_v6 = vpop.permute.xlu1 %5286 }
 0x467   :  { %v5288_v53 = vunpack.i.l.bf16 %v5287_v6  ;;  %v5289_v25 = vunpack.i.h.bf16 %v5287_v6  ;;  %v5299_v32 = vpop.permute.xlu0 %5298 }
 0x468   :  { %v5300_v26 = vunpack.i.l.bf16 %v5299_v32  ;;  %v5301_v52 = vunpack.i.h.bf16 %v5299_v32 }
 0x46e   :  { %v5304_v10 = vpop.permute.xlu1 %5303 }
 0x46f   :  { %v5305_v63 = vunpack.i.l.bf16 %v5304_v10  ;;  %v5306_v6 = vunpack.i.h.bf16 %v5304_v10 }
 0x473   :  { %1116 = vmatmul.bf16.gmra.mxu3 %v4992_v3 }
 0x483   :  { %1121 = vmatmul.bf16.gmra.mxu3 %v4993_v54 }
 0x493   :  { %1126 = vmatmul.bf16.gmra.mxu3 %v4994_v4 }
 0x4a3   :  { %1131 = vmatmul.bf16.gmra.mxu3 %v4995_v23 }
 0x4b6   :  { %v1097_v58 = vpop.f32.mrf.mxu3 }
 0x4b7   :  { %v1098_v13 = vadd.f32 %v5288_v53, %v1097_v58 }
 0x4b9   :  { %v1153_v28 = vmin.f32 %v1098_v13, 0.0  ;;  %vm1137_vm14 = vcmp.gt.f32.partialorder %v1098_v13, 0.0 }
 0x4bb   :  { %v1169_v15 = vmul.f32 1.442695, %v1153_v28 }
 0x4bd   :  { %5773 = vpow2.f32 %v1169_v15 }
 0x4be   :  { %v1099_v17 = vpop.f32.mrf.mxu3 }
 0x4bf   :  { %v1100_v18 = vadd.f32 %v5289_v25, %v1099_v17 }
 0x4c1   :  { %v1154_v36 = vmin.f32 %v1100_v18, 0.0  ;;  %vm1138_vm15 = vcmp.gt.f32.partialorder %v1100_v18, 0.0 }
 0x4c3   :  { %v1171_v55 = vmul.f32 1.442695, %v1154_v36  ;;  %v5774_v27 = vpop.eup %5773  ;;  %v5309_v36 = vpop.permute.xlu2 %5308 }
 0x4c4   :  { %v4427_v11 = vadd.f32 -1.0, %v5774_v27  ;;  %v5310_v21 = vunpack.i.l.bf16 %v5309_v36 }
 0x4c5   :  { %5775 = vpow2.f32 %v1171_v55 }
 0x4c6   :  { %v1102_v51 = vpop.f32.mrf.mxu3  ;;  %v1217_v41 = vsel %vm1137_vm14, %v1098_v13, %v4427_v11 }
 0x4c7   :  { %v1103_v30 = vadd.f32 %v5294_v49, %v1102_v51 }
 0x4c9   :  { %v1155_v33 = vmin.f32 %v1103_v30, 0.0  ;;  %vm1139_vm3 = vcmp.gt.f32.partialorder %v1103_v30, 0.0 }
 0x4cb   :  { %v5776_v50 = vpop.eup %5775  ;;  %v1173_v14 = vmul.f32 1.442695, %v1155_v33 }
 0x4cc   :  { %v4428_v39 = vadd.f32 -1.0, %v5776_v50  ;;  %v5311_v50 = vunpack.i.h.bf16 %v5309_v36 }
 0x4cd   :  { %5777 = vpow2.f32 %v1173_v14 }
 0x4ce   :  { %v1218_v40 = vsel %vm1138_vm15, %v1100_v18, %v4428_v39  ;;  %v1104_v34 = vpop.f32.mrf.mxu3 }
 0x4cf   :  { %v1233_v9 = vpack.c.bf16 %v1218_v40, %v1217_v41  ;;  %v1105_v22 = vadd.f32 %v5295_v35, %v1104_v34 }
 0x4d1   :  { %v1156_v44 = vmin.f32 %v1105_v22, 0.0  ;;  %4451 = vmatmul.msk.bf16.vlgmr.msra.gmra.mxu2 %vm1257_vm2, %v1233_v9  ;;  %vm1140_vm4 = vcmp.gt.f32.partialorder %v1105_v22, 0.0 }
 0x4d3   :  { %v1175_v46 = vmul.f32 1.442695, %v1156_v44  ;;  %v5778_v47 = vpop.eup %5777 }
 0x4d4   :  { %v4429_v56 = vadd.f32 -1.0, %v5778_v47 }
 0x4d5   :  { %5779 = vpow2.f32 %v1175_v46 }
 0x4d6   :  { %v1107_v48 = vpop.f32.mrf.mxu3  ;;  %v1219_v62 = vsel %vm1139_vm3, %v1103_v30, %v4429_v56 }
 0x4d7   :  { %v1108_v57 = vadd.f32 %v5300_v26, %v1107_v48 }
 0x4d9   :  { %v1157_v31 = vmin.f32 %v1108_v57, 0.0  ;;  %vm1141_vm5 = vcmp.gt.f32.partialorder %v1108_v57, 0.0 }
 0x4db   :  { %v5780_v59 = vpop.eup %5779  ;;  %v1177_v61 = vmul.f32 1.442695, %v1157_v31 }
 0x4dc   :  { %v4430_v60 = vadd.f32 -1.0, %v5780_v59 }
 0x4dd   :  { %5781 = vpow2.f32 %v1177_v61 }
 0x4de   :  { %v1109_v43 = vpop.f32.mrf.mxu3  ;;  %v1220_v45 = vsel %vm1140_vm4, %v1105_v22, %v4430_v60  ;;  %v5314_v22 = vpop.permute.xlu1 %5313 }
 0x4df   :  { %v1110_v7 = vadd.f32 %v5301_v52, %v1109_v43  ;;  %v1234_v16 = vpack.c.bf16 %v1220_v45, %v1219_v62  ;;  %v5315_v44 = vunpack.i.l.bf16 %v5314_v22  ;;  %v5316_v59 = vunpack.i.h.bf16 %v5314_v22 }
 0x4e1   :  { %v1158_v0 = vmin.f32 %v1110_v7, 0.0  ;;  %4452 = vmatmul.msk.bf16.gmra.mxu2 %vm1257_vm2, %v1234_v16  ;;  %vm1142_vm6 = vcmp.gt.f32.partialorder %v1110_v7, 0.0  ;;  %v5319_v16 = vpop.permute.xlu2 %5318 }
 0x4e3   :  { %v1179_v38 = vmul.f32 1.442695, %v1158_v0  ;;  %v5782_v3 = vpop.eup %5781 }
 0x4e4   :  { %v4431_v23 = vadd.f32 -1.0, %v5782_v3 }
 0x4e5   :  { %5783 = vpow2.f32 %v1179_v38  ;;  %v5320_v38 = vunpack.i.l.bf16 %v5319_v16 }
 0x4e6   :  { %v1112_v1 = vpop.f32.mrf.mxu3  ;;  %v1221_v13 = vsel %vm1141_vm5, %v1108_v57, %v4431_v23 }
 0x4e7   :  { %v1113_v54 = vadd.f32 %v5305_v63, %v1112_v1 }
 0x4e9   :  { %v1159_v4 = vmin.f32 %v1113_v54, 0.0  ;;  %vm1143_vm7 = vcmp.gt.f32.partialorder %v1113_v54, 0.0 }
 0x4eb   :  { %v5784_v2 = vpop.eup %5783  ;;  %v1181_v53 = vmul.f32 1.442695, %v1159_v4 }
 0x4ec   :  { %v4432_v5 = vadd.f32 -1.0, %v5784_v2  ;;  %v5321_v2 = vunpack.i.h.bf16 %v5319_v16 }
 0x4ed   :  { %5785 = vpow2.f32 %v1181_v53 }
 0x4ee   :  { %v1114_v58 = vpop.f32.mrf.mxu3  ;;  %v1222_v28 = vsel %vm1142_vm6, %v1110_v7, %v4432_v5 }
 0x4ef   :  { %v1115_v25 = vadd.f32 %v5306_v6, %v1114_v58  ;;  %v1235_v15 = vpack.c.bf16 %v1222_v28, %v1221_v13 }
 0x4f1   :  { %v1160_v17 = vmin.f32 %v1115_v25, 0.0  ;;  %4453 = vmatmul.msk.bf16.gmra.mxu2 %vm1257_vm2, %v1235_v15  ;;  %vm1144_vm8 = vcmp.gt.f32.partialorder %v1115_v25, 0.0  ;;  %v5324_v15 = vpop.permute.xlu0 %5323 }
 0x4f3   :  { %v1183_v18 = vmul.f32 1.442695, %v1160_v17  ;;  %v5786_v55 = vpop.eup %5785 }
 0x4f4   :  { %v4433_v30 = vadd.f32 -1.0, %v5786_v55 }
 0x4f5   :  { %5787 = vpow2.f32 %v1183_v18  ;;  %v5325_v18 = vunpack.i.l.bf16 %v5324_v15 }
 0x4f6   :  { %v1117_v49 = vpop.f32.mrf.mxu3  ;;  %v1223_v14 = vsel %vm1143_vm7, %v1113_v54, %v4433_v30 }
 0x4f7   :  { %v1118_v51 = vadd.f32 %v5310_v21, %v1117_v49 }
 0x4f9   :  { %v1161_v27 = vmin.f32 %v1118_v51, 0.0  ;;  %vm1145_vm9 = vcmp.gt.f32.partialorder %v1118_v51, 0.0 }
 0x4fb   :  { %v5788_v33 = vpop.eup %5787  ;;  %v1185_v35 = vmul.f32 1.442695, %v1161_v27 }
 0x4fc   :  { %v4434_v11 = vadd.f32 -1.0, %v5788_v33  ;;  %v5326_v33 = vunpack.i.h.bf16 %v5324_v15  ;;  %v5003_v15 = vld [vmem:[#allocation2 + $0x148] sm:$0xff] }
 0x4fd   :  { %5789 = vpow2.f32 %v1185_v35 }
 0x4fe   :  { %v1119_v39 = vpop.f32.mrf.mxu3  ;;  %v1224_v41 = vsel %vm1144_vm8, %v1115_v25, %v4434_v11 }
 0x4ff   :  { %v1120_v40 = vadd.f32 %v5311_v50, %v1119_v39  ;;  %v1236_v34 = vpack.c.bf16 %v1224_v41, %v1223_v14 }
 0x501   :  { %v1162_v9 = vmin.f32 %v1120_v40, 0.0  ;;  %4454 = vmatmul.msk.bf16.gmra.mxu2 %vm1257_vm2, %v1236_v34  ;;  %vm1146_vm10 = vcmp.gt.f32.partialorder %v1120_v40, 0.0 }
 0x503   :  { %v1187_v32 = vmul.f32 1.442695, %v1162_v9  ;;  %v5790_v26 = vpop.eup %5789 }
 0x504   :  { %v4435_v57 = vadd.f32 -1.0, %v5790_v26 }
 0x505   :  { %5791 = vpow2.f32 %v1187_v32 }
 0x506   :  { %v1122_v46 = vpop.f32.mrf.mxu3  ;;  %v1225_v61 = vsel %vm1145_vm9, %v1118_v51, %v4435_v57 }
 0x507   :  { %v1123_v48 = vadd.f32 %v5315_v44, %v1122_v46 }
 0x509   :  { %v1163_v47 = vmin.f32 %v1123_v48, 0.0  ;;  %vm1147_vm11 = vcmp.gt.f32.partialorder %v1123_v48, 0.0 }
 0x50b   :  { %v5792_v31 = vpop.eup %5791  ;;  %v1189_v52 = vmul.f32 1.442695, %v1163_v47 }
 0x50c   :  { %v4436_v56 = vadd.f32 -1.0, %v5792_v31 }
 0x50d   :  { %5793 = vpow2.f32 %v1189_v52 }
 0x50e   :  { %v1124_v60 = vpop.f32.mrf.mxu3  ;;  %v1226_v43 = vsel %vm1146_vm10, %v1120_v40, %v4436_v56 }
 0x50f   :  { %v1125_v62 = vadd.f32 %v5316_v59, %v1124_v60  ;;  %v1237_v45 = vpack.c.bf16 %v1226_v43, %v1225_v61 }
 0x511   :  { %v1164_v7 = vmin.f32 %v1125_v62, 0.0  ;;  %4455 = vmatmul.msk.bf16.gmra.mxu2 %vm1257_vm2, %v1237_v45  ;;  %vm1148_vm12 = vcmp.gt.f32.partialorder %v1125_v62, 0.0 }
 0x513   :  { %v1191_v0 = vmul.f32 1.442695, %v1164_v7  ;;  %v5794_v63 = vpop.eup %5793 }
 0x514   :  { %v4437_v54 = vadd.f32 -1.0, %v5794_v63  ;;  %v6094_v63 = vmov 4  }
 0x515   :  { %5795 = vpow2.f32 %v1191_v0  ;;  %5339 = vset.pattern.permute.xlu0 %v6094_v63  ;;  %5327 = vset.pattern.permute.xlu1 %v6094_v63 }
 0x516   :  { %v1127_v10 = vpop.f32.mrf.mxu3  ;;  %v1227_v53 = vsel %vm1147_vm11, %v1123_v48, %v4437_v54  ;;  %5333 = vset.pattern.permute.xlu2 %v6094_v63  ;;  %5341 = vperm.xlu0 %5339, %v6130_v8  }
 0x517   :  { %v1128_v1 = vadd.f32 %v5320_v38, %v1127_v10  ;;  %5329 = vperm.xlu1 %5327, %v6136_v19   ;;  %5335 = vperm.xlu2 %5333, %v6142_v24  }
 0x519   :  { %v1165_v3 = vmin.f32 %v1128_v1, 0.0  ;;  %vm1149_vm13 = vcmp.gt.f32.partialorder %v1128_v1, 0.0 }
 0x51b   :  { %v5796_v4 = vpop.eup %5795  ;;  %v1193_v5 = vmul.f32 1.442695, %v1165_v3 }
 0x51c   :  { %v4438_v23 = vadd.f32 -1.0, %v5796_v4 }
 0x51d   :  { %5797 = vpow2.f32 %v1193_v5 }
 0x51e   :  { %v1129_v6 = vpop.f32.mrf.mxu3  ;;  %v1228_v58 = vsel %vm1148_vm12, %v1125_v62, %v4438_v23  ;;  %5366 = vperm.xlu0 %5339, %v6139_v20  }
 0x51f   :  { %v1130_v13 = vadd.f32 %v5321_v2, %v1129_v6  ;;  %v1238_v28 = vpack.c.bf16 %v1228_v58, %v1227_v53  ;;  %v4998_v53 = vld [vmem:[#allocation2 + $0x120] sm:$0xff]  ;;  %5346 = vperm.xlu1 %5327, %v6133_v12   ;;  %5351 = vperm.xlu2 %5333, %v6150_v37   ;;  %v4999_v58 = vld [vmem:[#allocation2 + $0x128] sm:$0xff] }
 0x521   :  { %v1166_v25 = vmin.f32 %v1130_v13, 0.0  ;;  %4456 = vmatmul.msk.bf16.gmra.mxu2 %vm1257_vm2, %v1238_v28  ;;  %vm1150_vm14 = vcmp.gt.f32.partialorder %v1130_v13, 0.0  ;;  %v5001_v28 = vld [vmem:[#allocation2 + $0x138] sm:$0xff] }
 0x523   :  { %v1195_v17 = vmul.f32 1.442695, %v1166_v25  ;;  %v5798_v21 = vpop.eup %5797  ;;  %v5002_v25 = vld [vmem:[#allocation2 + $0x140] sm:$0xff] }
 0x524   :  { %v4439_v51 = vadd.f32 -1.0, %v5798_v21 }
 0x525   :  { %5799 = vpow2.f32 %v1195_v17  ;;  %v5004_v17 = vld [vmem:[#allocation2 + $0x150] sm:$0xff] }
 0x526   :  { %v1132_v36 = vpop.f32.mrf.mxu3  ;;  %v1229_v35 = vsel %vm1149_vm13, %v1128_v1, %v4439_v51 }
 0x527   :  { %v1133_v49 = vadd.f32 %v5325_v18, %v1132_v36  ;;  %5356 = vperm.xlu1 %5327, %v6153_v42   ;;  %5361 = vperm.xlu2 %5333, %v6145_v29   ;;  %v5005_v18 = vld [vmem:[#allocation2 + $0x158] sm:$0xff] }
 0x529   :  { %v1167_v55 = vmin.f32 %v1133_v49, 0.0  ;;  %vm1151_vm15 = vcmp.gt.f32.partialorder %v1133_v49, 0.0 }
 0x52b   :  { %v5800_v27 = vpop.eup %5799  ;;  %v1197_v11 = vmul.f32 1.442695, %v1167_v55 }
 0x52c   :  { %v4440_v30 = vadd.f32 -1.0, %v5800_v27 }
 0x52d   :  { %5801 = vpow2.f32 %v1197_v11 }
 0x52e   :  { %v1134_v50 = vpop.f32.mrf.mxu3  ;;  %v1230_v39 = vsel %vm1150_vm14, %v1130_v13, %v4440_v30  ;;  %v5000_v13 = vld [vmem:[#allocation2 + $0x130] sm:$0xff] }
 0x52f   :  { %v1135_v14 = vadd.f32 %v5326_v33, %v1134_v50  ;;  %v1239_v41 = vpack.c.bf16 %v1230_v39, %v1229_v35 }
 0x531   :  { %v1168_v40 = vmin.f32 %v1135_v14, 0.0  ;;  %4457 = vmatmul.msk.bf16.gmra.mxu2 %vm1257_vm2, %v1239_v41  ;;  %vm1152_vm3 = vcmp.gt.f32.partialorder %v1135_v14, 0.0 }
 0x533   :  { %v1199_v34 = vmul.f32 1.442695, %v1168_v40  ;;  %v5802_v9 = vpop.eup %5801 }
 0x534   :  { %v4441_v22 = vadd.f32 -1.0, %v5802_v9 }
 0x535   :  { %5803 = vpow2.f32 %v1199_v34 }
 0x536   :  { %v1231_v46 = vsel %vm1151_vm15, %v1133_v49, %v4441_v22 }
 0x53b   :  { %v5804_v32 = vpop.eup %5803 }
 0x53c   :  { %v4442_v44 = vadd.f32 -1.0, %v5804_v32 }
 0x53e   :  { %v1232_v26 = vsel %vm1152_vm3, %v1135_v14, %v4442_v44 }
 0x53f   :  { %v1240_v48 = vpack.c.bf16 %v1232_v26, %v1231_v46 }
 0x541   :  { %4458 = vmatmul.msk.bf16.gmra.mxu2 %vm1257_vm2, %v1240_v48 }
 0x554   :  { %v1291_v47 = vpop.f32.mrf.mxu2 }
 0x55c   :  { %v1293_v57 = vpop.f32.mrf.mxu2 }
 0x55d   :  { %v1331_v6 = vpack.c.bf16 %v1293_v57, %v1291_v47 }
 0x564   :  { %v1296_v31 = vpop.f32.mrf.mxu2 }
 0x56c   :  { %v1298_v56 = vpop.f32.mrf.mxu2 }
 0x56d   :  { %v1332_v5 = vpack.c.bf16 %v1298_v56, %v1296_v31 }
 0x571   :  { %v5336_v34 = vpop.permute.xlu2 %5335 }
 0x572   :  { %v5338_v9 = vunpack.i.h.bf16 %v5336_v34  ;;  %v5337_v32 = vunpack.i.l.bf16 %v5336_v34 }
 0x574   :  { %v1301_v59 = vpop.f32.mrf.mxu2 }
 0x57c   :  { %v1303_v52 = vpop.f32.mrf.mxu2 }
 0x57d   :  { %v1333_v2 = vpack.c.bf16 %v1303_v52, %v1301_v59  ;;  %v5352_v52 = vpop.permute.xlu2 %5351 }
 0x584   :  { %v1306_v60 = vpop.f32.mrf.mxu2 }
 0x588   :  { %v5342_v44 = vpop.permute.xlu0 %5341 }
 0x589   :  { %v5330_v41 = vpop.permute.xlu1 %5329  ;;  %v5344_v26 = vunpack.i.h.bf16 %v5342_v44  ;;  %v5343_v56 = vunpack.i.l.bf16 %v5342_v44 }
 0x58a   :  { %v5331_v22 = vunpack.i.l.bf16 %v5330_v41 }
 0x58c   :  { %v1308_v61 = vpop.f32.mrf.mxu2 }
 0x58d   :  { %v1334_v23 = vpack.c.bf16 %v1308_v61, %v1306_v60  ;;  %v5332_v60 = vunpack.i.h.bf16 %v5330_v41 }
 0x591   :  { %v5347_v48 = vpop.permute.xlu1 %5346 }
 0x592   :  { %v5349_v61 = vunpack.i.h.bf16 %v5347_v48 }
 0x594   :  { %v1311_v43 = vpop.f32.mrf.mxu2 }
 0x59c   :  { %v1313_v62 = vpop.f32.mrf.mxu2 }
 0x59d   :  { %v1335_v4 = vpack.c.bf16 %v1313_v62, %v1311_v43 }
 0x5a4   :  { %v1316_v45 = vpop.f32.mrf.mxu2 }
 0x5ac   :  { %v1318_v7 = vpop.f32.mrf.mxu2 }
 0x5ad   :  { %v1336_v54 = vpack.c.bf16 %v1318_v7, %v1316_v45  ;;  %v5348_v7 = vunpack.i.l.bf16 %v5347_v48 }
 0x5b4   :  { %v1321_v16 = vpop.f32.mrf.mxu2 }
 0x5bc   :  { %v1323_v0 = vpop.f32.mrf.mxu2 }
 0x5bd   :  { %v1337_v3 = vpack.c.bf16 %v1323_v0, %v1321_v16 }
 0x5c4   :  { %v1326_v38 = vpop.f32.mrf.mxu2 }
 0x5cc   :  { %v1328_v10 = vpop.f32.mrf.mxu2 }
 0x5cd   :  { %v1338_v1 = vpack.c.bf16 %v1328_v10, %v1326_v38  ;;  %v5354_v38 = vunpack.i.h.bf16 %v5352_v52 }
 0x5cf   :  { %1467 = vmatpush.bf16.msrb.mxu1 %v1338_v1 }
 0x5d3   :  { %1468 = vmatpush.bf16.msrb.mxu1 %v1337_v3 }
 0x5d7   :  { %1469 = vmatpush.bf16.msrb.mxu1 %v1336_v54 }
 0x5db   :  { %1470 = vmatpush.bf16.msrb.mxu1 %v1335_v4  ;;  %v5353_v4 = vunpack.i.l.bf16 %v5352_v52 }
 0x5df   :  { %1471 = vmatpush.bf16.msrb.mxu1 %v1334_v23 }
 0x5e3   :  { %1472 = vmatpush.bf16.msrb.mxu1 %v1333_v2  ;;  %v5357_v2 = vpop.permute.xlu1 %5356 }
 0x5e7   :  { %1473 = vmatpush.bf16.msrb.mxu1 %v1332_v5 }
 0x5eb   :  { %1474 = vmatpush.bf16.msrb.mxu1 %v1331_v6 }
 0x5ee   :  { %1475 = vmatmul.bf16.vlgmr.msrb.gmra.mxu1 %v4998_v53 }
 0x5fe   :  { %1480 = vmatmul.bf16.gmra.mxu1 %v4999_v58  ;;  %v5359_v58 = vunpack.i.h.bf16 %v5357_v2 }
 0x60e   :  { %1485 = vmatmul.bf16.gmra.mxu1 %v5000_v13 }
 0x61e   :  { %1490 = vmatmul.bf16.gmra.mxu1 %v5001_v28 }
 0x62e   :  { %1495 = vmatmul.bf16.gmra.mxu1 %v5002_v25 }
 0x63e   :  { %1500 = vmatmul.bf16.gmra.mxu1 %v5003_v15 }
 0x64e   :  { %1505 = vmatmul.bf16.gmra.mxu1 %v5004_v17  ;;  %v5358_v17 = vunpack.i.l.bf16 %v5357_v2 }
 0x65e   :  { %1510 = vmatmul.bf16.gmra.mxu1 %v5005_v18  ;;  %v5367_v18 = vpop.permute.xlu0 %5366 }
 0x65f   :  { %v5368_v48 = vunpack.i.l.bf16 %v5367_v18 }
 0x66b   :  { %v6367_v36 = vpop.f32.mrf.mxu1 }
 0x673   :  { %v6369_v21 = vpop.f32.mrf.mxu1 }
 0x67b   :  { %v6371_v49 = vpop.f32.mrf.mxu1 }
 0x683   :  { %v6373_v55 = vpop.f32.mrf.mxu1 }
 0x68b   :  { %v6375_v51 = vpop.f32.mrf.mxu1 }
 0x693   :  { %v1488_v27 = vpop.f32.mrf.mxu1 }
 0x69b   :  { %v1491_v30 = vpop.f32.mrf.mxu1 }
 0x6a3   :  { %v1493_v33 = vpop.f32.mrf.mxu1 }
 0x6a4   :  { %v6396_v13 = vadd.f32 %v5354_v38, %v1493_v33  ;;  %v6402_v33 = vadd.f32 %v5359_v58, %v1488_v27 }
 0x6a6   :  { %v1539_v34 = vmin.f32 %v6396_v13, 0.0  ;;  %vm1523_vm12 = vcmp.gt.f32.partialorder %v6396_v13, 0.0  ;;  %vm1521_vm14 = vcmp.gt.f32.partialorder %v6402_v33, 0.0 }
 0x6ab   :  { %v1496_v11 = vpop.f32.mrf.mxu1 }
 0x6ac   :  { %v6393_v5 = vadd.f32 %v5348_v7, %v1496_v11 }
 0x6ae   :  { %v1540_v11 = vmin.f32 %v6393_v5, 0.0  ;;  %vm1524_vm11 = vcmp.gt.f32.partialorder %v6393_v5, 0.0 }
 0x6b3   :  { %v1498_v50 = vpop.f32.mrf.mxu1 }
 0x6b4   :  { %v6390_v63 = vadd.f32 %v5349_v61, %v1498_v50  ;;  %v5362_v50 = vpop.permute.xlu2 %5361  ;;  %v1562_v61 = vmul.f32 1.442695, %v1539_v34 }
 0x6b5   :  { %v5364_v41 = vunpack.i.h.bf16 %v5362_v50 }
 0x6b6   :  { %v1541_v28 = vmin.f32 %v6390_v63, 0.0  ;;  %vm1525_vm10 = vcmp.gt.f32.partialorder %v6390_v63, 0.0 }
 0x6bb   :  { %v1501_v35 = vpop.f32.mrf.mxu1 }
 0x6bc   :  { %v6388_v16 = vadd.f32 %v5343_v56, %v1501_v35  ;;  %v6399_v35 = vadd.f32 %v5353_v4, %v1491_v30  ;;  %v6410_v56 = vadd.f32 %v5364_v41, %v6373_v55 }
 0x6be   :  { %v1542_v6 = vmin.f32 %v6388_v16, 0.0  ;;  %v1538_v30 = vmin.f32 %v6399_v35, 0.0  ;;  %vm1526_vm9 = vcmp.gt.f32.partialorder %v6388_v16, 0.0  ;;  %vm1522_vm13 = vcmp.gt.f32.partialorder %v6399_v35, 0.0 }
 0x6bf   :  { %vm1519_vm3 = vcmp.gt.f32.partialorder %v6410_v56, 0.0 }
 0x6c0   :  { %v1560_v38 = vmul.f32 1.442695, %v1538_v30 }
 0x6c3   :  { %v1503_v39 = vpop.f32.mrf.mxu1 }
 0x6c4   :  { %v6384_v43 = vadd.f32 %v5344_v26, %v1503_v39  ;;  %v1568_v39 = vmul.f32 1.442695, %v1542_v6 }
 0x6c6   :  { %v1543_v1 = vmin.f32 %v6384_v43, 0.0  ;;  %vm1527_vm8 = vcmp.gt.f32.partialorder %v6384_v43, 0.0 }
 0x6c8   :  { %v1570_v25 = vmul.f32 1.442695, %v1543_v1 }
 0x6cb   :  { %v1506_v14 = vpop.f32.mrf.mxu1 }
 0x6cc   :  { %v6381_v31 = vadd.f32 %v5337_v32, %v1506_v14  ;;  %v5369_v14 = vunpack.i.h.bf16 %v5367_v18  ;;  %v6406_v32 = vadd.f32 %v5358_v17, %v6375_v51 }
 0x6ce   :  { %v1544_v45 = vmin.f32 %v6381_v31, 0.0  ;;  %v6413_v52 = vadd.f32 %v5369_v14, %v6369_v21  ;;  %v1535_v21 = vmin.f32 %v6410_v56, 0.0  ;;  %vm1528_vm7 = vcmp.gt.f32.partialorder %v6381_v31, 0.0 }
 0x6cf   :  { %vm1520_vm15 = vcmp.gt.f32.partialorder %v6406_v32, 0.0 }
 0x6d0   :  { %v1572_v23 = vmul.f32 1.442695, %v1544_v45 }
 0x6d3   :  { %v1508_v40 = vpop.f32.mrf.mxu1 }
 0x6d4   :  { %v6377_v47 = vadd.f32 %v5338_v9, %v1508_v40  ;;  %v1566_v9 = vmul.f32 1.442695, %v1541_v28 }
 0x6d6   :  { %v1545_v62 = vmin.f32 %v6377_v47, 0.0  ;;  %vm1529_vm6 = vcmp.gt.f32.partialorder %v6377_v47, 0.0 }
 0x6d8   :  { %v1574_v3 = vmul.f32 1.442695, %v1545_v62  ;;  %v1536_v62 = vmin.f32 %v6406_v32, 0.0 }
 0x6da   :  { %v1556_v28 = vmul.f32 1.442695, %v1536_v62 }
 0x6db   :  { %v1511_v46 = vpop.f32.mrf.mxu1 }
 0x6dc   :  { %v6379_v57 = vadd.f32 %v5331_v22, %v1511_v46  ;;  %v5363_v22 = vunpack.i.l.bf16 %v5362_v50  ;;  %v1564_v46 = vmul.f32 1.442695, %v1540_v11 }
 0x6de   :  { %v1546_v59 = vmin.f32 %v6379_v57, 0.0  ;;  %v6417_v51 = vadd.f32 %v5363_v22, %v6371_v49  ;;  %vm1530_vm4 = vcmp.gt.f32.partialorder %v6379_v57, 0.0 }
 0x6e0   :  { %v1576_v0 = vmul.f32 1.442695, %v1546_v59  ;;  %v1534_v58 = vmin.f32 %v6417_v51, 0.0 }
 0x6e2   :  { %5805 = vpow2.f32 %v1576_v0 }
 0x6e3   :  { %v1513_v10 = vpop.f32.mrf.mxu1  ;;  %5807 = vpow2.f32 %v1574_v3 }
 0x6e4   :  { %v1514_v54 = vadd.f32 %v5332_v60, %v1513_v10  ;;  %5809 = vpow2.f32 %v1572_v23  ;;  %v1537_v60 = vmin.f32 %v6402_v33, 0.0  ;;  %v6425_v23 = vadd.f32 %v5368_v48, %v6367_v36 }
 0x6e6   :  { %v1547_v53 = vmin.f32 %v1514_v54, 0.0  ;;  %vm1531_vm5 = vcmp.gt.f32.partialorder %v1514_v54, 0.0  ;;  %v1558_v4 = vmul.f32 1.442695, %v1537_v60 }
 0x6e8   :  { %v1578_v15 = vmul.f32 1.442695, %v1547_v53  ;;  %v5806_v40 = vpop.eup %5805 }
 0x6e9   :  { %v5808_v44 = vpop.eup %5807  ;;  %v4505_v27 = vadd.f32 -1.0, %v5806_v40 }
 0x6ea   :  { %5811 = vpow2.f32 %v1578_v15  ;;  %v5810_v26 = vpop.eup %5809  ;;  %v4504_v7 = vadd.f32 -1.0, %v5808_v44 }
 0x6eb   :  { %5813 = vpow2.f32 %v1570_v25  ;;  %v1610_v55 = vsel %vm1530_vm4, %v6379_v57, %v4505_v27  ;;  %v4503_v1 = vadd.f32 -1.0, %v5810_v26  ;;  %v6095_v57 = vmov 5  }
 0x6ec   :  { %5815 = vpow2.f32 %v1568_v39  ;;  %v1609_v2 = vsel %vm1529_vm6, %v6377_v47, %v4504_v7  ;;  %5370 = vset.pattern.permute.xlu1 %v6095_v57  ;;  %5382 = vset.pattern.permute.xlu0 %v6095_v57  ;;  %v1554_v47 = vmul.f32 1.442695, %v1535_v21  ;;  %v1552_v39 = vmul.f32 1.442695, %v1534_v58 }
 0x6ed   :  { %5817 = vpow2.f32 %v1566_v9  ;;  %v1608_v25 = vsel %vm1528_vm7, %v6381_v31, %v4503_v1  ;;  %5372 = vperm.xlu1 %5370, %v6139_v20   ;;  %5384 = vperm.xlu0 %5382, %v6153_v42   ;;  %v1532_v31 = vmin.f32 %v6425_v23, 0.0  ;;  %vm1518_vm4 = vcmp.gt.f32.partialorder %v6417_v51, 0.0 }
 0x6ee   :  { %5819 = vpow2.f32 %v1564_v46  ;;  %v1618_v17 = vpack.c.bf16 %v1609_v2, %v1608_v25  ;;  %5376 = vset.pattern.permute.xlu2 %v6095_v57  ;;  %vm1516_vm6 = vcmp.gt.f32.partialorder %v6425_v23, 0.0  ;;  %v5006_v2 = vld [vmem:[#allocation2 + $0x160] sm:$0xff]  ;;  %vm1790_vm7 = vcmask 1043456  }
 0x6ef   :  { %5821 = vpow2.f32 %v1562_v61  ;;  %5378 = vperm.xlu2 %5376, %v6145_v29   ;;  %v1548_v30 = vmul.f32 1.442695, %v1532_v31  ;;  %v5010_v57 = vld [vmem:[#allocation2 + $0x180] sm:$0xff] }
 0x6f0   :  { %v5812_v59 = vpop.eup %5811  ;;  %5823 = vpow2.f32 %v1560_v38 }
 0x6f1   :  { %v4506_v45 = vadd.f32 -1.0, %v5812_v59  ;;  %v5814_v0 = vpop.eup %5813  ;;  %5825 = vpow2.f32 %v1558_v4 }
 0x6f2   :  { %v5816_v3 = vpop.eup %5815  ;;  %v4502_v6 = vadd.f32 -1.0, %v5814_v0  ;;  %5827 = vpow2.f32 %v1556_v28 }
 0x6f3   :  { %v1611_v10 = vsel %vm1531_vm5, %v1514_v54, %v4506_v45  ;;  %v5818_v53 = vpop.eup %5817  ;;  %v1533_v54 = vmin.f32 %v6413_v52, 0.0  ;;  %v4501_v15 = vadd.f32 -1.0, %v5816_v3  ;;  %5829 = vpow2.f32 %v1554_v47 }
 0x6f4   :  { %v1619_v49 = vpack.c.bf16 %v1611_v10, %v1610_v55  ;;  %v5820_v36 = vpop.eup %5819  ;;  %v1607_v18 = vsel %vm1527_vm8, %v6384_v43, %v4502_v6  ;;  %v4500_v50 = vadd.f32 -1.0, %v5818_v53  ;;  %5831 = vpow2.f32 %v1552_v39  ;;  %v5008_v6 = vld [vmem:[#allocation2 + $0x170] sm:$0xff]  ;;  %v1767_v53 = vld [vmem:[#allocation2 + $0x188] sm:$0xf] }
 0x6f5   :  { %v5822_v11 = vpop.eup %5821  ;;  %v1606_v14 = vsel %vm1526_vm9, %v6388_v16, %v4501_v15  ;;  %v4499_v41 = vadd.f32 -1.0, %v5820_v36  ;;  %v1550_v34 = vmul.f32 1.442695, %v1533_v54  ;;  %5389 = vperm.xlu1 %5370, %v6150_v37   ;;  %vm1517_vm5 = vcmp.gt.f32.partialorder %v6413_v52, 0.0 }
 0x6f6   :  { %1684 = vmatpush.bf16.msrb.mxu0 %v1619_v49  ;;  %v5824_v40 = vpop.eup %5823  ;;  %v1617_v9 = vpack.c.bf16 %v1607_v18, %v1606_v14  ;;  %v1605_v43 = vsel %vm1525_vm10, %v6390_v63, %v4500_v50  ;;  %v4498_v22 = vadd.f32 -1.0, %v5822_v11  ;;  %v1773_v58 = vunpack.c.l.b16 %v1767_v53 }
 0x6f7   :  { %v5826_v44 = vpop.eup %5825  ;;  %v1604_v46 = vsel %vm1524_vm11, %v6393_v5, %v4499_v41  ;;  %v4497_v26 = vadd.f32 -1.0, %v5824_v40  ;;  %5833 = vpow2.f32 %v1550_v34  ;;  %vm1777_vm10 = vcmask 195584  }
 0x6f8   :  { %v5828_v16 = vpop.eup %5827  ;;  %v1616_v48 = vpack.c.bf16 %v1605_v43, %v1604_v46  ;;  %v1603_v27 = vsel %vm1523_vm12, %v6396_v13, %v4498_v22  ;;  %v4496_v63 = vadd.f32 -1.0, %v5826_v44  ;;  %5835 = vpow2.f32 %v1548_v30 }
 0x6f9   :  { %v5830_v59 = vpop.eup %5829  ;;  %v1602_v60 = vsel %vm1522_vm13, %v6399_v35, %v4497_v26  ;;  %v4495_v61 = vadd.f32 -1.0, %v5828_v16  ;;  %v1775_v28 = vpack.c.b16 %v1773_v58, %v1773_v58 }
 0x6fa   :  { %1685 = vmatpush.bf16.msrb.mxu0 %v1618_v17  ;;  %v5832_v5 = vpop.eup %5831  ;;  %v1615_v62 = vpack.c.bf16 %v1603_v27, %v1602_v60  ;;  %v1601_v45 = vsel %vm1521_vm14, %v6402_v33, %v4496_v63  ;;  %v4494_v7 = vadd.f32 -1.0, %v5830_v59 }
 0x6fb   :  { %v1600_v13 = vsel %vm1520_vm15, %v6406_v32, %v4495_v61  ;;  %v4493_v38 = vadd.f32 -1.0, %v5832_v5 }
 0x6fc   :  { %v1614_v55 = vpack.c.bf16 %v1601_v45, %v1600_v13  ;;  %v1599_v35 = vsel %vm1519_vm3, %v6410_v56, %v4494_v7  ;;  %v5007_v56 = vld [vmem:[#allocation2 + $0x168] sm:$0xff] }
 0x6fd   :  { %v5834_v0 = vpop.eup %5833  ;;  %v1598_v33 = vsel %vm1518_vm4, %v6417_v51, %v4493_v38  ;;  %v5009_v51 = vld [vmem:[#allocation2 + $0x178] sm:$0xff] }
 0x6fe   :  { %1686 = vmatpush.bf16.msrb.mxu0 %v1617_v9  ;;  %v5836_v21 = vpop.eup %5835  ;;  %v4492_v10 = vadd.f32 -1.0, %v5834_v0  ;;  %v1613_v3 = vpack.c.bf16 %v1599_v35, %v1598_v33 }
 0x6ff   :  { %v4491_v1 = vadd.f32 -1.0, %v5836_v21 }
 0x700   :  { %v1597_v4 = vsel %vm1517_vm5, %v6413_v52, %v4492_v10  ;;  %v1792_v52 = vsel %vm1790_vm7, %v1775_v28, 0 }
 0x701   :  { %v1596_v32 = vsel %vm1516_vm6, %v6425_v23, %v4491_v1  ;;  %1800 = vmatpush.bf16.msrb.mxu3 %v1792_v52 }
 0x702   :  { %1687 = vmatpush.bf16.msrb.mxu0 %v1616_v48  ;;  %v1612_v49 = vpack.c.bf16 %v1597_v4, %v1596_v32 }
 0x705   :  { %1801 = vmatpush.bf16.msrb.mxu3 %v5010_v57 }
 0x706   :  { %1688 = vmatpush.bf16.msrb.mxu0 %v1615_v62 }
 0x70a   :  { %1689 = vmatpush.bf16.msrb.mxu0 %v1614_v55 }
 0x70e   :  { %1690 = vmatpush.bf16.msrb.mxu0 %v1613_v3 }
 0x712   :  { %1691 = vmatpush.bf16.msrb.mxu0 %v1612_v49 }
 0x715   :  { %1692 = vmatmul.bf16.vlgmr.msrb.gmra.mxu0 %v5006_v2 }
 0x725   :  { %1697 = vmatmul.bf16.gmra.mxu0 %v5007_v56 }
 0x735   :  { %1702 = vmatmul.bf16.gmra.mxu0 %v5008_v6 }
 0x745   :  { %1707 = vmatmul.bf16.gmra.mxu0 %v5009_v51 }
 0x749   :  { %v5379_v11 = vpop.permute.xlu2 %5378 }
 0x74a   :  { %v5380_v14 = vunpack.i.l.bf16 %v5379_v11  ;;  %v5381_v44 = vunpack.i.h.bf16 %v5379_v11 }
 0x75f   :  { %v5373_v23 = vpop.permute.xlu1 %5372  ;;  %v5385_v59 = vpop.permute.xlu0 %5384 }
 0x760   :  { %v5374_v54 = vunpack.i.l.bf16 %v5373_v23  ;;  %v5375_v47 = vunpack.i.h.bf16 %v5373_v23  ;;  %v5386_v5 = vunpack.i.l.bf16 %v5385_v59  ;;  %v5387_v21 = vunpack.i.h.bf16 %v5385_v59 }
 0x767   :  { %v5390_v49 = vpop.permute.xlu1 %5389 }
 0x768   :  { %v5391_v56 = vunpack.i.l.bf16 %v5390_v49  ;;  %v5392_v23 = vunpack.i.h.bf16 %v5390_v49 }
 0x792   :  { %v1693_v25 = vpop.f32.mrf.mxu0 }
 0x793   :  { %v1694_v15 = vadd.f32 %v5374_v54, %v1693_v25 }
 0x795   :  { %v1721_v36 = vmin.f32 %v1694_v15, 0.0  ;;  %vm1713_vm8 = vcmp.gt.f32.partialorder %v1694_v15, 0.0 }
 0x797   :  { %v1729_v17 = vmul.f32 1.442695, %v1721_v36 }
 0x799   :  { %5837 = vpow2.f32 %v1729_v17 }
 0x79a   :  { %v1695_v18 = vpop.f32.mrf.mxu0 }
 0x79b   :  { %v1696_v50 = vadd.f32 %v5375_v47, %v1695_v18 }
 0x79d   :  { %v1722_v31 = vmin.f32 %v1696_v50, 0.0  ;;  %vm1714_vm9 = vcmp.gt.f32.partialorder %v1696_v50, 0.0 }
 0x79f   :  { %v1731_v39 = vmul.f32 1.442695, %v1722_v31  ;;  %v5838_v40 = vpop.eup %5837 }
 0x7a0   :  { %v4523_v43 = vadd.f32 -1.0, %v5838_v40 }
 0x7a1   :  { %5839 = vpow2.f32 %v1731_v39 }
 0x7a2   :  { %v1698_v41 = vpop.f32.mrf.mxu0  ;;  %v1753_v26 = vsel %vm1713_vm8, %v1694_v15, %v4523_v43 }
 0x7a3   :  { %v1699_v34 = vadd.f32 %v5380_v14, %v1698_v41 }
 0x7a5   :  { %v1723_v9 = vmin.f32 %v1699_v34, 0.0  ;;  %vm1715_vm11 = vcmp.gt.f32.partialorder %v1699_v34, 0.0 }
 0x7a7   :  { %v5840_v22 = vpop.eup %5839  ;;  %v1733_v46 = vmul.f32 1.442695, %v1723_v9 }
 0x7a8   :  { %v4524_v30 = vadd.f32 -1.0, %v5840_v22 }
 0x7a9   :  { %5841 = vpow2.f32 %v1733_v46 }
 0x7aa   :  { %v1754_v16 = vsel %vm1714_vm9, %v1696_v50, %v4524_v30  ;;  %v1700_v48 = vpop.f32.mrf.mxu0 }
 0x7ab   :  { %v1761_v27 = vpack.c.bf16 %v1754_v16, %v1753_v26  ;;  %v1701_v63 = vadd.f32 %v5381_v44, %v1700_v48  ;;  %v6096_v26 = vmov 6  }
 0x7ac   :  { %5393 = vset.pattern.permute.xlu2 %v6096_v26  ;;  %5399 = vset.pattern.permute.xlu1 %v6096_v26 }
 0x7ad   :  { %v1724_v60 = vmin.f32 %v1701_v63, 0.0  ;;  %4535 = vmatmul.msk.bf16.vlgmr.msrb.gmra.mxu3 %vm1777_vm10, %v1761_v27  ;;  %vm1716_vm12 = vcmp.gt.f32.partialorder %v1701_v63, 0.0  ;;  %5395 = vperm.xlu2 %5393, %v6136_v19  }
 0x7ae   :  { %5401 = vperm.xlu1 %5399, %v6142_v24   ;;  %5410 = vset.pattern.permute.xlu0 %v6096_v26 }
 0x7af   :  { %v1735_v61 = vmul.f32 1.442695, %v1724_v60  ;;  %v5842_v45 = vpop.eup %5841  ;;  %5412 = vperm.xlu0 %5410, %v6133_v12  }
 0x7b0   :  { %v4525_v13 = vadd.f32 -1.0, %v5842_v45  ;;  %v5014_v45 = vld [vmem:[#allocation2 + $0x1a8] sm:$0xff] }
 0x7b1   :  { %5843 = vpow2.f32 %v1735_v61  ;;  %v5011_v61 = vld [vmem:[#allocation2 + $0x190] sm:$0xff] }
 0x7b2   :  { %v1703_v62 = vpop.f32.mrf.mxu0  ;;  %v1755_v10 = vsel %vm1715_vm11, %v1699_v34, %v4525_v13  ;;  %v5017_v13 = vld [vmem:[#allocation2 + $0x1c0] sm:$0xff] }
 0x7b3   :  { %v1704_v7 = vadd.f32 %v5386_v5, %v1703_v62  ;;  %v5012_v5 = vld [vmem:[#allocation2 + $0x198] sm:$0xff]  ;;  %v5013_v62 = vld [vmem:[#allocation2 + $0x1a0] sm:$0xff] }
 0x7b5   :  { %v1725_v0 = vmin.f32 %v1704_v7, 0.0  ;;  %vm1717_vm13 = vcmp.gt.f32.partialorder %v1704_v7, 0.0  ;;  %5406 = vperm.xlu2 %5393, %v6130_v8  }
 0x7b6   :  { %5417 = vperm.xlu1 %5399, %v6150_v37  }
 0x7b7   :  { %v5844_v38 = vpop.eup %5843  ;;  %v1737_v35 = vmul.f32 1.442695, %v1725_v0  ;;  %v5016_v0 = vld [vmem:[#allocation2 + $0x1b8] sm:$0xff] }
 0x7b8   :  { %v4526_v55 = vadd.f32 -1.0, %v5844_v38  ;;  %v5018_v38 = vld [vmem:[#allocation2 + $0x1c8] sm:$0xff] }
 0x7b9   :  { %5845 = vpow2.f32 %v1737_v35 }
 0x7ba   :  { %v1756_v33 = vsel %vm1716_vm12, %v1701_v63, %v4526_v55  ;;  %v1705_v1 = vpop.f32.mrf.mxu0 }
 0x7bb   :  { %v1762_v3 = vpack.c.bf16 %v1756_v33, %v1755_v10  ;;  %v1706_v4 = vadd.f32 %v5387_v21, %v1705_v1 }
 0x7bd   :  { %v1726_v32 = vmin.f32 %v1706_v4, 0.0  ;;  %4536 = vmatmul.msk.bf16.gmra.mxu3 %vm1777_vm10, %v1762_v3  ;;  %vm1718_vm14 = vcmp.gt.f32.partialorder %v1706_v4, 0.0  ;;  %5422 = vperm.xlu2 %5393, %v6153_v42  }
 0x7be   :  { %5427 = vperm.xlu1 %5399, %v6145_v29  }
 0x7bf   :  { %v1739_v2 = vmul.f32 1.442695, %v1726_v32  ;;  %v5846_v51 = vpop.eup %5845 }
 0x7c0   :  { %v4527_v28 = vadd.f32 -1.0, %v5846_v51 }
 0x7c1   :  { %5847 = vpow2.f32 %v1739_v2 }
 0x7c2   :  { %v1708_v6 = vpop.f32.mrf.mxu0  ;;  %v1757_v25 = vsel %vm1717_vm13, %v1704_v7, %v4527_v28  ;;  %v5015_v7 = vld [vmem:[#allocation2 + $0x1b0] sm:$0xff] }
 0x7c3   :  { %v1709_v53 = vadd.f32 %v5391_v56, %v1708_v6 }
 0x7c5   :  { %v1727_v58 = vmin.f32 %v1709_v53, 0.0  ;;  %vm1719_vm15 = vcmp.gt.f32.partialorder %v1709_v53, 0.0  ;;  %5432 = vperm.xlu2 %5393, %v6139_v20  }
 0x7c7   :  { %v5848_v52 = vpop.eup %5847  ;;  %v1741_v54 = vmul.f32 1.442695, %v1727_v58 }
 0x7c8   :  { %v4528_v57 = vadd.f32 -1.0, %v5848_v52 }
 0x7c9   :  { %5849 = vpow2.f32 %v1741_v54 }
 0x7ca   :  { %v1758_v15 = vsel %vm1718_vm14, %v1706_v4, %v4528_v57  ;;  %v1710_v36 = vpop.f32.mrf.mxu0 }
 0x7cb   :  { %v1763_v47 = vpack.c.bf16 %v1758_v15, %v1757_v25  ;;  %v1711_v17 = vadd.f32 %v5392_v23, %v1710_v36 }
 0x7cd   :  { %v1728_v18 = vmin.f32 %v1711_v17, 0.0  ;;  %4537 = vmatmul.msk.bf16.gmra.mxu3 %vm1777_vm10, %v1763_v47  ;;  %vm1720_vm3 = vcmp.gt.f32.partialorder %v1711_v17, 0.0 }
 0x7cf   :  { %v1743_v50 = vmul.f32 1.442695, %v1728_v18  ;;  %v5850_v11 = vpop.eup %5849 }
 0x7d0   :  { %v4529_v31 = vadd.f32 -1.0, %v5850_v11 }
 0x7d1   :  { %5851 = vpow2.f32 %v1743_v50 }
 0x7d2   :  { %v1759_v41 = vsel %vm1719_vm15, %v1709_v53, %v4529_v31 }
 0x7d7   :  { %v5852_v39 = vpop.eup %5851 }
 0x7d8   :  { %v4530_v14 = vadd.f32 -1.0, %v5852_v39 }
 0x7da   :  { %v1760_v40 = vsel %vm1720_vm3, %v1711_v17, %v4530_v14 }
 0x7db   :  { %v1764_v34 = vpack.c.bf16 %v1760_v40, %v1759_v41 }
 0x7dd   :  { %4538 = vmatmul.msk.bf16.gmra.mxu3 %vm1777_vm10, %v1764_v34 }
 0x807   :  { %v5396_v6 = vpop.permute.xlu2 %5395 }
 0x808   :  { %v5397_v52 = vunpack.i.l.bf16 %v5396_v6  ;;  %v5398_v39 = vunpack.i.h.bf16 %v5396_v6 }
 0x80f   :  { %v5407_v28 = vpop.permute.xlu2 %5406 }
 0x810   :  { %v5409_v25 = vunpack.i.h.bf16 %v5407_v28  ;;  %v5408_v18 = vunpack.i.l.bf16 %v5407_v28 }
 0x817   :  { %v5423_v50 = vpop.permute.xlu2 %5422 }
 0x820   :  { %v5402_v53 = vpop.permute.xlu1 %5401 }
 0x821   :  { %v5404_v57 = vunpack.i.h.bf16 %v5402_v53  ;;  %v5403_v23 = vunpack.i.l.bf16 %v5402_v53  ;;  %v5413_v31 = vpop.permute.xlu0 %5412 }
 0x822   :  { %v5415_v14 = vunpack.i.h.bf16 %v5413_v31 }
 0x828   :  { %v5418_v15 = vpop.permute.xlu1 %5417 }
 0x830   :  { %v1803_v9 = vpop.f32.mrf.mxu3 }
 0x838   :  { %v1805_v43 = vpop.f32.mrf.mxu3 }
 0x839   :  { %v1823_v60 = vpack.c.bf16 %v1805_v43, %v1803_v9  ;;  %v5414_v9 = vunpack.i.l.bf16 %v5413_v31 }
 0x840   :  { %v1808_v22 = vpop.f32.mrf.mxu3 }
 0x848   :  { %v1810_v44 = vpop.f32.mrf.mxu3 }
 0x849   :  { %v1824_v59 = vpack.c.bf16 %v1810_v44, %v1808_v22  ;;  %v5420_v44 = vunpack.i.h.bf16 %v5418_v15 }
 0x850   :  { %v1813_v30 = vpop.f32.mrf.mxu3 }
 0x858   :  { %v1815_v46 = vpop.f32.mrf.mxu3 }
 0x859   :  { %v1825_v63 = vpack.c.bf16 %v1815_v46, %v1813_v30 }
 0x860   :  { %v1818_v16 = vpop.f32.mrf.mxu3 }
 0x868   :  { %v1820_v48 = vpop.f32.mrf.mxu3 }
 0x869   :  { %v1826_v27 = vpack.c.bf16 %v1820_v48, %v1818_v16 }
 0x86b   :  { %1975 = vmatpush.bf16.msra.mxu0 %v1826_v27  ;;  %v5419_v27 = vunpack.i.l.bf16 %v5418_v15 }
 0x86f   :  { %1976 = vmatpush.bf16.msra.mxu0 %v1825_v63 }
 0x873   :  { %1977 = vmatpush.bf16.msra.mxu0 %v1824_v59  ;;  %v5428_v59 = vpop.permute.xlu1 %5427 }
 0x877   :  { %1978 = vmatpush.bf16.msra.mxu0 %v1823_v60 }
 0x87a   :  { %4571 = vmatmul.msk.bf16.vlgmr.msra.gmra.mxu0 %vm782_vm0, %v5011_v61 }
 0x88a   :  { %4572 = vmatmul.msk.bf16.gmra.mxu0 %vm782_vm0, %v5012_v5 }
 0x89a   :  { %4573 = vmatmul.msk.bf16.gmra.mxu0 %vm782_vm0, %v5013_v62  ;;  %v5425_v62 = vunpack.i.h.bf16 %v5423_v50 }
 0x8aa   :  { %4574 = vmatmul.msk.bf16.gmra.mxu0 %vm782_vm0, %v5014_v45 }
 0x8ba   :  { %4575 = vmatmul.msk.bf16.gmra.mxu0 %vm782_vm0, %v5015_v7  ;;  %v5433_v7 = vpop.permute.xlu2 %5432 }
 0x8bb   :  { %v5434_v53 = vunpack.i.l.bf16 %v5433_v7 }
 0x8ca   :  { %4576 = vmatmul.msk.bf16.gmra.mxu0 %vm782_vm0, %v5016_v0 }
 0x8da   :  { %4577 = vmatmul.msk.bf16.gmra.mxu0 %vm782_vm0, %v5017_v13 }
 0x8ea   :  { %4578 = vmatmul.msk.bf16.gmra.mxu0 %vm782_vm0, %v5018_v38 }
 0x8f7   :  { %v6482_v21 = vpop.f32.mrf.mxu0 }
 0x8ff   :  { %v6484_v55 = vpop.f32.mrf.mxu0 }
 0x907   :  { %v6486_v35 = vpop.f32.mrf.mxu0 }
 0x90f   :  { %v6488_v10 = vpop.f32.mrf.mxu0 }
 0x917   :  { %v6490_v33 = vpop.f32.mrf.mxu0 }
 0x91f   :  { %v6492_v1 = vpop.f32.mrf.mxu0 }
 0x920   :  { %v6520_v28 = vadd.f32 %v5425_v62, %v6492_v1 }
 0x922   :  { %vm2025_vm3 = vcmp.gt.f32.partialorder %v6520_v28, 0.0 }
 0x927   :  { %v1995_v3 = vpop.f32.mrf.mxu0 }
 0x92f   :  { %v1997_v4 = vpop.f32.mrf.mxu0 }
 0x930   :  { %v6513_v45 = vadd.f32 %v5420_v44, %v1997_v4 }
 0x932   :  { %vm2027_vm14 = vcmp.gt.f32.partialorder %v6513_v45, 0.0 }
 0x937   :  { %v2000_v32 = vpop.f32.mrf.mxu0 }
 0x938   :  { %v6510_v60 = vadd.f32 %v5414_v9, %v2000_v32 }
 0x93a   :  { %v2044_v32 = vmin.f32 %v6510_v60, 0.0  ;;  %vm2028_vm13 = vcmp.gt.f32.partialorder %v6510_v60, 0.0 }
 0x93c   :  { %v2068_v15 = vmul.f32 1.442695, %v2044_v32 }
 0x93f   :  { %v2002_v49 = vpop.f32.mrf.mxu0 }
 0x940   :  { %v6507_v46 = vadd.f32 %v5415_v14, %v2002_v49  ;;  %v5424_v49 = vunpack.i.l.bf16 %v5423_v50  ;;  %v6531_v50 = vadd.f32 %v5434_v53, %v6482_v21 }
 0x942   :  { %v2045_v0 = vmin.f32 %v6507_v46, 0.0  ;;  %vm2029_vm12 = vcmp.gt.f32.partialorder %v6507_v46, 0.0 }
 0x947   :  { %v2005_v2 = vpop.f32.mrf.mxu0 }
 0x948   :  { %v6505_v43 = vadd.f32 %v5408_v18, %v2005_v2  ;;  %v5429_v2 = vunpack.i.l.bf16 %v5428_v59 }
 0x94a   :  { %v2046_v61 = vmin.f32 %v6505_v43, 0.0  ;;  %vm2030_vm11 = vcmp.gt.f32.partialorder %v6505_v43, 0.0 }
 0x94c   :  { %v2072_v6 = vmul.f32 1.442695, %v2046_v61 }
 0x94f   :  { %v2007_v56 = vpop.f32.mrf.mxu0 }
 0x950   :  { %v6501_v41 = vadd.f32 %v5409_v25, %v2007_v56  ;;  %v6516_v56 = vadd.f32 %v5419_v27, %v1995_v3  ;;  %v6527_v3 = vadd.f32 %v5424_v49, %v6490_v33  ;;  %v2041_v33 = vmin.f32 %v6520_v28, 0.0 }
 0x952   :  { %v2047_v26 = vmin.f32 %v6501_v41, 0.0  ;;  %v2042_v25 = vmin.f32 %v6516_v56, 0.0  ;;  %vm2031_vm9 = vcmp.gt.f32.partialorder %v6501_v41, 0.0  ;;  %vm2026_vm15 = vcmp.gt.f32.partialorder %v6516_v56, 0.0 }
 0x954   :  { %v2074_v13 = vmul.f32 1.442695, %v2047_v26 }
 0x957   :  { %v2010_v51 = vpop.f32.mrf.mxu0 }
 0x958   :  { %v6498_v17 = vadd.f32 %v5403_v23, %v2010_v51  ;;  %v5435_v51 = vunpack.i.h.bf16 %v5433_v7  ;;  %v6524_v23 = vadd.f32 %v5429_v2, %v6486_v35  ;;  %v6097_v7 = vmov 7  }
 0x959   :  { %5436 = vset.pattern.permute.xlu0 %v6097_v7  ;;  %5442 = vset.pattern.permute.xlu1 %v6097_v7 }
 0x95a   :  { %v2048_v34 = vmin.f32 %v6498_v17, 0.0  ;;  %v6537_v35 = vadd.f32 %v5435_v51, %v6484_v55  ;;  %v2038_v14 = vmin.f32 %v6524_v23, 0.0  ;;  %vm2032_vm8 = vcmp.gt.f32.partialorder %v6498_v17, 0.0 }
 0x95c   :  { %v2076_v63 = vmul.f32 1.442695, %v2048_v34 }
 0x95f   :  { %v2012_v58 = vpop.f32.mrf.mxu0 }
 0x960   :  { %v6494_v36 = vadd.f32 %v5404_v57, %v2012_v58  ;;  %v5430_v58 = vunpack.i.h.bf16 %v5428_v59  ;;  %v2070_v57 = vmul.f32 1.442695, %v2045_v0  ;;  %v2037_v0 = vmin.f32 %v6537_v35, 0.0 }
 0x962   :  { %v2049_v40 = vmin.f32 %v6494_v36, 0.0  ;;  %v6534_v1 = vadd.f32 %v5430_v58, %v6488_v10  ;;  %vm2033_vm6 = vcmp.gt.f32.partialorder %v6494_v36, 0.0  ;;  %v2036_v58 = vmin.f32 %v6531_v50, 0.0 }
 0x964   :  { %v2078_v16 = vmul.f32 1.442695, %v2049_v40  ;;  %v2040_v40 = vmin.f32 %v6527_v3, 0.0  ;;  %v2039_v10 = vmin.f32 %v6534_v1, 0.0 }
 0x967   :  { %v2015_v54 = vpop.f32.mrf.mxu0 }
 0x968   :  { %v6496_v47 = vadd.f32 %v5397_v52, %v2015_v54  ;;  %v2043_v52 = vmin.f32 %v6513_v45, 0.0 }
 0x96a   :  { %v2050_v11 = vmin.f32 %v6496_v47, 0.0  ;;  %vm2034_vm4 = vcmp.gt.f32.partialorder %v6496_v47, 0.0 }
 0x96c   :  { %v2080_v22 = vmul.f32 1.442695, %v2050_v11 }
 0x96e   :  { %5853 = vpow2.f32 %v2080_v22  ;;  %v2064_v22 = vmul.f32 1.442695, %v2042_v25 }
 0x96f   :  { %v2017_v30 = vpop.f32.mrf.mxu0  ;;  %5855 = vpow2.f32 %v2078_v16  ;;  %v2062_v16 = vmul.f32 1.442695, %v2041_v33 }
 0x970   :  { %v2018_v48 = vadd.f32 %v5398_v39, %v2017_v30  ;;  %5857 = vpow2.f32 %v2076_v63  ;;  %v2066_v39 = vmul.f32 1.442695, %v2043_v52  ;;  %v2060_v63 = vmul.f32 1.442695, %v2040_v40 }
 0x972   :  { %v2051_v5 = vmin.f32 %v2018_v48, 0.0  ;;  %vm2035_vm5 = vcmp.gt.f32.partialorder %v2018_v48, 0.0 }
 0x974   :  { %v2082_v38 = vmul.f32 1.442695, %v2051_v5  ;;  %v5854_v4 = vpop.eup %5853  ;;  %v5145_v5 = vld [vmem:[#allocation2 + $0x398] sm:$0xff]  }
 0x975   :  { %v5856_v54 = vpop.eup %5855  ;;  %v4593_v11 = vadd.f32 -1.0, %v5854_v4  ;;  %v2056_v4 = vmul.f32 1.442695, %v2038_v14 }
 0x976   :  { %5859 = vpow2.f32 %v2082_v38  ;;  %v5858_v18 = vpop.eup %5857  ;;  %v4592_v34 = vadd.f32 -1.0, %v5856_v54  ;;  %v2054_v54 = vmul.f32 1.442695, %v2037_v0  ;;  %v5021_v0 = vld [vmem:[#allocation2 + $0x1e0] sm:$0xff] }
 0x977   :  { %5861 = vpow2.f32 %v2074_v13  ;;  %v4591_v55 = vadd.f32 -1.0, %v5858_v18  ;;  %v2114_v44 = vsel %vm2034_vm4, %v6496_v47, %v4593_v11  ;;  %v5123_v47 = vunpack.c.l.bf16 %v5145_v5 }
 0x978   :  { %5863 = vpow2.f32 %v2072_v6  ;;  %v2113_v61 = vsel %vm2033_vm6, %v6494_v36, %v4592_v34  ;;  %v2058_v13 = vmul.f32 1.442695, %v2039_v10  ;;  %v2052_v11 = vmul.f32 1.442695, %v2036_v58 }
 0x979   :  { %5865 = vpow2.f32 %v2070_v57  ;;  %v2112_v49 = vsel %vm2032_vm8, %v6498_v17, %v4591_v55  ;;  %v5146_v55 = vld [vmem:[#allocation2 + $0x3a0] sm:$0xff]   ;;  %vm2024_vm4 = vcmp.gt.f32.partialorder %v6527_v3, 0.0  ;;  %vm2022_vm6 = vcmp.gt.f32.partialorder %v6524_v23, 0.0 }
 0x97a   :  { %5867 = vpow2.f32 %v2068_v15  ;;  %v2122_v36 = vpack.c.bf16 %v2113_v61, %v2112_v49  ;;  %vm2021_vm8 = vcmp.gt.f32.partialorder %v6537_v35, 0.0 }
 0x97b   :  { %5869 = vpow2.f32 %v2066_v39 }
 0x97c   :  { %v5860_v31 = vpop.eup %5859  ;;  %5871 = vpow2.f32 %v2064_v22 }
 0x97d   :  { %v4594_v9 = vadd.f32 -1.0, %v5860_v31  ;;  %v5862_v21 = vpop.eup %5861  ;;  %5873 = vpow2.f32 %v2062_v16 }
 0x97e   :  { %v5864_v26 = vpop.eup %5863  ;;  %v4590_v59 = vadd.f32 -1.0, %v5862_v21  ;;  %5875 = vpow2.f32 %v2060_v63 }
 0x97f   :  { %v2115_v30 = vsel %vm2035_vm5, %v2018_v48, %v4594_v9  ;;  %v5866_v62 = vpop.eup %5865  ;;  %v5124_v48 = vunpack.c.h.bf16 %v5145_v5  ;;  %v4589_v38 = vadd.f32 -1.0, %v5864_v26  ;;  %5877 = vpow2.f32 %v2058_v13 }
 0x980   :  { %v2123_v27 = vpack.c.bf16 %v2115_v30, %v2114_v44  ;;  %v5868_v2 = vpop.eup %5867  ;;  %v4588_v6 = vadd.f32 -1.0, %v5866_v62  ;;  %v2111_v51 = vsel %vm2031_vm9, %v6501_v41, %v4590_v59  ;;  %5879 = vpow2.f32 %v2056_v4 }
 0x981   :  { %v6551_v32 = vpack.i.bf16 %v5124_v48, %v5123_v47  ;;  %v5870_v53 = vpop.eup %5869  ;;  %v4587_v17 = vadd.f32 -1.0, %v5868_v2  ;;  %v2110_v52 = vsel %vm2030_vm11, %v6505_v43, %v4589_v38  ;;  %5881 = vpow2.f32 %v2054_v54  ;;  %v5020_v48 = vld [vmem:[#allocation2 + $0x1d8] sm:$0xff] }
 0x982   :  { %2168 = vmatpush.bf16.msrb.mxu2 %v2123_v27  ;;  %v5872_v57 = vpop.eup %5871  ;;  %v2121_v25 = vpack.c.bf16 %v2111_v51, %v2110_v52  ;;  %v4586_v41 = vadd.f32 -1.0, %v5870_v53  ;;  %v2109_v15 = vsel %vm2029_vm12, %v6507_v46, %v4588_v6  ;;  %5883 = vpow2.f32 %v2052_v11 }
 0x983   :  { %5438 = vperm.xlu0 %5436, %v6551_v32   ;;  %v5874_v18 = vpop.eup %5873  ;;  %v4585_v31 = vadd.f32 -1.0, %v5872_v57  ;;  %v2108_v33 = vsel %vm2028_vm13, %v6510_v60, %v4587_v17  ;;  %v5128_v30 = vunpack.c.h.bf16 %v5146_v55  ;;  %vm2023_vm5 = vcmp.gt.f32.partialorder %v6534_v1, 0.0 }
 0x984   :  { %v5876_v39 = vpop.eup %5875  ;;  %v2120_v43 = vpack.c.bf16 %v2109_v15, %v2108_v33  ;;  %v4584_v14 = vadd.f32 -1.0, %v5874_v18  ;;  %v2107_v40 = vsel %vm2027_vm14, %v6513_v45, %v4586_v41  ;;  %v5127_v45 = vunpack.c.l.bf16 %v5146_v55  ;;  %v5022_v33 = vld [vmem:[#allocation2 + $0x1e8] sm:$0xff] }
 0x985   :  { %v5878_v34 = vpop.eup %5877  ;;  %v4583_v46 = vadd.f32 -1.0, %v5876_v39  ;;  %v2106_v9 = vsel %vm2026_vm15, %v6516_v56, %v4585_v31  ;;  %vm2020_vm9 = vcmp.gt.f32.partialorder %v6531_v50, 0.0  ;;  %v5023_v39 = vld [vmem:[#allocation2 + $0x1f0] sm:$0xff] }
 0x986   :  { %2169 = vmatpush.bf16.msrb.mxu2 %v2122_v36  ;;  %v5880_v21 = vpop.eup %5879  ;;  %v2119_v60 = vpack.c.bf16 %v2107_v40, %v2106_v9  ;;  %v4582_v22 = vadd.f32 -1.0, %v5878_v34  ;;  %v2105_v10 = vsel %vm2025_vm3, %v6520_v28, %v4584_v14  ;;  %v6571_v63 = vpack.i.bf16 %v5128_v30, %v5127_v45  ;;  %v5029_v14 = vld [vmem:[#allocation2 + $0x220] sm:$0xff]  ;;  %v5026_v34 = vld [vmem:[#allocation2 + $0x208] sm:$0xff]  ;;  %v5028_v9 = vld [vmem:[#allocation2 + $0x218] sm:$0xff] }
 0x987   :  { %v5882_v44 = vpop.eup %5881  ;;  %v4581_v26 = vadd.f32 -1.0, %v5880_v21  ;;  %v2104_v16 = vsel %vm2024_vm4, %v6527_v3, %v4583_v46  ;;  %v5025_v40 = vld [vmem:[#allocation2 + $0x200] sm:$0xff]  ;;  %v5027_v46 = vld [vmem:[#allocation2 + $0x210] sm:$0xff] }
 0x988   :  { %v5884_v27 = vpop.eup %5883  ;;  %v2118_v56 = vpack.c.bf16 %v2105_v10, %v2104_v16  ;;  %v4580_v59 = vadd.f32 -1.0, %v5882_v44  ;;  %v2103_v61 = vsel %vm2023_vm5, %v6534_v1, %v4582_v22  ;;  %5444 = vperm.xlu1 %5442, %v6571_v63   ;;  %v5019_v1 = vld [vmem:[#allocation2 + $0x1d0] sm:$0xff] }
 0x989   :  { %v4579_v28 = vadd.f32 -1.0, %v5884_v27  ;;  %v2102_v5 = vsel %vm2022_vm6, %v6524_v23, %v4581_v26 }
 0x98a   :  { %2170 = vmatpush.bf16.msrb.mxu2 %v2121_v25  ;;  %v2117_v3 = vpack.c.bf16 %v2103_v61, %v2102_v5  ;;  %v2101_v62 = vsel %vm2021_vm8, %v6537_v35, %v4580_v59  ;;  %v6098_v25 = vmov 8  }
 0x98b   :  { %v2100_v7 = vsel %vm2020_vm9, %v6531_v50, %v4579_v28  ;;  %5448 = vset.pattern.permute.xlu2 %v6098_v25  ;;  %5465 = vset.pattern.permute.xlu0 %v6098_v25 }
 0x98c   :  { %v2116_v47 = vpack.c.bf16 %v2101_v62, %v2100_v7  ;;  %5450 = vperm.xlu2 %5448, %v6136_v19   ;;  %5467 = vperm.xlu0 %5465, %v6133_v12  }
 0x98e   :  { %2171 = vmatpush.bf16.msrb.mxu2 %v2120_v43  ;;  %v5024_v43 = vld [vmem:[#allocation2 + $0x1f8] sm:$0xff] }
 0x990   :  { %5454 = vset.pattern.permute.xlu1 %v6098_v25 }
 0x991   :  { %5456 = vperm.xlu1 %5454, %v6142_v24  }
 0x992   :  { %2172 = vmatpush.bf16.msrb.mxu2 %v2119_v60 }
 0x994   :  { %5461 = vperm.xlu2 %5448, %v6130_v8  }
 0x996   :  { %2173 = vmatpush.bf16.msrb.mxu2 %v2118_v56 }
 0x999   :  { %5472 = vperm.xlu1 %5454, %v6150_v37  }
 0x99a   :  { %2174 = vmatpush.bf16.msrb.mxu2 %v2117_v3 }
 0x99c   :  { %5477 = vperm.xlu2 %5448, %v6153_v42  }
 0x99e   :  { %2175 = vmatpush.bf16.msrb.mxu2 %v2116_v47 }
 0x9a1   :  { %2176 = vmatmul.bf16.vlgmr.msrb.gmra.mxu2 %v5019_v1  ;;  %5482 = vperm.xlu1 %5454, %v6145_v29  }
 0x9a2   :  { %2210 = vmatpush.bf16.msra.mxu2 %v5021_v0 }
 0x9a4   :  { %5487 = vperm.xlu2 %5448, %v6139_v20  }
 0x9b1   :  { %2181 = vmatmul.bf16.gmra.mxu2 %v5020_v48 }
 0x9e6   :  { %v5451_v30 = vpop.permute.xlu2 %5450 }
 0x9e7   :  { %v5453_v26 = vunpack.i.h.bf16 %v5451_v30  ;;  %v5452_v16 = vunpack.i.l.bf16 %v5451_v30 }
 0x9f5   :  { %v5439_v23 = vpop.permute.xlu0 %5438 }
 0x9f6   :  { %v5441_v38 = vunpack.i.h.bf16 %v5439_v23  ;;  %v5440_v49 = vunpack.i.l.bf16 %v5439_v23 }
 0x9fa   :  { %v5445_v50 = vpop.permute.xlu1 %5444 }
 0x9fb   :  { %v5447_v53 = vunpack.i.h.bf16 %v5445_v50  ;;  %v5446_v58 = vunpack.i.l.bf16 %v5445_v50 }
 0xa24   :  { %v2177_v13 = vpop.f32.mrf.mxu2 }
 0xa25   :  { %v2178_v36 = vadd.f32 %v5440_v49, %v2177_v13 }
 0xa2c   :  { %v2179_v2 = vpop.f32.mrf.mxu2 }
 0xa2d   :  { %v2180_v35 = vadd.f32 %v5441_v38, %v2179_v2 }
 0xa2f   :  { %v2187_v6 = vpack.c.bf16 %v2180_v35, %v2178_v36  ;;  %v5457_v35 = vpop.permute.xlu1 %5456 }
 0xa31   :  { %4607 = vmatmul.msk.bf16.vlgmr.msra.gmra.mxu2 %vm246_vm1, %v2187_v6 }
 0xa34   :  { %v2182_v51 = vpop.f32.mrf.mxu2 }
 0xa35   :  { %v2183_v17 = vadd.f32 %v5446_v58, %v2182_v51  ;;  %v5462_v51 = vpop.permute.xlu2 %5461 }
 0xa36   :  { %v5464_v50 = vunpack.i.h.bf16 %v5462_v51  ;;  %v5463_v58 = vunpack.i.l.bf16 %v5462_v51 }
 0xa3c   :  { %v2184_v4 = vpop.f32.mrf.mxu2 }
 0xa3d   :  { %v2185_v52 = vadd.f32 %v5447_v53, %v2184_v4  ;;  %v5458_v53 = vunpack.i.l.bf16 %v5457_v35  ;;  %v5473_v4 = vpop.permute.xlu1 %5472 }
 0xa3f   :  { %v2188_v57 = vpack.c.bf16 %v2185_v52, %v2183_v17  ;;  %v5468_v17 = vpop.permute.xlu0 %5467 }
 0xa41   :  { %4608 = vmatmul.msk.bf16.gmra.mxu2 %vm246_vm1, %v2188_v57  ;;  %v5470_v57 = vunpack.i.h.bf16 %v5468_v17 }
 0xa45   :  { %v5483_v30 = vpop.permute.xlu1 %5482 }
 0xab4   :  { %v2212_v54 = vpop.f32.mrf.mxu2 }
 0xabc   :  { %v2214_v41 = vpop.f32.mrf.mxu2 }
 0xabd   :  { %v2222_v31 = vpack.c.bf16 %v2214_v41, %v2212_v54 }
 0xac4   :  { %v2217_v15 = vpop.f32.mrf.mxu2 }
 0xacc   :  { %v2219_v18 = vpop.f32.mrf.mxu2 }
 0xacd   :  { %v2223_v11 = vpack.c.bf16 %v2219_v18, %v2217_v15  ;;  %v5478_v15 = vpop.permute.xlu2 %5477  ;;  %v5469_v18 = vunpack.i.l.bf16 %v5468_v17 }
 0xacf   :  { %2374 = vmatpush.bf16.msra.mxu1 %v2223_v11  ;;  %5152 = vmatpush.bf16.msrb.mxu2 %v2223_v11 }
 0xad3   :  { %2375 = vmatpush.bf16.msra.mxu1 %v2222_v31  ;;  %5153 = vmatpush.bf16.msrb.mxu2 %v2222_v31  ;;  %v5459_v31 = vunpack.i.h.bf16 %v5457_v35 }
 0xad6   :  { %4641 = vmatmul.msk.bf16.vlgmr.msra.gmra.mxu1 %vm1257_vm2, %v5022_v33  ;;  %4648 = vmatmul.msk.bf16.vlgmr.msrb.gmra.mxu2 %vm1257_vm2, %v5029_v14  ;;  %v5475_v33 = vunpack.i.h.bf16 %v5473_v4 }
 0xae6   :  { %4642 = vmatmul.msk.bf16.gmra.mxu1 %vm1257_vm2, %v5023_v39 }
 0xaf6   :  { %4643 = vmatmul.msk.bf16.gmra.mxu1 %vm1257_vm2, %v5024_v43 }
 0xb06   :  { %4644 = vmatmul.msk.bf16.gmra.mxu1 %vm1257_vm2, %v5025_v40  ;;  %v5474_v40 = vunpack.i.l.bf16 %v5473_v4 }
 0xb16   :  { %4645 = vmatmul.msk.bf16.gmra.mxu1 %vm1257_vm2, %v5026_v34 }
 0xb26   :  { %4646 = vmatmul.msk.bf16.gmra.mxu1 %vm1257_vm2, %v5027_v46 }
 0xb36   :  { %4647 = vmatmul.msk.bf16.gmra.mxu1 %vm1257_vm2, %v5028_v9  ;;  %v5480_v9 = vunpack.i.h.bf16 %v5478_v15 }
 0xb53   :  { %v6599_v21 = vpop.f32.mrf.mxu1 }
 0xb59   :  { %v2412_v44 = vpop.f32.mrf.mxu2 }
 0xb5a   :  { %v2413_v59 = vadd.f32 %v5452_v16, %v2412_v44 }
 0xb5b   :  { %v6601_v60 = vpop.f32.mrf.mxu1 }
 0xb5c   :  { %v2447_v28 = vmin.f32 %v2413_v59, 0.0  ;;  %vm2431_vm11 = vcmp.gt.f32.partialorder %v2413_v59, 0.0 }
 0xb5e   :  { %v2477_v3 = vmul.f32 1.442695, %v2447_v28 }
 0xb60   :  { %5885 = vpow2.f32 %v2477_v3 }
 0xb61   :  { %v2414_v27 = vpop.f32.mrf.mxu2 }
 0xb62   :  { %v2415_v61 = vadd.f32 %v5453_v26, %v2414_v27 }
 0xb63   :  { %v6603_v22 = vpop.f32.mrf.mxu1 }
 0xb64   :  { %v2448_v5 = vmin.f32 %v2415_v61, 0.0  ;;  %vm2432_vm12 = vcmp.gt.f32.partialorder %v2415_v61, 0.0 }
 0xb66   :  { %v2479_v62 = vmul.f32 1.442695, %v2448_v5  ;;  %v5886_v47 = vpop.eup %5885 }
 0xb67   :  { %v4663_v1 = vadd.f32 -1.0, %v5886_v47  ;;  %v5485_v47 = vunpack.i.h.bf16 %v5483_v30 }
 0xb68   :  { %5887 = vpow2.f32 %v2479_v62 }
 0xb69   :  { %v2511_v0 = vsel %vm2431_vm11, %v2413_v59, %v4663_v1  ;;  %v5484_v1 = vunpack.i.l.bf16 %v5483_v30 }
 0xb6b   :  { %v6605_v10 = vpop.f32.mrf.mxu1  ;;  %v6639_v35 = vadd.f32 %v5484_v1, %v6603_v22 }
 0xb6e   :  { %v5888_v48 = vpop.eup %5887 }
 0xb6f   :  { %v4664_v13 = vadd.f32 -1.0, %v5888_v48 }
 0xb71   :  { %v2512_v38 = vsel %vm2432_vm12, %v2415_v61, %v4664_v13  ;;  %v5479_v61 = vunpack.i.l.bf16 %v5478_v15 }
 0xb72   :  { %v2520_v49 = vpack.c.bf16 %v2512_v38, %v2511_v0  ;;  %v5488_v0 = vpop.permute.xlu2 %5487 }
 0xb73   :  { %v6607_v55 = vpop.f32.mrf.mxu1 }
 0xb74   :  { %2553 = vmatpush.bf16.msra.mxu3 %v2520_v49  ;;  %v6635_v38 = vadd.f32 %v5479_v61, %v6607_v55 }
 0xb76   :  { %v2437_v55 = vmin.f32 %v6635_v38, 0.0  ;;  %vm2421_vm11 = vcmp.gt.f32.partialorder %v6635_v38, 0.0 }
 0xb7b   :  { %v6609_v45 = vpop.f32.mrf.mxu1 }
 0xb7c   :  { %v6631_v48 = vadd.f32 %v5480_v9, %v6609_v45 }
 0xb7e   :  { %v2438_v51 = vmin.f32 %v6631_v48, 0.0  ;;  %vm2422_vm9 = vcmp.gt.f32.partialorder %v6631_v48, 0.0 }
 0xb83   :  { %v2392_v56 = vpop.f32.mrf.mxu1 }
 0xb84   :  { %v6627_v5 = vadd.f32 %v5474_v40, %v2392_v56 }
 0xb86   :  { %v2439_v56 = vmin.f32 %v6627_v5, 0.0  ;;  %vm2423_vm8 = vcmp.gt.f32.partialorder %v6627_v5, 0.0 }
 0xb8b   :  { %v2394_v7 = vpop.f32.mrf.mxu1 }
 0xb8c   :  { %v6624_v26 = vadd.f32 %v5475_v33, %v2394_v7 }
 0xb8e   :  { %v2440_v7 = vmin.f32 %v6624_v26, 0.0  ;;  %vm2424_vm6 = vcmp.gt.f32.partialorder %v6624_v26, 0.0 }
 0xb93   :  { %v2397_v23 = vpop.f32.mrf.mxu1 }
 0xb94   :  { %v6622_v34 = vadd.f32 %v5469_v18, %v2397_v23  ;;  %v2459_v18 = vmul.f32 1.442695, %v2438_v51 }
 0xb96   :  { %v2441_v3 = vmin.f32 %v6622_v34, 0.0  ;;  %vm2425_vm5 = vcmp.gt.f32.partialorder %v6622_v34, 0.0 }
 0xb98   :  { %v2465_v49 = vmul.f32 1.442695, %v2441_v3 }
 0xb9b   :  { %v2399_v2 = vpop.f32.mrf.mxu1 }
 0xb9c   :  { %v6618_v39 = vadd.f32 %v5470_v57, %v2399_v2  ;;  %v5490_v2 = vunpack.i.h.bf16 %v5488_v0 }
 0xb9e   :  { %v2442_v16 = vmin.f32 %v6618_v39, 0.0  ;;  %v6650_v22 = vadd.f32 %v5490_v2, %v6601_v60  ;;  %vm2426_vm4 = vcmp.gt.f32.partialorder %v6618_v39, 0.0 }
 0xba0   :  { %v2467_v13 = vmul.f32 1.442695, %v2442_v16  ;;  %v2434_v60 = vmin.f32 %v6650_v22, 0.0 }
 0xba3   :  { %v2402_v36 = vpop.f32.mrf.mxu1 }
 0xba4   :  { %v6615_v41 = vadd.f32 %v5463_v58, %v2402_v36  ;;  %v5489_v36 = vunpack.i.l.bf16 %v5488_v0  ;;  %v2461_v58 = vmul.f32 1.442695, %v2439_v56 }
 0xba6   :  { %v2443_v14 = vmin.f32 %v6615_v41, 0.0  ;;  %v6647_v17 = vadd.f32 %v5489_v36, %v6599_v21  ;;  %v6099_v21 = vmov 9   ;;  %vm2427_vm3 = vcmp.gt.f32.partialorder %v6615_v41, 0.0 }
 0xba7   :  { %5491 = vset.pattern.permute.xlu0 %v6099_v21  ;;  %5497 = vset.pattern.permute.xlu1 %v6099_v21 }
 0xba8   :  { %v2469_v28 = vmul.f32 1.442695, %v2443_v14  ;;  %5493 = vperm.xlu0 %5491, %v6551_v32   ;;  %5499 = vperm.xlu1 %5497, %v6571_v63  }
 0xbab   :  { %v2404_v6 = vpop.f32.mrf.mxu1 }
 0xbac   :  { %v6611_v54 = vadd.f32 %v5464_v50, %v2404_v6  ;;  %v6642_v6 = vadd.f32 %v5485_v47, %v6605_v10  ;;  %v2463_v50 = vmul.f32 1.442695, %v2440_v7  ;;  %v2435_v10 = vmin.f32 %v6639_v35, 0.0 }
 0xbae   :  { %v2444_v43 = vmin.f32 %v6611_v54, 0.0  ;;  %v2436_v15 = vmin.f32 %v6642_v6, 0.0  ;;  %vm2428_vm15 = vcmp.gt.f32.partialorder %v6611_v54, 0.0  ;;  %v2453_v3 = vmul.f32 1.442695, %v2435_v10 }
 0xbaf   :  { %vm2420_vm12 = vcmp.gt.f32.partialorder %v6642_v6, 0.0 }
 0xbb0   :  { %v2471_v27 = vmul.f32 1.442695, %v2444_v43  ;;  %v2457_v43 = vmul.f32 1.442695, %v2437_v55 }
 0xbb3   :  { %v2407_v52 = vpop.f32.mrf.mxu1 }
 0xbb4   :  { %v6613_v25 = vadd.f32 %v5458_v53, %v2407_v52 }
 0xbb6   :  { %v2445_v11 = vmin.f32 %v6613_v25, 0.0  ;;  %vm2429_vm13 = vcmp.gt.f32.partialorder %v6613_v25, 0.0 }
 0xbb8   :  { %v2473_v46 = vmul.f32 1.442695, %v2445_v11 }
 0xbba   :  { %5889 = vpow2.f32 %v2473_v46 }
 0xbbb   :  { %v2409_v44 = vpop.f32.mrf.mxu1  ;;  %5891 = vpow2.f32 %v2471_v27 }
 0xbbc   :  { %v2410_v59 = vadd.f32 %v5459_v31, %v2409_v44  ;;  %5893 = vpow2.f32 %v2469_v28  ;;  %v2455_v44 = vmul.f32 1.442695, %v2436_v15  ;;  %v2433_v28 = vmin.f32 %v6647_v17, 0.0 }
 0xbbe   :  { %v2446_v62 = vmin.f32 %v2410_v59, 0.0  ;;  %vm2430_vm14 = vcmp.gt.f32.partialorder %v2410_v59, 0.0  ;;  %v2449_v7 = vmul.f32 1.442695, %v2433_v28 }
 0xbc0   :  { %v2475_v23 = vmul.f32 1.442695, %v2446_v62  ;;  %v5890_v45 = vpop.eup %5889  ;;  %v2451_v62 = vmul.f32 1.442695, %v2434_v60 }
 0xbc1   :  { %v5892_v53 = vpop.eup %5891  ;;  %v4661_v52 = vadd.f32 -1.0, %v5890_v45 }
 0xbc2   :  { %5895 = vpow2.f32 %v2475_v23  ;;  %v5894_v4 = vpop.eup %5893  ;;  %v4660_v11 = vadd.f32 -1.0, %v5892_v53 }
 0xbc3   :  { %5897 = vpow2.f32 %v2467_v13  ;;  %v4659_v14 = vadd.f32 -1.0, %v5894_v4  ;;  %v2509_v40 = vsel %vm2429_vm13, %v6613_v25, %v4661_v52  ;;  %vm2419_vm13 = vcmp.gt.f32.partialorder %v6639_v35, 0.0 }
 0xbc4   :  { %5899 = vpow2.f32 %v2465_v49  ;;  %v2508_v27 = vsel %vm2428_vm15, %v6611_v54, %v4660_v11  ;;  %vm2417_vm15 = vcmp.gt.f32.partialorder %v6647_v17, 0.0  ;;  %v5030_v11 = vld [vmem:[#allocation2 + $0x228] sm:$0xff] }
 0xbc5   :  { %5901 = vpow2.f32 %v2463_v50  ;;  %v2507_v32 = vsel %vm2427_vm3, %v6615_v41, %v4659_v14 }
 0xbc6   :  { %5903 = vpow2.f32 %v2461_v58  ;;  %v2518_v47 = vpack.c.bf16 %v2508_v27, %v2507_v32 }
 0xbc7   :  { %5905 = vpow2.f32 %v2459_v18 }
 0xbc8   :  { %v5896_v57 = vpop.eup %5895  ;;  %5907 = vpow2.f32 %v2457_v43 }
 0xbc9   :  { %v4662_v31 = vadd.f32 -1.0, %v5896_v57  ;;  %v5898_v33 = vpop.eup %5897  ;;  %5909 = vpow2.f32 %v2455_v44 }
 0xbca   :  { %v5900_v9 = vpop.eup %5899  ;;  %v4658_v16 = vadd.f32 -1.0, %v5898_v33  ;;  %5911 = vpow2.f32 %v2453_v3 }
 0xbcb   :  { %v2510_v46 = vsel %vm2430_vm14, %v2410_v59, %v4662_v31  ;;  %v5902_v61 = vpop.eup %5901  ;;  %v4657_v25 = vadd.f32 -1.0, %v5900_v9  ;;  %5913 = vpow2.f32 %v2451_v62  ;;  %vm2418_vm14 = vcmp.gt.f32.partialorder %v6650_v22, 0.0  ;;  %v5032_v31 = vld [vmem:[#allocation2 + $0x238] sm:$0xff] }
 0xbcc   :  { %v2519_v30 = vpack.c.bf16 %v2510_v46, %v2509_v40  ;;  %v5904_v59 = vpop.eup %5903  ;;  %v4656_v1 = vadd.f32 -1.0, %v5902_v61  ;;  %v2506_v54 = vsel %vm2426_vm4, %v6618_v39, %v4658_v16  ;;  %5915 = vpow2.f32 %v2449_v7  ;;  %2619 = vmatpush.bf16.msra.mxu2 %v5032_v31 }
 0xbcd   :  { %v5906_v0 = vpop.eup %5905  ;;  %v4655_v13 = vadd.f32 -1.0, %v5904_v59  ;;  %v2505_v23 = vsel %vm2425_vm5, %v6622_v34, %v4657_v25 }
 0xbce   :  { %2554 = vmatpush.bf16.msra.mxu3 %v2519_v30  ;;  %v5908_v56 = vpop.eup %5907  ;;  %v2517_v41 = vpack.c.bf16 %v2506_v54, %v2505_v23  ;;  %v4654_v49 = vadd.f32 -1.0, %v5906_v0  ;;  %v2504_v2 = vsel %vm2424_vm6, %v6624_v26, %v4656_v1 }
 0xbcf   :  { %v5910_v36 = vpop.eup %5909  ;;  %v4653_v39 = vadd.f32 -1.0, %v5908_v56  ;;  %v2503_v45 = vsel %vm2423_vm8, %v6627_v5, %v4655_v13 }
 0xbd0   :  { %v5912_v51 = vpop.eup %5911  ;;  %v2516_v34 = vpack.c.bf16 %v2504_v2, %v2503_v45  ;;  %v4652_v50 = vadd.f32 -1.0, %v5910_v36  ;;  %v2502_v53 = vsel %vm2422_vm9, %v6631_v48, %v4654_v49 }
 0xbd1   :  { %v5914_v55 = vpop.eup %5913  ;;  %v4651_v26 = vadd.f32 -1.0, %v5912_v51  ;;  %v2501_v58 = vsel %vm2421_vm11, %v6635_v38, %v4653_v39 }
 0xbd2   :  { %2555 = vmatpush.bf16.msra.mxu3 %v2518_v47  ;;  %v5916_v4 = vpop.eup %5915  ;;  %v2515_v5 = vpack.c.bf16 %v2502_v53, %v2501_v58  ;;  %v4650_v52 = vadd.f32 -1.0, %v5914_v55  ;;  %v2500_v57 = vsel %vm2420_vm12, %v6642_v6, %v4652_v50  ;;  %v5031_v6 = vld [vmem:[#allocation2 + $0x230] sm:$0xff] }
 0xbd3   :  { %v4649_v48 = vadd.f32 -1.0, %v5916_v4  ;;  %v2499_v10 = vsel %vm2419_vm13, %v6639_v35, %v4651_v26  ;;  %v5033_v4 = vld [vmem:[#allocation2 + $0x240] sm:$0xff] }
 0xbd4   :  { %v2514_v15 = vpack.c.bf16 %v2500_v57, %v2499_v10  ;;  %v2498_v38 = vsel %vm2418_vm14, %v6650_v22, %v4650_v52  ;;  %v5035_v52 = vld [vmem:[#allocation2 + $0x250] sm:$0xff]  ;;  %v5036_v57 = vld [vmem:[#allocation2 + $0x258] sm:$0xff] }
 0xbd5   :  { %v2497_v63 = vsel %vm2417_vm15, %v6647_v17, %v4649_v48 }
 0xbd6   :  { %2556 = vmatpush.bf16.msra.mxu3 %v2517_v41  ;;  %v2513_v18 = vpack.c.bf16 %v2498_v38, %v2497_v63 }
 0xbda   :  { %2557 = vmatpush.bf16.msra.mxu3 %v2516_v34  ;;  %v6100_v34 = vmov 10  }
 0xbdb   :  { %5520 = vset.pattern.permute.xlu0 %v6100_v34  ;;  %5503 = vset.pattern.permute.xlu2 %v6100_v34 }
 0xbdc   :  { %5522 = vperm.xlu0 %5520, %v6139_v20   ;;  %5509 = vset.pattern.permute.xlu1 %v6100_v34 }
 0xbdd   :  { %5505 = vperm.xlu2 %5503, %v6150_v37   ;;  %5511 = vperm.xlu1 %5509, %v6153_v42  }
 0xbde   :  { %2558 = vmatpush.bf16.msra.mxu3 %v2515_v5  ;;  %v5034_v5 = vld [vmem:[#allocation2 + $0x248] sm:$0xff] }
 0xbe2   :  { %2559 = vmatpush.bf16.msra.mxu3 %v2514_v15 }
 0xbe5   :  { %5516 = vperm.xlu2 %5503, %v6145_v29  }
 0xbe6   :  { %2560 = vmatpush.bf16.msra.mxu3 %v2513_v18 }
 0xbe9   :  { %2561 = vmatmul.bf16.vlgmr.msra.gmra.mxu3 %v5030_v11 }
 0xbf9   :  { %2566 = vmatmul.bf16.gmra.mxu3 %v5031_v6 }
 0xc1a   :  { %v5494_v33 = vpop.permute.xlu0 %5493  ;;  %v5500_v9 = vpop.permute.xlu1 %5499 }
 0xc1b   :  { %v5495_v35 = vunpack.i.l.bf16 %v5494_v33  ;;  %v5496_v14 = vunpack.i.h.bf16 %v5494_v33  ;;  %v5501_v30 = vunpack.i.l.bf16 %v5500_v9  ;;  %v5502_v32 = vunpack.i.h.bf16 %v5500_v9 }
 0xc37   :  { %v5506_v18 = vpop.permute.xlu2 %5505 }
 0xc38   :  { %v5507_v31 = vunpack.i.l.bf16 %v5506_v18 }
 0xc4f   :  { %v5512_v6 = vpop.permute.xlu1 %5511 }
 0xc50   :  { %v5514_v33 = vunpack.i.h.bf16 %v5512_v6 }
 0xc6c   :  { %v2562_v43 = vpop.f32.mrf.mxu3 }
 0xc6d   :  { %v2563_v21 = vadd.f32 %v5495_v35, %v2562_v43  ;;  %v5513_v35 = vunpack.i.l.bf16 %v5512_v6  ;;  %v5517_v43 = vpop.permute.xlu2 %5516 }
 0xc6e   :  { %v5518_v9 = vunpack.i.l.bf16 %v5517_v43 }
 0xc6f   :  { %v2576_v60 = vmin.f32 %v2563_v21, 0.0  ;;  %vm2572_vm3 = vcmp.gt.f32.partialorder %v2563_v21, 0.0 }
 0xc71   :  { %v2580_v22 = vmul.f32 1.442695, %v2576_v60  ;;  %v5519_v60 = vunpack.i.h.bf16 %v5517_v43 }
 0xc73   :  { %5917 = vpow2.f32 %v2580_v22 }
 0xc74   :  { %v2564_v40 = vpop.f32.mrf.mxu3 }
 0xc75   :  { %v2565_v46 = vadd.f32 %v5496_v14, %v2564_v40 }
 0xc77   :  { %v2577_v17 = vmin.f32 %v2565_v46, 0.0  ;;  %vm2573_vm4 = vcmp.gt.f32.partialorder %v2565_v46, 0.0 }
 0xc79   :  { %v2582_v44 = vmul.f32 1.442695, %v2577_v17  ;;  %v5918_v27 = vpop.eup %5917 }
 0xc7a   :  { %v4673_v3 = vadd.f32 -1.0, %v5918_v27 }
 0xc7b   :  { %5919 = vpow2.f32 %v2582_v44 }
 0xc7c   :  { %v2567_v16 = vpop.f32.mrf.mxu3  ;;  %v2592_v47 = vsel %vm2572_vm3, %v2563_v21, %v4673_v3 }
 0xc7d   :  { %v2568_v61 = vadd.f32 %v5501_v30, %v2567_v16  ;;  %v5508_v30 = vunpack.i.h.bf16 %v5506_v18 }
 0xc7f   :  { %v2578_v28 = vmin.f32 %v2568_v61, 0.0  ;;  %vm2574_vm5 = vcmp.gt.f32.partialorder %v2568_v61, 0.0 }
 0xc81   :  { %v5920_v25 = vpop.eup %5919  ;;  %v2584_v62 = vmul.f32 1.442695, %v2578_v28 }
 0xc82   :  { %v4674_v59 = vadd.f32 -1.0, %v5920_v25 }
 0xc83   :  { %5921 = vpow2.f32 %v2584_v62  ;;  %v6101_v62 = vmov 11  }
 0xc84   :  { %v2593_v1 = vsel %vm2573_vm4, %v2565_v46, %v4674_v59  ;;  %v2569_v54 = vpop.f32.mrf.mxu3  ;;  %v5523_v46 = vpop.permute.xlu0 %5522  ;;  %5526 = vset.pattern.permute.xlu1 %v6101_v62  ;;  %5532 = vset.pattern.permute.xlu2 %v6101_v62 }
 0xc85   :  { %v2596_v0 = vpack.c.bf16 %v2593_v1, %v2592_v47  ;;  %v2570_v7 = vadd.f32 %v5502_v32, %v2569_v54  ;;  %v5525_v44 = vunpack.i.h.bf16 %v5523_v46  ;;  %5528 = vperm.xlu1 %5526, %v6139_v20   ;;  %5548 = vset.pattern.permute.xlu0 %v6101_v62 }
 0xc86   :  { %5534 = vperm.xlu2 %5532, %v6145_v29   ;;  %5550 = vperm.xlu0 %5548, %v6133_v12  }
 0xc87   :  { %v2579_v13 = vmin.f32 %v2570_v7, 0.0  ;;  %4681 = vmatmul.msk.bf16.vlgmr.msra.gmra.mxu2 %vm246_vm1, %v2596_v0  ;;  %vm2575_vm6 = vcmp.gt.f32.partialorder %v2570_v7, 0.0 }
 0xc89   :  { %v2586_v23 = vmul.f32 1.442695, %v2579_v13  ;;  %v5922_v56 = vpop.eup %5921 }
 0xc8a   :  { %v4675_v41 = vadd.f32 -1.0, %v5922_v56 }
 0xc8b   :  { %5923 = vpow2.f32 %v2586_v23 }
 0xc8c   :  { %v2594_v36 = vsel %vm2574_vm5, %v2568_v61, %v4675_v41  ;;  %v5524_v61 = vunpack.i.l.bf16 %v5523_v46  ;;  %v5037_v46 = vld [vmem:[#allocation2 + $0x260] sm:$0xff] }
 0xc8d   :  { %5539 = vperm.xlu1 %5526, %v6153_v42  }
 0xc8e   :  { %5544 = vperm.xlu2 %5532, %v6150_v37  }
 0xc91   :  { %v5924_v49 = vpop.eup %5923 }
 0xc92   :  { %v4676_v2 = vadd.f32 -1.0, %v5924_v49 }
 0xc94   :  { %v2595_v39 = vsel %vm2575_vm6, %v2570_v7, %v4676_v2 }
 0xc95   :  { %v2597_v45 = vpack.c.bf16 %v2595_v39, %v2594_v36  ;;  %5555 = vperm.xlu1 %5526, %v6130_v8  }
 0xc96   :  { %5560 = vperm.xlu2 %5532, %v6142_v24  }
 0xc97   :  { %4682 = vmatmul.msk.bf16.gmra.mxu2 %vm246_vm1, %v2597_v45 }
 0xc9d   :  { %5565 = vperm.xlu1 %5526, %v6136_v19  }
 0xcf7   :  { %v5529_v62 = vpop.permute.xlu1 %5528 }
 0xd0a   :  { %v2621_v51 = vpop.f32.mrf.mxu2 }
 0xd12   :  { %v2623_v50 = vpop.f32.mrf.mxu2 }
 0xd13   :  { %v2631_v58 = vpack.c.bf16 %v2623_v50, %v2621_v51 }
 0xd1a   :  { %v2626_v53 = vpop.f32.mrf.mxu2 }
 0xd22   :  { %v2628_v55 = vpop.f32.mrf.mxu2 }
 0xd23   :  { %v2632_v26 = vpack.c.bf16 %v2628_v55, %v2626_v53 }
 0xd25   :  { %2711 = vmatpush.bf16.msrb.mxu3 %v2632_v26 }
 0xd29   :  { %2712 = vmatpush.bf16.msrb.mxu3 %v2631_v58 }
 0xd2c   :  { %4699 = vmatmul.msk.bf16.vlgmr.msrb.gmra.mxu3 %vm1257_vm2, %v5033_v4 }
 0xd3c   :  { %4700 = vmatmul.msk.bf16.gmra.mxu3 %vm1257_vm2, %v5034_v5 }
 0xd4c   :  { %4701 = vmatmul.msk.bf16.gmra.mxu3 %vm1257_vm2, %v5035_v52 }
 0xd5c   :  { %4702 = vmatmul.msk.bf16.gmra.mxu3 %vm1257_vm2, %v5036_v57 }
 0xdaf   :  { %v2714_v48 = vpop.f32.mrf.mxu3 }
 0xdb0   :  { %v2715_v7 = vadd.f32 %v5524_v61, %v2714_v48  ;;  %v5044_v61 = vld [vmem:[#allocation2 + $0x298] sm:$0xff] }
 0xdb2   :  { %v2742_v2 = vmin.f32 %v2715_v7, 0.0  ;;  %vm2734_vm3 = vcmp.gt.f32.partialorder %v2715_v7, 0.0 }
 0xdb4   :  { %v2750_v34 = vmul.f32 1.442695, %v2742_v2 }
 0xdb7   :  { %v2716_v10 = vpop.f32.mrf.mxu3 }
 0xdb8   :  { %v6704_v32 = vadd.f32 %v5525_v44, %v2716_v10  ;;  %v5040_v44 = vld [vmem:[#allocation2 + $0x278] sm:$0xff] }
 0xdba   :  { %v2743_v56 = vmin.f32 %v6704_v32, 0.0  ;;  %vm2735_vm15 = vcmp.gt.f32.partialorder %v6704_v32, 0.0 }
 0xdbc   :  { %v2752_v45 = vmul.f32 1.442695, %v2743_v56 }
 0xdbf   :  { %v2719_v15 = vpop.f32.mrf.mxu3 }
 0xdc0   :  { %v6702_v3 = vadd.f32 %v5518_v9, %v2719_v15  ;;  %v5038_v9 = vld [vmem:[#allocation2 + $0x268] sm:$0xff] }
 0xdc2   :  { %v2744_v13 = vmin.f32 %v6702_v3, 0.0  ;;  %vm2736_vm14 = vcmp.gt.f32.partialorder %v6702_v3, 0.0 }
 0xdc4   :  { %v2754_v36 = vmul.f32 1.442695, %v2744_v13 }
 0xdc7   :  { %v2721_v38 = vpop.f32.mrf.mxu3 }
 0xdc8   :  { %v6698_v16 = vadd.f32 %v5519_v60, %v2721_v38 }
 0xdca   :  { %v2745_v47 = vmin.f32 %v6698_v16, 0.0  ;;  %vm2737_vm13 = vcmp.gt.f32.partialorder %v6698_v16, 0.0 }
 0xdcc   :  { %v2756_v41 = vmul.f32 1.442695, %v2745_v47  ;;  %v5530_v47 = vunpack.i.l.bf16 %v5529_v62 }
 0xdcf   :  { %v2724_v63 = vpop.f32.mrf.mxu3 }
 0xdd0   :  { %v6696_v40 = vadd.f32 %v5513_v35, %v2724_v63 }
 0xdd2   :  { %v2746_v28 = vmin.f32 %v6696_v40, 0.0  ;;  %vm2738_vm12 = vcmp.gt.f32.partialorder %v6696_v40, 0.0 }
 0xdd4   :  { %v2758_v0 = vmul.f32 1.442695, %v2746_v28  ;;  %v3085_v28 = vld [vmem:[#allocation2 + $0x2a8] sm:$0xf] }
 0xdd7   :  { %v2726_v11 = vpop.f32.mrf.mxu3 }
 0xdd8   :  { %v6694_v14 = vadd.f32 %v5514_v33, %v2726_v11 }
 0xdda   :  { %v2747_v27 = vmin.f32 %v6694_v14, 0.0  ;;  %vm2739_vm11 = vcmp.gt.f32.partialorder %v6694_v14, 0.0 }
 0xddc   :  { %v2760_v1 = vmul.f32 1.442695, %v2747_v27  ;;  %v5043_v27 = vld [vmem:[#allocation2 + $0x290] sm:$0xff] }
 0xddf   :  { %v2729_v21 = vpop.f32.mrf.mxu3 }
 0xde0   :  { %v2730_v22 = vadd.f32 %v5507_v31, %v2729_v21 }
 0xde2   :  { %v2748_v17 = vmin.f32 %v2730_v22, 0.0  ;;  %vm2740_vm8 = vcmp.gt.f32.partialorder %v2730_v22, 0.0 }
 0xde4   :  { %v2762_v25 = vmul.f32 1.442695, %v2748_v17  ;;  %v5039_v17 = vld [vmem:[#allocation2 + $0x270] sm:$0xff] }
 0xde6   :  { %5925 = vpow2.f32 %v2762_v25 }
 0xde7   :  { %v2731_v59 = vpop.f32.mrf.mxu3  ;;  %5927 = vpow2.f32 %v2760_v1 }
 0xde8   :  { %v2732_v54 = vadd.f32 %v5508_v30, %v2731_v59  ;;  %5929 = vpow2.f32 %v2758_v0  ;;  %v5041_v30 = vld [vmem:[#allocation2 + $0x280] sm:$0xff] }
 0xde9   :  { %v5045_v59 = vld [vmem:[#allocation2 + $0x2a0] sm:$0xff] }
 0xdea   :  { %v2749_v23 = vmin.f32 %v2732_v54, 0.0  ;;  %vm2741_vm9 = vcmp.gt.f32.partialorder %v2732_v54, 0.0 }
 0xdec   :  { %v2764_v49 = vmul.f32 1.442695, %v2749_v23  ;;  %v5926_v39 = vpop.eup %5925 }
 0xded   :  { %v5928_v51 = vpop.eup %5927  ;;  %v4709_v53 = vadd.f32 -1.0, %v5926_v39 }
 0xdee   :  { %5931 = vpow2.f32 %v2764_v49  ;;  %v5930_v50 = vpop.eup %5929  ;;  %v4708_v26 = vadd.f32 -1.0, %v5928_v51  ;;  %v5535_v49 = vpop.permute.xlu2 %5534 }
 0xdef   :  { %5933 = vpow2.f32 %v2756_v41  ;;  %v4707_v5 = vadd.f32 -1.0, %v5930_v50  ;;  %v2780_v52 = vsel %vm2740_vm8, %v2730_v22, %v4709_v53 }
 0xdf0   :  { %5935 = vpow2.f32 %v2754_v36  ;;  %v2779_v38 = vsel %vm2739_vm11, %v6694_v14, %v4708_v26  ;;  %v5536_v36 = vunpack.i.l.bf16 %v5535_v49 }
 0xdf1   :  { %5937 = vpow2.f32 %v2752_v45  ;;  %v2778_v11 = vsel %vm2738_vm12, %v6696_v40, %v4707_v5 }
 0xdf2   :  { %5939 = vpow2.f32 %v2750_v34  ;;  %v2784_v31 = vpack.c.bf16 %v2779_v38, %v2778_v11  ;;  %v5540_v38 = vpop.permute.xlu1 %5539 }
 0xdf4   :  { %v5932_v55 = vpop.eup %5931 }
 0xdf5   :  { %v4710_v58 = vadd.f32 -1.0, %v5932_v55  ;;  %v5934_v4 = vpop.eup %5933  ;;  %v5537_v55 = vunpack.i.h.bf16 %v5535_v49 }
 0xdf6   :  { %v5936_v48 = vpop.eup %5935  ;;  %v4706_v15 = vadd.f32 -1.0, %v5934_v4 }
 0xdf7   :  { %v2781_v57 = vsel %vm2741_vm9, %v2732_v54, %v4710_v58  ;;  %v5938_v63 = vpop.eup %5937  ;;  %v4705_v18 = vadd.f32 -1.0, %v5936_v48 }
 0xdf8   :  { %v2785_v10 = vpack.c.bf16 %v2781_v57, %v2780_v52  ;;  %v5940_v6 = vpop.eup %5939  ;;  %v4704_v33 = vadd.f32 -1.0, %v5938_v63  ;;  %v2777_v35 = vsel %vm2737_vm13, %v6698_v16, %v4706_v15  ;;  %v5042_v16 = vld [vmem:[#allocation2 + $0x288] sm:$0xff]  ;;  %v5541_v63 = vunpack.i.l.bf16 %v5540_v38 }
 0xdf9   :  { %v4703_v43 = vadd.f32 -1.0, %v5940_v6  ;;  %v2776_v21 = vsel %vm2736_vm14, %v6702_v3, %v4705_v18  ;;  %v3091_v3 = vunpack.c.l.b16 %v3085_v28 }
 0xdfa   :  { %2934 = vmatpush.bf16.msrb.mxu2 %v2785_v10  ;;  %v2783_v60 = vpack.c.bf16 %v2777_v35, %v2776_v21  ;;  %v2775_v14 = vsel %vm2735_vm15, %v6704_v32, %v4704_v33  ;;  %v5542_v21 = vunpack.i.h.bf16 %v5540_v38 }
 0xdfb   :  { %v2774_v22 = vsel %vm2734_vm3, %v2715_v7, %v4703_v43  ;;  %v3093_v25 = vpack.c.b16 %v3091_v3, %v3091_v3  ;;  %v5531_v7 = vunpack.i.h.bf16 %v5529_v62 }
 0xdfc   :  { %v2782_v40 = vpack.c.bf16 %v2775_v14, %v2774_v22 }
 0xdfd   :  { %v3120_v32 = vsel %vm1790_vm7, %v3093_v25, 0 }
 0xdfe   :  { %2935 = vmatpush.bf16.msrb.mxu2 %v2784_v31  ;;  %3128 = vmatpush.bf16.msrb.mxu0 %v3120_v32 }
 0xe02   :  { %2936 = vmatpush.bf16.msrb.mxu2 %v2783_v60  ;;  %3129 = vmatpush.bf16.msrb.mxu0 %v5045_v59 }
 0xe06   :  { %2937 = vmatpush.bf16.msrb.mxu2 %v2782_v40 }
 0xe09   :  { %4743 = vmatmul.msk.bf16.vlgmr.msrb.gmra.mxu2 %vm782_vm0, %v5037_v46 }
 0xe19   :  { %4744 = vmatmul.msk.bf16.gmra.mxu2 %vm782_vm0, %v5038_v9 }
 0xe29   :  { %4745 = vmatmul.msk.bf16.gmra.mxu2 %vm782_vm0, %v5039_v17 }
 0xe39   :  { %4746 = vmatmul.msk.bf16.gmra.mxu2 %vm782_vm0, %v5040_v44 }
 0xe49   :  { %4747 = vmatmul.msk.bf16.gmra.mxu2 %vm782_vm0, %v5041_v30  ;;  %v5545_v30 = vpop.permute.xlu2 %5544 }
 0xe4a   :  { %v5547_v62 = vunpack.i.h.bf16 %v5545_v30 }
 0xe59   :  { %4748 = vmatmul.msk.bf16.gmra.mxu2 %vm782_vm0, %v5042_v16  ;;  %v5546_v16 = vunpack.i.l.bf16 %v5545_v30 }
 0xe69   :  { %4749 = vmatmul.msk.bf16.gmra.mxu2 %vm782_vm0, %v5043_v27 }
 0xe79   :  { %4750 = vmatmul.msk.bf16.gmra.mxu2 %vm782_vm0, %v5044_v61 }
 0xe8c   :  { %v2939_v1 = vpop.f32.mrf.mxu2 }
 0xe8d   :  { %v2940_v54 = vadd.f32 %v5530_v47, %v2939_v1 }
 0xe8f   :  { %v2995_v0 = vmin.f32 %v2940_v54, 0.0  ;;  %vm2979_vm4 = vcmp.gt.f32.partialorder %v2940_v54, 0.0 }
 0xe91   :  { %v3011_v13 = vmul.f32 1.442695, %v2995_v0 }
 0xe93   :  { %5941 = vpow2.f32 %v3011_v13 }
 0xe94   :  { %v2941_v23 = vpop.f32.mrf.mxu2 }
 0xe95   :  { %v2942_v56 = vadd.f32 %v5531_v7, %v2941_v23  ;;  %v5551_v23 = vpop.permute.xlu0 %5550 }
 0xe96   :  { %v5552_v49 = vunpack.i.l.bf16 %v5551_v23 }
 0xe97   :  { %v2996_v41 = vmin.f32 %v2942_v56, 0.0  ;;  %vm2980_vm5 = vcmp.gt.f32.partialorder %v2942_v56, 0.0 }
 0xe99   :  { %v3013_v2 = vmul.f32 1.442695, %v2996_v41  ;;  %v5942_v45 = vpop.eup %5941 }
 0xe9a   :  { %v4751_v50 = vadd.f32 -1.0, %v5942_v45 }
 0xe9b   :  { %5943 = vpow2.f32 %v3013_v2 }
 0xe9c   :  { %v2944_v39 = vpop.f32.mrf.mxu2  ;;  %v3059_v4 = vsel %vm2979_vm4, %v2940_v54, %v4751_v50  ;;  %v5553_v50 = vunpack.i.h.bf16 %v5551_v23 }
 0xe9d   :  { %v2945_v51 = vadd.f32 %v5536_v36, %v2944_v39 }
 0xe9f   :  { %v2997_v34 = vmin.f32 %v2945_v51, 0.0  ;;  %vm2981_vm6 = vcmp.gt.f32.partialorder %v2945_v51, 0.0 }
 0xea1   :  { %v5944_v53 = vpop.eup %5943  ;;  %v3015_v58 = vmul.f32 1.442695, %v2997_v34 }
 0xea2   :  { %v4752_v26 = vadd.f32 -1.0, %v5944_v53 }
 0xea3   :  { %5945 = vpow2.f32 %v3015_v58 }
 0xea4   :  { %v3060_v5 = vsel %vm2980_vm5, %v2942_v56, %v4752_v26  ;;  %v2946_v52 = vpop.f32.mrf.mxu2 }
 0xea5   :  { %v3075_v57 = vpack.c.bf16 %v3060_v5, %v3059_v4  ;;  %v2947_v48 = vadd.f32 %v5537_v55, %v2946_v52 }
 0xea7   :  { %v2998_v10 = vmin.f32 %v2947_v48, 0.0  ;;  %4771 = vmatmul.msk.bf16.vlgmr.msrb.gmra.mxu0 %vm1777_vm10, %v3075_v57  ;;  %vm2982_vm8 = vcmp.gt.f32.partialorder %v2947_v48, 0.0 }
 0xea9   :  { %v3017_v15 = vmul.f32 1.442695, %v2998_v10  ;;  %v5946_v11 = vpop.eup %5945  ;;  %v5556_v10 = vpop.permute.xlu1 %5555 }
 0xeaa   :  { %v4753_v33 = vadd.f32 -1.0, %v5946_v11 }
 0xeab   :  { %5947 = vpow2.f32 %v3017_v15  ;;  %v5557_v15 = vunpack.i.l.bf16 %v5556_v10 }
 0xeac   :  { %v2949_v18 = vpop.f32.mrf.mxu2  ;;  %v3061_v14 = vsel %vm2981_vm6, %v2945_v51, %v4753_v33 }
 0xead   :  { %v2950_v6 = vadd.f32 %v5541_v63, %v2949_v18 }
 0xeaf   :  { %v2999_v31 = vmin.f32 %v2950_v6, 0.0  ;;  %vm2983_vm9 = vcmp.gt.f32.partialorder %v2950_v6, 0.0 }
 0xeb1   :  { %v5948_v35 = vpop.eup %5947  ;;  %v3019_v60 = vmul.f32 1.442695, %v2999_v31 }
 0xeb2   :  { %v4754_v43 = vadd.f32 -1.0, %v5948_v35  ;;  %v5558_v35 = vunpack.i.h.bf16 %v5556_v10 }
 0xeb3   :  { %5949 = vpow2.f32 %v3019_v60 }
 0xeb4   :  { %v3062_v22 = vsel %vm2982_vm8, %v2947_v48, %v4754_v43  ;;  %v2951_v40 = vpop.f32.mrf.mxu2 }
 0xeb5   :  { %v3076_v46 = vpack.c.bf16 %v3062_v22, %v3061_v14  ;;  %v2952_v9 = vadd.f32 %v5542_v21, %v2951_v40 }
 0xeb7   :  { %v3000_v17 = vmin.f32 %v2952_v9, 0.0  ;;  %4772 = vmatmul.msk.bf16.gmra.mxu0 %vm1777_vm10, %v3076_v46  ;;  %vm2984_vm11 = vcmp.gt.f32.partialorder %v2952_v9, 0.0 }
 0xeb9   :  { %v3021_v44 = vmul.f32 1.442695, %v3000_v17  ;;  %v5950_v61 = vpop.eup %5949 }
 0xeba   :  { %v4755_v25 = vadd.f32 -1.0, %v5950_v61 }
 0xebb   :  { %5951 = vpow2.f32 %v3021_v44 }
 0xebc   :  { %v2954_v27 = vpop.f32.mrf.mxu2  ;;  %v3063_v1 = vsel %vm2983_vm9, %v2950_v6, %v4755_v25 }
 0xebd   :  { %v2955_v28 = vadd.f32 %v5546_v16, %v2954_v27 }
 0xebf   :  { %v3001_v3 = vmin.f32 %v2955_v28, 0.0  ;;  %vm2985_vm12 = vcmp.gt.f32.partialorder %v2955_v28, 0.0 }
 0xec1   :  { %v5952_v32 = vpop.eup %5951  ;;  %v3023_v47 = vmul.f32 1.442695, %v3001_v3 }
 0xec2   :  { %v4756_v59 = vadd.f32 -1.0, %v5952_v32 }
 0xec3   :  { %5953 = vpow2.f32 %v3023_v47 }
 0xec4   :  { %v3064_v54 = vsel %vm2984_vm11, %v2952_v9, %v4756_v59  ;;  %v2956_v0 = vpop.f32.mrf.mxu2  ;;  %v5561_v9 = vpop.permute.xlu2 %5560 }
 0xec5   :  { %v3077_v7 = vpack.c.bf16 %v3064_v54, %v3063_v1  ;;  %v2957_v13 = vadd.f32 %v5547_v62, %v2956_v0  ;;  %v5562_v44 = vunpack.i.l.bf16 %v5561_v9  ;;  %v5563_v32 = vunpack.i.h.bf16 %v5561_v9 }
 0xec7   :  { %v3002_v56 = vmin.f32 %v2957_v13, 0.0  ;;  %4773 = vmatmul.msk.bf16.gmra.mxu0 %vm1777_vm10, %v3077_v7  ;;  %vm2986_vm13 = vcmp.gt.f32.partialorder %v2957_v13, 0.0 }
 0xec9   :  { %v3025_v41 = vmul.f32 1.442695, %v3002_v56  ;;  %v5954_v36 = vpop.eup %5953 }
 0xeca   :  { %v4757_v51 = vadd.f32 -1.0, %v5954_v36 }
 0xecb   :  { %5955 = vpow2.f32 %v3025_v41 }
 0xecc   :  { %v2959_v2 = vpop.f32.mrf.mxu2  ;;  %v3065_v26 = vsel %vm2985_vm12, %v2955_v28, %v4757_v51 }
 0xecd   :  { %v2960_v39 = vadd.f32 %v5552_v49, %v2959_v2 }
 0xecf   :  { %v3003_v45 = vmin.f32 %v2960_v39, 0.0  ;;  %vm2987_vm14 = vcmp.gt.f32.partialorder %v2960_v39, 0.0 }
 0xed1   :  { %v5956_v34 = vpop.eup %5955  ;;  %v3027_v55 = vmul.f32 1.442695, %v3003_v45 }
 0xed2   :  { %v4758_v53 = vadd.f32 -1.0, %v5956_v34 }
 0xed3   :  { %5957 = vpow2.f32 %v3027_v55 }
 0xed4   :  { %v3066_v58 = vsel %vm2986_vm13, %v2957_v13, %v4758_v53  ;;  %v2961_v4 = vpop.f32.mrf.mxu2  ;;  %v5566_v13 = vpop.permute.xlu1 %5565 }
 0xed5   :  { %v3078_v5 = vpack.c.bf16 %v3066_v58, %v3065_v26  ;;  %v2962_v52 = vadd.f32 %v5553_v50, %v2961_v4  ;;  %v5567_v56 = vunpack.i.l.bf16 %v5566_v13  ;;  %v5568_v34 = vunpack.i.h.bf16 %v5566_v13 }
 0xed7   :  { %v3004_v57 = vmin.f32 %v2962_v52, 0.0  ;;  %4774 = vmatmul.msk.bf16.gmra.mxu0 %vm1777_vm10, %v3078_v5  ;;  %vm2988_vm15 = vcmp.gt.f32.partialorder %v2962_v52, 0.0 }
 0xed9   :  { %v3029_v48 = vmul.f32 1.442695, %v3004_v57  ;;  %v5958_v63 = vpop.eup %5957 }
 0xeda   :  { %v4759_v6 = vadd.f32 -1.0, %v5958_v63 }
 0xedb   :  { %5959 = vpow2.f32 %v3029_v48 }
 0xedc   :  { %v2964_v38 = vpop.f32.mrf.mxu2  ;;  %v3067_v21 = vsel %vm2987_vm14, %v2960_v39, %v4759_v6 }
 0xedd   :  { %v2965_v18 = vadd.f32 %v5557_v15, %v2964_v38 }
 0xedf   :  { %v3005_v11 = vmin.f32 %v2965_v18, 0.0  ;;  %vm2989_vm3 = vcmp.gt.f32.partialorder %v2965_v18, 0.0 }
 0xee1   :  { %v5960_v31 = vpop.eup %5959  ;;  %v3031_v43 = vmul.f32 1.442695, %v3005_v11 }
 0xee2   :  { %v4760_v33 = vadd.f32 -1.0, %v5960_v31 }
 0xee3   :  { %5961 = vpow2.f32 %v3031_v43 }
 0xee4   :  { %v3068_v60 = vsel %vm2988_vm15, %v2962_v52, %v4760_v33  ;;  %v2966_v14 = vpop.f32.mrf.mxu2 }
 0xee5   :  { %v3079_v22 = vpack.c.bf16 %v3068_v60, %v3067_v21  ;;  %v2967_v40 = vadd.f32 %v5558_v35, %v2966_v14 }
 0xee7   :  { %v3006_v46 = vmin.f32 %v2967_v40, 0.0  ;;  %4775 = vmatmul.msk.bf16.gmra.mxu0 %vm1777_vm10, %v3079_v22  ;;  %vm2990_vm4 = vcmp.gt.f32.partialorder %v2967_v40, 0.0 }
 0xee9   :  { %v3033_v17 = vmul.f32 1.442695, %v3006_v46  ;;  %v5962_v16 = vpop.eup %5961 }
 0xeea   :  { %v4761_v28 = vadd.f32 -1.0, %v5962_v16 }
 0xeeb   :  { %5963 = vpow2.f32 %v3033_v17 }
 0xeec   :  { %v2969_v30 = vpop.f32.mrf.mxu2  ;;  %v3069_v62 = vsel %vm2989_vm3, %v2965_v18, %v4761_v28 }
 0xeed   :  { %v2970_v27 = vadd.f32 %v5562_v44, %v2969_v30 }
 0xeef   :  { %v3007_v61 = vmin.f32 %v2970_v27, 0.0  ;;  %vm2991_vm5 = vcmp.gt.f32.partialorder %v2970_v27, 0.0 }
 0xef1   :  { %v5964_v3 = vpop.eup %5963  ;;  %v3035_v59 = vmul.f32 1.442695, %v3007_v61 }
 0xef2   :  { %v4762_v25 = vadd.f32 -1.0, %v5964_v3 }
 0xef3   :  { %5965 = vpow2.f32 %v3035_v59 }
 0xef4   :  { %v3070_v47 = vsel %vm2990_vm4, %v2967_v40, %v4762_v25  ;;  %v2971_v1 = vpop.f32.mrf.mxu2  ;;  %v6102_v25 = vmov 12  }
 0xef5   :  { %v3080_v54 = vpack.c.bf16 %v3070_v47, %v3069_v62  ;;  %v2972_v0 = vadd.f32 %v5563_v32, %v2971_v1  ;;  %5569 = vset.pattern.permute.xlu2 %v6102_v25  ;;  %5581 = vset.pattern.permute.xlu1 %v6102_v25  ;;  %v5046_v47 = vld [vmem:[#allocation2 + $0x2b0] sm:$0xff]  ;;  %v5047_v1 = vld [vmem:[#allocation2 + $0x2b8] sm:$0xff] }
 0xef6   :  { %5571 = vperm.xlu2 %5569, %v6150_v37   ;;  %5583 = vperm.xlu1 %5581, %v6145_v29  }
 0xef7   :  { %v3008_v7 = vmin.f32 %v2972_v0, 0.0  ;;  %4776 = vmatmul.msk.bf16.gmra.mxu0 %vm1777_vm10, %v3080_v54  ;;  %vm2992_vm6 = vcmp.gt.f32.partialorder %v2972_v0, 0.0  ;;  %5575 = vset.pattern.permute.xlu0 %v6102_v25  ;;  %v5048_v54 = vld [vmem:[#allocation2 + $0x2c0] sm:$0xff] }
 0xef8   :  { %5577 = vperm.xlu0 %5575, %v6153_v42  }
 0xef9   :  { %v3037_v23 = vmul.f32 1.442695, %v3008_v7  ;;  %v5966_v49 = vpop.eup %5965 }
 0xefa   :  { %v4763_v39 = vadd.f32 -1.0, %v5966_v49 }
 0xefb   :  { %5967 = vpow2.f32 %v3037_v23 }
 0xefc   :  { %v2974_v41 = vpop.f32.mrf.mxu2  ;;  %v3071_v53 = vsel %vm2991_vm5, %v2970_v27, %v4763_v39 }
 0xefd   :  { %v2975_v2 = vadd.f32 %v5567_v56, %v2974_v41 }
 0xefe   :  { %5588 = vperm.xlu2 %5569, %v6139_v20  }
 0xeff   :  { %v3009_v36 = vmin.f32 %v2975_v2, 0.0  ;;  %vm2993_vm8 = vcmp.gt.f32.partialorder %v2975_v2, 0.0 }
 0xf01   :  { %v5968_v45 = vpop.eup %5967  ;;  %v3039_v50 = vmul.f32 1.442695, %v3009_v36 }
 0xf02   :  { %v4764_v51 = vadd.f32 -1.0, %v5968_v45 }
 0xf03   :  { %5969 = vpow2.f32 %v3039_v50 }
 0xf04   :  { %v3072_v55 = vsel %vm2992_vm6, %v2972_v0, %v4764_v51  ;;  %v2976_v26 = vpop.f32.mrf.mxu2  ;;  %v5049_v0 = vld [vmem:[#allocation2 + $0x2c8] sm:$0xff] }
 0xf05   :  { %v3081_v58 = vpack.c.bf16 %v3072_v55, %v3071_v53  ;;  %v2977_v4 = vadd.f32 %v5568_v34, %v2976_v26 }
 0xf07   :  { %v3010_v5 = vmin.f32 %v2977_v4, 0.0  ;;  %4777 = vmatmul.msk.bf16.gmra.mxu0 %vm1777_vm10, %v3081_v58  ;;  %vm2994_vm9 = vcmp.gt.f32.partialorder %v2977_v4, 0.0 }
 0xf09   :  { %v3041_v52 = vmul.f32 1.442695, %v3010_v5  ;;  %v5970_v57 = vpop.eup %5969 }
 0xf0a   :  { %v4765_v48 = vadd.f32 -1.0, %v5970_v57 }
 0xf0b   :  { %5971 = vpow2.f32 %v3041_v52 }
 0xf0c   :  { %v3073_v38 = vsel %vm2993_vm8, %v2975_v2, %v4765_v48 }
 0xf11   :  { %v5972_v10 = vpop.eup %5971 }
 0xf12   :  { %v4766_v15 = vadd.f32 -1.0, %v5972_v10 }
 0xf14   :  { %v3074_v63 = vsel %vm2994_vm9, %v2977_v4, %v4766_v15 }
 0xf15   :  { %v3082_v18 = vpack.c.bf16 %v3074_v63, %v3073_v38 }
 0xf17   :  { %4778 = vmatmul.msk.bf16.gmra.mxu0 %vm1777_vm10, %v3082_v18 }
 0xf24   :  { %v3131_v11 = vpop.f32.mrf.mxu0 }
 0xf2c   :  { %v3133_v6 = vpop.f32.mrf.mxu0 }
 0xf2d   :  { %v3171_v62 = vpack.c.bf16 %v3133_v6, %v3131_v11 }
 0xf34   :  { %v3136_v31 = vpop.f32.mrf.mxu0 }
 0xf3c   :  { %v3138_v33 = vpop.f32.mrf.mxu0 }
 0xf3d   :  { %v3172_v59 = vpack.c.bf16 %v3138_v33, %v3136_v31 }
 0xf44   :  { %v3141_v35 = vpop.f32.mrf.mxu0 }
 0xf4c   :  { %v3143_v43 = vpop.f32.mrf.mxu0 }
 0xf4d   :  { %v3173_v32 = vpack.c.bf16 %v3143_v43, %v3141_v35 }
 0xf50   :  { %v5572_v2 = vpop.permute.xlu2 %5571 }
 0xf51   :  { %v5573_v39 = vunpack.i.l.bf16 %v5572_v2  ;;  %v5574_v57 = vunpack.i.h.bf16 %v5572_v2 }
 0xf54   :  { %v3146_v21 = vpop.f32.mrf.mxu0 }
 0xf58   :  { %v5589_v52 = vpop.permute.xlu2 %5588 }
 0xf59   :  { %v5591_v48 = vunpack.i.h.bf16 %v5589_v52  ;;  %v5590_v63 = vunpack.i.l.bf16 %v5589_v52  ;;  %v5052_v52 = vld [vmem:[#allocation2 + $0x2e0] sm:$0xff] }
 0xf5c   :  { %v3148_v60 = vpop.f32.mrf.mxu0 }
 0xf5d   :  { %v3174_v3 = vpack.c.bf16 %v3148_v60, %v3146_v21 }
 0xf64   :  { %v3151_v14 = vpop.f32.mrf.mxu0 }
 0xf68   :  { %v5584_v34 = vpop.permute.xlu1 %5583 }
 0xf69   :  { %v5586_v53 = vunpack.i.h.bf16 %v5584_v34  ;;  %v5585_v4 = vunpack.i.l.bf16 %v5584_v34 }
 0xf6a   :  { %v5578_v36 = vpop.permute.xlu0 %5577 }
 0xf6b   :  { %v5580_v45 = vunpack.i.h.bf16 %v5578_v36  ;;  %v5579_v51 = vunpack.i.l.bf16 %v5578_v36 }
 0xf6c   :  { %v3153_v22 = vpop.f32.mrf.mxu0 }
 0xf6d   :  { %v3175_v28 = vpack.c.bf16 %v3153_v22, %v3151_v14 }
 0xf74   :  { %v3156_v40 = vpop.f32.mrf.mxu0 }
 0xf7c   :  { %v3158_v46 = vpop.f32.mrf.mxu0 }
 0xf7d   :  { %v3176_v61 = vpack.c.bf16 %v3158_v46, %v3156_v40  ;;  %v6103_v40 = vmov 13  }
 0xf7e   :  { %5592 = vset.pattern.permute.xlu1 %v6103_v40  ;;  %5604 = vset.pattern.permute.xlu0 %v6103_v40 }
 0xf7f   :  { %5594 = vperm.xlu1 %5592, %v6139_v20   ;;  %5606 = vperm.xlu0 %5604, %v6153_v42  }
 0xf80   :  { %5598 = vset.pattern.permute.xlu2 %v6103_v40 }
 0xf81   :  { %5600 = vperm.xlu2 %5598, %v6145_v29  }
 0xf84   :  { %v3161_v9 = vpop.f32.mrf.mxu0 }
 0xf87   :  { %5611 = vperm.xlu1 %5592, %v6150_v37  }
 0xf8c   :  { %v3163_v17 = vpop.f32.mrf.mxu0 }
 0xf8d   :  { %v3177_v27 = vpack.c.bf16 %v3163_v17, %v3161_v9 }
 0xf94   :  { %v3166_v44 = vpop.f32.mrf.mxu0 }
 0xf9c   :  { %v3168_v30 = vpop.f32.mrf.mxu0 }
 0xf9d   :  { %v3178_v16 = vpack.c.bf16 %v3168_v30, %v3166_v44 }
 0xf9f   :  { %3243 = vmatpush.bf16.msra.mxu3 %v3178_v16 }
 0xfa3   :  { %3244 = vmatpush.bf16.msra.mxu3 %v3177_v27 }
 0xfa7   :  { %3245 = vmatpush.bf16.msra.mxu3 %v3176_v61 }
 0xfab   :  { %3246 = vmatpush.bf16.msra.mxu3 %v3175_v28 }
 0xfaf   :  { %3247 = vmatpush.bf16.msra.mxu3 %v3174_v3 }
 0xfb3   :  { %3248 = vmatpush.bf16.msra.mxu3 %v3173_v32 }
 0xfb7   :  { %3249 = vmatpush.bf16.msra.mxu3 %v3172_v59 }
 0xfbb   :  { %3250 = vmatpush.bf16.msra.mxu3 %v3171_v62 }
 0xfbe   :  { %3251 = vmatmul.bf16.vlgmr.msra.gmra.mxu3 %v5046_v47 }
 0xfce   :  { %3256 = vmatmul.bf16.gmra.mxu3 %v5047_v1 }
 0xfde   :  { %3261 = vmatmul.bf16.gmra.mxu3 %v5048_v54 }
 0xfee   :  { %3266 = vmatmul.bf16.gmra.mxu3 %v5049_v0 }
0x1041   :  { %v3252_v7 = vpop.f32.mrf.mxu3 }
0x1042   :  { %v6761_v60 = vadd.f32 %v5590_v63, %v3252_v7  ;;  %v5054_v63 = vld [vmem:[#allocation2 + $0x2f0] sm:$0xff] }
0x1044   :  { %v3280_v44 = vmin.f32 %v6761_v60, 0.0  ;;  %vm3272_vm5 = vcmp.gt.f32.partialorder %v6761_v60, 0.0 }
0x1046   :  { %v3288_v28 = vmul.f32 1.442695, %v3280_v44 }
0x1049   :  { %v3254_v13 = vpop.f32.mrf.mxu3 }
0x104a   :  { %v6758_v31 = vadd.f32 %v5591_v48, %v3254_v13  ;;  %v3479_v48 = vld [vmem:[#allocation2 + $0x2f8] sm:$0xf] }
0x104c   :  { %v3281_v46 = vmin.f32 %v6758_v31, 0.0  ;;  %vm3273_vm4 = vcmp.gt.f32.partialorder %v6758_v31, 0.0 }
0x104e   :  { %v3290_v27 = vmul.f32 1.442695, %v3281_v46 }
0x1051   :  { %v3257_v23 = vpop.f32.mrf.mxu3 }
0x1052   :  { %v6756_v18 = vadd.f32 %v5585_v4, %v3257_v23  ;;  %v5050_v4 = vld [vmem:[#allocation2 + $0x2d0] sm:$0xff] }
0x1054   :  { %v3282_v14 = vmin.f32 %v6756_v18, 0.0  ;;  %vm3274_vm3 = vcmp.gt.f32.partialorder %v6756_v18, 0.0 }
0x1056   :  { %v3292_v30 = vmul.f32 1.442695, %v3282_v14  ;;  %v5601_v14 = vpop.permute.xlu2 %5600 }
0x1057   :  { %v5602_v46 = vunpack.i.l.bf16 %v5601_v14 }
0x1059   :  { %v3259_v56 = vpop.f32.mrf.mxu3 }
0x105a   :  { %v6752_v10 = vadd.f32 %v5586_v53, %v3259_v56 }
0x105c   :  { %v3283_v33 = vmin.f32 %v6752_v10, 0.0  ;;  %vm3275_vm15 = vcmp.gt.f32.partialorder %v6752_v10, 0.0 }
0x105e   :  { %v3294_v9 = vmul.f32 1.442695, %v3283_v33 }
0x1061   :  { %v3262_v41 = vpop.f32.mrf.mxu3 }
0x1062   :  { %v6750_v58 = vadd.f32 %v5579_v51, %v3262_v41 }
0x1064   :  { %v3284_v38 = vmin.f32 %v6750_v58, 0.0  ;;  %vm3276_vm14 = vcmp.gt.f32.partialorder %v6750_v58, 0.0 }
0x1066   :  { %v3296_v21 = vmul.f32 1.442695, %v3284_v38 }
0x1069   :  { %v3264_v49 = vpop.f32.mrf.mxu3 }
0x106a   :  { %v6748_v55 = vadd.f32 %v5580_v45, %v3264_v49 }
0x106c   :  { %v3285_v15 = vmin.f32 %v6748_v55, 0.0  ;;  %vm3277_vm13 = vcmp.gt.f32.partialorder %v6748_v55, 0.0 }
0x106e   :  { %v3298_v35 = vmul.f32 1.442695, %v3285_v15 }
0x1071   :  { %v3267_v50 = vpop.f32.mrf.mxu3 }
0x1072   :  { %v3268_v26 = vadd.f32 %v5573_v39, %v3267_v50 }
0x1074   :  { %v3286_v5 = vmin.f32 %v3268_v26, 0.0  ;;  %vm3278_vm11 = vcmp.gt.f32.partialorder %v3268_v26, 0.0 }
0x1076   :  { %v3300_v11 = vmul.f32 1.442695, %v3286_v5  ;;  %v5051_v5 = vld [vmem:[#allocation2 + $0x2d8] sm:$0xff] }
0x1078   :  { %5973 = vpow2.f32 %v3300_v11 }
0x1079   :  { %v3269_v6 = vpop.f32.mrf.mxu3  ;;  %5975 = vpow2.f32 %v3298_v35 }
0x107a   :  { %v3270_v43 = vadd.f32 %v5574_v57, %v3269_v6  ;;  %5977 = vpow2.f32 %v3296_v21  ;;  %v5053_v57 = vld [vmem:[#allocation2 + $0x2e8] sm:$0xff] }
0x107c   :  { %v3287_v22 = vmin.f32 %v3270_v43, 0.0  ;;  %vm3279_vm12 = vcmp.gt.f32.partialorder %v3270_v43, 0.0 }
0x107e   :  { %v3302_v17 = vmul.f32 1.442695, %v3287_v22  ;;  %v5974_v16 = vpop.eup %5973 }
0x107f   :  { %v5976_v61 = vpop.eup %5975  ;;  %v4801_v25 = vadd.f32 -1.0, %v5974_v16 }
0x1080   :  { %5979 = vpow2.f32 %v3302_v17  ;;  %v5978_v3 = vpop.eup %5977  ;;  %v4800_v59 = vadd.f32 -1.0, %v5976_v61  ;;  %v5603_v61 = vunpack.i.h.bf16 %v5601_v14 }
0x1081   :  { %5981 = vpow2.f32 %v3294_v9  ;;  %v4799_v1 = vadd.f32 -1.0, %v5978_v3  ;;  %v3318_v54 = vsel %vm3278_vm11, %v3268_v26, %v4801_v25 }
0x1082   :  { %5983 = vpow2.f32 %v3292_v30  ;;  %v3317_v56 = vsel %vm3277_vm13, %v6748_v55, %v4800_v59 }
0x1083   :  { %5985 = vpow2.f32 %v3290_v27  ;;  %v3316_v2 = vsel %vm3276_vm14, %v6750_v58, %v4799_v1  ;;  %v5607_v1 = vpop.permute.xlu0 %5606 }
0x1084   :  { %5987 = vpow2.f32 %v3288_v28  ;;  %v3322_v39 = vpack.c.bf16 %v3317_v56, %v3316_v2 }
0x1086   :  { %v5980_v32 = vpop.eup %5979 }
0x1087   :  { %v4802_v62 = vadd.f32 -1.0, %v5980_v32  ;;  %v5982_v47 = vpop.eup %5981 }
0x1088   :  { %v5984_v7 = vpop.eup %5983  ;;  %v4798_v23 = vadd.f32 -1.0, %v5982_v47 }
0x1089   :  { %v3319_v0 = vsel %vm3279_vm12, %v3270_v43, %v4802_v62  ;;  %v5986_v41 = vpop.eup %5985  ;;  %v4797_v49 = vadd.f32 -1.0, %v5984_v7  ;;  %v5608_v7 = vunpack.i.l.bf16 %v5607_v1 }
0x108a   :  { %v3323_v13 = vpack.c.bf16 %v3319_v0, %v3318_v54  ;;  %v5988_v36 = vpop.eup %5987  ;;  %v4796_v45 = vadd.f32 -1.0, %v5986_v41  ;;  %v3315_v51 = vsel %vm3275_vm15, %v6752_v10, %v4798_v23  ;;  %v3485_v10 = vunpack.c.l.b16 %v3479_v48 }
0x108b   :  { %v4795_v34 = vadd.f32 -1.0, %v5988_v36  ;;  %v3314_v50 = vsel %vm3274_vm3, %v6756_v18, %v4797_v49  ;;  %v5595_v18 = vpop.permute.xlu1 %5594  ;;  %v5609_v36 = vunpack.i.h.bf16 %v5607_v1 }
0x108c   :  { %3400 = vmatpush.bf16.msrb.mxu1 %v3323_v13  ;;  %v3321_v53 = vpack.c.bf16 %v3315_v51, %v3314_v50  ;;  %v3313_v55 = vsel %vm3273_vm4, %v6758_v31, %v4796_v45  ;;  %v3487_v15 = vpack.c.b16 %v3485_v10, %v3485_v10  ;;  %v5596_v11 = vunpack.i.l.bf16 %v5595_v18 }
0x108d   :  { %v3312_v26 = vsel %vm3272_vm5, %v6761_v60, %v4795_v34  ;;  %v5597_v35 = vunpack.i.h.bf16 %v5595_v18 }
0x108e   :  { %v3320_v58 = vpack.c.bf16 %v3313_v55, %v3312_v26  ;;  %v3502_v38 = vsel %vm1790_vm7, %v3487_v15, 0 }
0x108f   :  { %3510 = vmatpush.bf16.msrb.mxu3 %v3502_v38 }
0x1090   :  { %3401 = vmatpush.bf16.msrb.mxu1 %v3322_v39 }
0x1093   :  { %3511 = vmatpush.bf16.msrb.mxu3 %v5054_v63 }
0x1094   :  { %3402 = vmatpush.bf16.msrb.mxu1 %v3321_v53 }
0x1098   :  { %3403 = vmatpush.bf16.msrb.mxu1 %v3320_v58  ;;  %v5612_v58 = vpop.permute.xlu1 %5611 }
0x1099   :  { %v5614_v18 = vunpack.i.h.bf16 %v5612_v58 }
0x109b   :  { %4819 = vmatmul.msk.bf16.vlgmr.msrb.gmra.mxu1 %vm782_vm0, %v5050_v4 }
0x10ab   :  { %4820 = vmatmul.msk.bf16.gmra.mxu1 %vm782_vm0, %v5051_v5  ;;  %v5613_v5 = vunpack.i.l.bf16 %v5612_v58 }
0x10bb   :  { %4821 = vmatmul.msk.bf16.gmra.mxu1 %vm782_vm0, %v5052_v52 }
0x10cb   :  { %4822 = vmatmul.msk.bf16.gmra.mxu1 %vm782_vm0, %v5053_v57 }
0x1118   :  { %v3405_v6 = vpop.f32.mrf.mxu1 }
0x1119   :  { %v3406_v31 = vadd.f32 %v5596_v11, %v3405_v6 }
0x111b   :  { %v3433_v33 = vmin.f32 %v3406_v31, 0.0  ;;  %vm3425_vm6 = vcmp.gt.f32.partialorder %v3406_v31, 0.0 }
0x111d   :  { %v3441_v43 = vmul.f32 1.442695, %v3433_v33 }
0x111f   :  { %5989 = vpow2.f32 %v3441_v43 }
0x1120   :  { %v3407_v21 = vpop.f32.mrf.mxu1 }
0x1121   :  { %v3408_v60 = vadd.f32 %v5597_v35, %v3407_v21 }
0x1123   :  { %v3434_v22 = vmin.f32 %v3408_v60, 0.0  ;;  %vm3426_vm8 = vcmp.gt.f32.partialorder %v3408_v60, 0.0 }
0x1125   :  { %v3443_v40 = vmul.f32 1.442695, %v3434_v22  ;;  %v5990_v17 = vpop.eup %5989 }
0x1126   :  { %v4823_v16 = vadd.f32 -1.0, %v5990_v17 }
0x1127   :  { %5991 = vpow2.f32 %v3443_v40 }
0x1128   :  { %v3410_v9 = vpop.f32.mrf.mxu1  ;;  %v3465_v25 = vsel %vm3425_vm6, %v3406_v31, %v4823_v16 }
0x1129   :  { %v3411_v44 = vadd.f32 %v5602_v46, %v3410_v9 }
0x112b   :  { %v3435_v30 = vmin.f32 %v3411_v44, 0.0  ;;  %vm3427_vm9 = vcmp.gt.f32.partialorder %v3411_v44, 0.0 }
0x112d   :  { %v5992_v27 = vpop.eup %5991  ;;  %v3445_v3 = vmul.f32 1.442695, %v3435_v30 }
0x112e   :  { %v4824_v28 = vadd.f32 -1.0, %v5992_v27 }
0x112f   :  { %5993 = vpow2.f32 %v3445_v3 }
0x1130   :  { %v3466_v32 = vsel %vm3426_vm8, %v3408_v60, %v4824_v28  ;;  %v3412_v59 = vpop.f32.mrf.mxu1 }
0x1131   :  { %v3473_v62 = vpack.c.bf16 %v3466_v32, %v3465_v25  ;;  %v3413_v47 = vadd.f32 %v5603_v61, %v3412_v59  ;;  %v6104_v59 = vmov 14  }
0x1132   :  { %5632 = vset.pattern.permute.xlu0 %v6104_v59  ;;  %5621 = vset.pattern.permute.xlu1 %v6104_v59 }
0x1133   :  { %v3436_v54 = vmin.f32 %v3413_v47, 0.0  ;;  %4835 = vmatmul.msk.bf16.vlgmr.msrb.gmra.mxu3 %vm1777_vm10, %v3473_v62  ;;  %vm3428_vm11 = vcmp.gt.f32.partialorder %v3413_v47, 0.0  ;;  %5634 = vperm.xlu0 %5632, %v6139_v20  }
0x1134   :  { %5615 = vset.pattern.permute.xlu2 %v6104_v59  ;;  %5623 = vperm.xlu1 %5621, %v6153_v42  }
0x1135   :  { %v3447_v0 = vmul.f32 1.442695, %v3436_v54  ;;  %v5994_v23 = vpop.eup %5993  ;;  %5617 = vperm.xlu2 %5615, %v6150_v37  }
0x1136   :  { %v4825_v49 = vadd.f32 -1.0, %v5994_v23  ;;  %v5058_v23 = vld [vmem:[#allocation2 + $0x318] sm:$0xff] }
0x1137   :  { %5995 = vpow2.f32 %v3447_v0  ;;  %v5055_v0 = vld [vmem:[#allocation2 + $0x300] sm:$0xff] }
0x1138   :  { %v3415_v13 = vpop.f32.mrf.mxu1  ;;  %v3467_v51 = vsel %vm3427_vm9, %v3411_v44, %v4825_v49 }
0x1139   :  { %v3416_v56 = vadd.f32 %v5608_v7, %v3415_v13  ;;  %v5056_v7 = vld [vmem:[#allocation2 + $0x308] sm:$0xff]  ;;  %v5057_v13 = vld [vmem:[#allocation2 + $0x310] sm:$0xff] }
0x113b   :  { %v3437_v41 = vmin.f32 %v3416_v56, 0.0  ;;  %vm3429_vm12 = vcmp.gt.f32.partialorder %v3416_v56, 0.0 }
0x113d   :  { %v5996_v2 = vpop.eup %5995  ;;  %v3449_v45 = vmul.f32 1.442695, %v3437_v41  ;;  %5628 = vperm.xlu2 %5615, %v6145_v29  }
0x113e   :  { %v4826_v39 = vadd.f32 -1.0, %v5996_v2 }
0x113f   :  { %5997 = vpow2.f32 %v3449_v45 }
0x1140   :  { %v3468_v34 = vsel %vm3428_vm11, %v3413_v47, %v4826_v39  ;;  %v3417_v50 = vpop.f32.mrf.mxu1 }
0x1141   :  { %v3474_v53 = vpack.c.bf16 %v3468_v34, %v3467_v51  ;;  %v3418_v55 = vadd.f32 %v5609_v36, %v3417_v50 }
0x1143   :  { %v3438_v26 = vmin.f32 %v3418_v55, 0.0  ;;  %4836 = vmatmul.msk.bf16.gmra.mxu3 %vm1777_vm10, %v3474_v53  ;;  %vm3430_vm13 = vcmp.gt.f32.partialorder %v3418_v55, 0.0 }
0x1145   :  { %v3451_v4 = vmul.f32 1.442695, %v3438_v26  ;;  %v5998_v57 = vpop.eup %5997 }
0x1146   :  { %v4827_v15 = vadd.f32 -1.0, %v5998_v57  ;;  %v6105_v57 = vmov 15  }
0x1147   :  { %5999 = vpow2.f32 %v3451_v4  ;;  %5638 = vset.pattern.permute.xlu1 %v6105_v57  ;;  %5644 = vset.pattern.permute.xlu2 %v6105_v57 }
0x1148   :  { %v3420_v52 = vpop.f32.mrf.mxu1  ;;  %v3469_v6 = vsel %vm3429_vm12, %v3416_v56, %v4827_v15  ;;  %5640 = vperm.xlu1 %5638, %v6139_v20   ;;  %5660 = vset.pattern.permute.xlu0 %v6105_v57  ;;  %v5063_v57 = vld [vmem:[#allocation2 + $0x340] sm:$0xff] }
0x1149   :  { %v3421_v48 = vadd.f32 %v5613_v5, %v3420_v52  ;;  %5646 = vperm.xlu2 %5644, %v6145_v29   ;;  %5662 = vperm.xlu0 %5660, %v6133_v12   ;;  %v5065_v29 = vld [vmem:[#allocation2 + $0x350] sm:$0xff] }
0x114b   :  { %v3439_v10 = vmin.f32 %v3421_v48, 0.0  ;;  %vm3431_vm14 = vcmp.gt.f32.partialorder %v3421_v48, 0.0 }
0x114d   :  { %v6000_v38 = vpop.eup %5999  ;;  %v3453_v11 = vmul.f32 1.442695, %v3439_v10 }
0x114e   :  { %v4828_v63 = vadd.f32 -1.0, %v6000_v38 }
0x114f   :  { %6001 = vpow2.f32 %v3453_v11 }
0x1150   :  { %v3470_v31 = vsel %vm3430_vm13, %v3418_v55, %v4828_v63  ;;  %v3422_v33 = vpop.f32.mrf.mxu1  ;;  %5651 = vperm.xlu1 %5638, %v6153_v42  }
0x1151   :  { %v3475_v35 = vpack.c.bf16 %v3470_v31, %v3469_v6  ;;  %v3423_v43 = vadd.f32 %v5614_v18, %v3422_v33  ;;  %5656 = vperm.xlu2 %5644, %v6150_v37   ;;  %v5066_v37 = vld [vmem:[#allocation2 + $0x358] sm:$0xff] }
0x1153   :  { %v3440_v21 = vmin.f32 %v3423_v43, 0.0  ;;  %4837 = vmatmul.msk.bf16.gmra.mxu3 %vm1777_vm10, %v3475_v35  ;;  %vm3432_vm15 = vcmp.gt.f32.partialorder %v3423_v43, 0.0 }
0x1155   :  { %v3455_v60 = vmul.f32 1.442695, %v3440_v21  ;;  %v6002_v14 = vpop.eup %6001 }
0x1156   :  { %v4829_v22 = vadd.f32 -1.0, %v6002_v14 }
0x1157   :  { %6003 = vpow2.f32 %v3455_v60 }
0x1158   :  { %v3471_v9 = vsel %vm3431_vm14, %v3421_v48, %v4829_v22  ;;  %5667 = vperm.xlu1 %5638, %v6130_v8  }
0x1159   :  { %5672 = vperm.xlu2 %5644, %v6142_v24   ;;  %v5067_v24 = vld [vmem:[#allocation2 + $0x360] sm:$0xff] }
0x115d   :  { %v6004_v40 = vpop.eup %6003 }
0x115e   :  { %v4830_v46 = vadd.f32 -1.0, %v6004_v40 }
0x1160   :  { %v3472_v17 = vsel %vm3432_vm15, %v3423_v43, %v4830_v46  ;;  %5677 = vperm.xlu1 %5638, %v6136_v19   ;;  %v5059_v19 = vld [vmem:[#allocation2 + $0x320] sm:$0xff] }
0x1161   :  { %v3476_v44 = vpack.c.bf16 %v3472_v17, %v3471_v9 }
0x1163   :  { %4838 = vmatmul.msk.bf16.gmra.mxu3 %vm1777_vm10, %v3476_v44 }
0x118f   :  { %v5618_v39 = vpop.permute.xlu2 %5617 }
0x1190   :  { %v5619_v34 = vunpack.i.l.bf16 %v5618_v39  ;;  %v5620_v63 = vunpack.i.h.bf16 %v5618_v39 }
0x1197   :  { %v5629_v55 = vpop.permute.xlu2 %5628 }
0x1198   :  { %v5631_v58 = vunpack.i.h.bf16 %v5629_v55  ;;  %v5630_v15 = vunpack.i.l.bf16 %v5629_v55 }
0x11a5   :  { %v5635_v10 = vpop.permute.xlu0 %5634 }
0x11a6   :  { %v5624_v51 = vpop.permute.xlu1 %5623  ;;  %v5637_v38 = vunpack.i.h.bf16 %v5635_v10  ;;  %v5636_v33 = vunpack.i.l.bf16 %v5635_v10  ;;  %v5068_v10 = vld [vmem:[#allocation2 + $0x368] sm:$0xff] }
0x11a7   :  { %v5626_v50 = vunpack.i.h.bf16 %v5624_v51  ;;  %v5625_v53 = vunpack.i.l.bf16 %v5624_v51  ;;  %4033 = vmatpush.bf16.msra.mxu0 %v5068_v10 }
0x11ab   :  { %4034 = vmatpush.bf16.msra.mxu0 %v5067_v24 }
0x11b6   :  { %v3513_v30 = vpop.f32.mrf.mxu3 }
0x11ba   :  { %v5641_v12 = vpop.permute.xlu1 %5640 }
0x11bb   :  { %v5663_v24 = vpop.permute.xlu0 %5662 }
0x11be   :  { %v3515_v16 = vpop.f32.mrf.mxu3 }
0x11bf   :  { %v3533_v54 = vpack.c.bf16 %v3515_v16, %v3513_v30 }
0x11c6   :  { %v3518_v27 = vpop.f32.mrf.mxu3 }
0x11ce   :  { %v3520_v61 = vpop.f32.mrf.mxu3 }
0x11cf   :  { %v3534_v1 = vpack.c.bf16 %v3520_v61, %v3518_v27 }
0x11d6   :  { %v3523_v28 = vpop.f32.mrf.mxu3 }
0x11de   :  { %v3525_v3 = vpop.f32.mrf.mxu3 }
0x11df   :  { %v3535_v47 = vpack.c.bf16 %v3525_v3, %v3523_v28 }
0x11e6   :  { %v3528_v25 = vpop.f32.mrf.mxu3 }
0x11ee   :  { %v3530_v32 = vpop.f32.mrf.mxu3 }
0x11ef   :  { %v3536_v62 = vpack.c.bf16 %v3530_v32, %v3528_v25 }
0x11f1   :  { %3613 = vmatpush.bf16.msra.mxu2 %v3536_v62 }
0x11f5   :  { %3614 = vmatpush.bf16.msra.mxu2 %v3535_v47 }
0x11f9   :  { %3615 = vmatpush.bf16.msra.mxu2 %v3534_v1 }
0x11fd   :  { %3616 = vmatpush.bf16.msra.mxu2 %v3533_v54 }
0x1200   :  { %4855 = vmatmul.msk.bf16.vlgmr.msra.gmra.mxu2 %vm782_vm0, %v5055_v0 }
0x1210   :  { %4856 = vmatmul.msk.bf16.gmra.mxu2 %vm782_vm0, %v5056_v7 }
0x1220   :  { %4857 = vmatmul.msk.bf16.gmra.mxu2 %vm782_vm0, %v5057_v13 }
0x1230   :  { %4858 = vmatmul.msk.bf16.gmra.mxu2 %vm782_vm0, %v5058_v23 }
0x1283   :  { %v3618_v56 = vpop.f32.mrf.mxu2 }
0x1284   :  { %v3619_v9 = vadd.f32 %v5636_v33, %v3618_v56 }
0x1286   :  { %v3646_v16 = vmin.f32 %v3619_v9, 0.0  ;;  %vm3638_vm11 = vcmp.gt.f32.partialorder %v3619_v9, 0.0 }
0x1288   :  { %v3654_v25 = vmul.f32 1.442695, %v3646_v16 }
0x128b   :  { %v3620_v41 = vpop.f32.mrf.mxu2 }
0x128c   :  { %v3621_v21 = vadd.f32 %v5637_v38, %v3620_v41 }
0x128e   :  { %v3647_v44 = vmin.f32 %v3621_v21, 0.0  ;;  %vm3639_vm9 = vcmp.gt.f32.partialorder %v3621_v21, 0.0 }
0x1290   :  { %v3656_v28 = vmul.f32 1.442695, %v3647_v44 }
0x1293   :  { %v3623_v49 = vpop.f32.mrf.mxu2 }
0x1294   :  { %v3624_v35 = vadd.f32 %v5630_v15, %v3623_v49  ;;  %v5642_v15 = vunpack.i.l.bf16 %v5641_v12 }
0x1296   :  { %v3648_v20 = vmin.f32 %v3624_v35, 0.0  ;;  %vm3640_vm8 = vcmp.gt.f32.partialorder %v3624_v35, 0.0 }
0x1298   :  { %v3658_v27 = vmul.f32 1.442695, %v3648_v20 }
0x129b   :  { %v3625_v2 = vpop.f32.mrf.mxu2 }
0x129c   :  { %v3626_v11 = vadd.f32 %v5631_v58, %v3625_v2 }
0x129e   :  { %v3649_v22 = vmin.f32 %v3626_v11, 0.0  ;;  %vm3641_vm6 = vcmp.gt.f32.partialorder %v3626_v11, 0.0 }
0x12a0   :  { %v3660_v30 = vmul.f32 1.442695, %v3649_v22 }
0x12a3   :  { %v3628_v36 = vpop.f32.mrf.mxu2 }
0x12a4   :  { %v6799_v52 = vadd.f32 %v5625_v53, %v3628_v36 }
0x12a6   :  { %v3650_v6 = vmin.f32 %v6799_v52, 0.0  ;;  %vm3642_vm5 = vcmp.gt.f32.partialorder %v6799_v52, 0.0 }
0x12a8   :  { %v3662_v40 = vmul.f32 1.442695, %v3650_v6 }
0x12ab   :  { %v3630_v45 = vpop.f32.mrf.mxu2 }
0x12ac   :  { %v3631_v5 = vadd.f32 %v5626_v50, %v3630_v45 }
0x12ae   :  { %v3651_v18 = vmin.f32 %v3631_v5, 0.0  ;;  %vm3643_vm4 = vcmp.gt.f32.partialorder %v3631_v5, 0.0 }
0x12b0   :  { %v3664_v14 = vmul.f32 1.442695, %v3651_v18 }
0x12b3   :  { %v3633_v26 = vpop.f32.mrf.mxu2 }
0x12b4   :  { %v3634_v4 = vadd.f32 %v5619_v34, %v3633_v26 }
0x12b6   :  { %v3652_v48 = vmin.f32 %v3634_v4, 0.0  ;;  %vm3644_vm10 = vcmp.gt.f32.partialorder %v3634_v4, 0.0 }
0x12b8   :  { %v3666_v31 = vmul.f32 1.442695, %v3652_v48  ;;  %v5064_v48 = vld [vmem:[#allocation2 + $0x348] sm:$0xff] }
0x12ba   :  { %6005 = vpow2.f32 %v3666_v31 }
0x12bb   :  { %v3635_v43 = vpop.f32.mrf.mxu2  ;;  %6007 = vpow2.f32 %v3664_v14 }
0x12bc   :  { %v3636_v60 = vadd.f32 %v5620_v63, %v3635_v43  ;;  %6009 = vpow2.f32 %v3662_v40  ;;  %v5647_v43 = vpop.permute.xlu2 %5646 }
0x12be   :  { %v3653_v46 = vmin.f32 %v3636_v60, 0.0  ;;  %vm3645_vm3 = vcmp.gt.f32.partialorder %v3636_v60, 0.0 }
0x12c0   :  { %v3668_v17 = vmul.f32 1.442695, %v3653_v46  ;;  %v6006_v61 = vpop.eup %6005 }
0x12c1   :  { %v6008_v3 = vpop.eup %6007  ;;  %v4865_v59 = vadd.f32 -1.0, %v6006_v61 }
0x12c2   :  { %6011 = vpow2.f32 %v3668_v17  ;;  %v6010_v32 = vpop.eup %6009  ;;  %v4864_v47 = vadd.f32 -1.0, %v6008_v3  ;;  %v5649_v17 = vunpack.i.h.bf16 %v5647_v43 }
0x12c3   :  { %6013 = vpow2.f32 %v3660_v30  ;;  %v3684_v54 = vsel %vm3644_vm10, %v3634_v4, %v4865_v59  ;;  %v4863_v7 = vadd.f32 -1.0, %v6010_v32  ;;  %v5060_v4 = vld [vmem:[#allocation2 + $0x328] sm:$0xff]  ;;  %v5652_v59 = vpop.permute.xlu1 %5651 }
0x12c4   :  { %6015 = vpow2.f32 %v3658_v27  ;;  %v3683_v56 = vsel %vm3643_vm4, %v3631_v5, %v4864_v47  ;;  %v5061_v5 = vld [vmem:[#allocation2 + $0x330] sm:$0xff] }
0x12c5   :  { %6017 = vpow2.f32 %v3656_v28  ;;  %v3682_v8 = vsel %vm3642_vm5, %v6799_v52, %v4863_v7  ;;  %v5062_v52 = vld [vmem:[#allocation2 + $0x338] sm:$0xff] }
0x12c6   :  { %6019 = vpow2.f32 %v3654_v25  ;;  %v3688_v39 = vpack.c.bf16 %v3683_v56, %v3682_v8 }
0x12c8   :  { %v6012_v62 = vpop.eup %6011 }
0x12c9   :  { %v4866_v42 = vadd.f32 -1.0, %v6012_v62  ;;  %v6014_v1 = vpop.eup %6013  ;;  %v5653_v62 = vunpack.i.l.bf16 %v5652_v59 }
0x12ca   :  { %v6016_v13 = vpop.eup %6015  ;;  %v4862_v41 = vadd.f32 -1.0, %v6014_v1 }
0x12cb   :  { %v3685_v0 = vsel %vm3645_vm3, %v3636_v60, %v4866_v42  ;;  %v6018_v49 = vpop.eup %6017  ;;  %v4861_v2 = vadd.f32 -1.0, %v6016_v13  ;;  %v5648_v60 = vunpack.i.l.bf16 %v5647_v43 }
0x12cc   :  { %v3689_v23 = vpack.c.bf16 %v3685_v0, %v3684_v54  ;;  %v6020_v36 = vpop.eup %6019  ;;  %v3681_v45 = vsel %vm3641_vm6, %v3626_v11, %v4862_v41  ;;  %v4860_v51 = vadd.f32 -1.0, %v6018_v49  ;;  %v5643_v11 = vunpack.i.h.bf16 %v5641_v12 }
0x12cd   :  { %v3680_v34 = vsel %vm3640_vm8, %v3624_v35, %v4861_v2  ;;  %v4859_v50 = vadd.f32 -1.0, %v6020_v36 }
0x12ce   :  { %3838 = vmatpush.bf16.msra.mxu1 %v3689_v23  ;;  %v3687_v53 = vpack.c.bf16 %v3681_v45, %v3680_v34  ;;  %v3679_v55 = vsel %vm3639_vm9, %v3621_v21, %v4860_v51  ;;  %v5654_v23 = vunpack.i.h.bf16 %v5652_v59  ;;  %v5657_v51 = vpop.permute.xlu2 %5656 }
0x12cf   :  { %v3678_v26 = vsel %vm3638_vm11, %v3619_v9, %v4859_v50  ;;  %v5658_v34 = vunpack.i.l.bf16 %v5657_v51 }
0x12d0   :  { %v3686_v58 = vpack.c.bf16 %v3679_v55, %v3678_v26 }
0x12d2   :  { %3839 = vmatpush.bf16.msra.mxu1 %v3688_v39 }
0x12d6   :  { %3840 = vmatpush.bf16.msra.mxu1 %v3687_v53 }
0x12da   :  { %3841 = vmatpush.bf16.msra.mxu1 %v3686_v58 }
0x12dd   :  { %4899 = vmatmul.msk.bf16.vlgmr.msra.gmra.mxu1 %vm782_vm0, %v5059_v19 }
0x12ed   :  { %4900 = vmatmul.msk.bf16.gmra.mxu1 %vm782_vm0, %v5060_v4 }
0x12fd   :  { %4901 = vmatmul.msk.bf16.gmra.mxu1 %vm782_vm0, %v5061_v5  ;;  %v5659_v5 = vunpack.i.h.bf16 %v5657_v51 }
0x130d   :  { %4902 = vmatmul.msk.bf16.gmra.mxu1 %vm782_vm0, %v5062_v52 }
0x131d   :  { %4903 = vmatmul.msk.bf16.gmra.mxu1 %vm782_vm0, %v5063_v57 }
0x132d   :  { %4904 = vmatmul.msk.bf16.gmra.mxu1 %vm782_vm0, %v5064_v48 }
0x133d   :  { %4905 = vmatmul.msk.bf16.gmra.mxu1 %vm782_vm0, %v5065_v29 }
0x134d   :  { %4906 = vmatmul.msk.bf16.gmra.mxu1 %vm782_vm0, %v5066_v37 }
0x135a   :  { %v3843_v38 = vpop.f32.mrf.mxu1 }
0x135b   :  { %v3844_v63 = vadd.f32 %v5642_v15, %v3843_v38  ;;  %v5664_v38 = vunpack.i.l.bf16 %v5663_v24 }
0x135d   :  { %v3899_v18 = vmin.f32 %v3844_v63, 0.0  ;;  %vm3883_vm0 = vcmp.gt.f32.partialorder %v3844_v63, 0.0 }
0x135f   :  { %v3915_v6 = vmul.f32 1.442695, %v3899_v18 }
0x1361   :  { %6021 = vpow2.f32 %v3915_v6 }
0x1362   :  { %v3845_v31 = vpop.f32.mrf.mxu1 }
0x1363   :  { %v3846_v33 = vadd.f32 %v5643_v11, %v3845_v31 }
0x1365   :  { %v3900_v35 = vmin.f32 %v3846_v33, 0.0  ;;  %vm3884_vm12 = vcmp.gt.f32.partialorder %v3846_v33, 0.0 }
0x1367   :  { %v3917_v21 = vmul.f32 1.442695, %v3900_v35  ;;  %v6022_v22 = vpop.eup %6021  ;;  %v5665_v35 = vunpack.i.h.bf16 %v5663_v24 }
0x1368   :  { %v4907_v9 = vadd.f32 -1.0, %v6022_v22 }
0x1369   :  { %6023 = vpow2.f32 %v3917_v21 }
0x136a   :  { %v3848_v14 = vpop.f32.mrf.mxu1  ;;  %v3963_v16 = vsel %vm3883_vm0, %v3844_v63, %v4907_v9 }
0x136b   :  { %v3849_v40 = vadd.f32 %v5648_v60, %v3848_v14 }
0x136d   :  { %v3901_v46 = vmin.f32 %v3849_v40, 0.0  ;;  %vm3885_vm13 = vcmp.gt.f32.partialorder %v3849_v40, 0.0 }
0x136f   :  { %v6024_v20 = vpop.eup %6023  ;;  %v3919_v30 = vmul.f32 1.442695, %v3901_v46 }
0x1370   :  { %v4908_v44 = vadd.f32 -1.0, %v6024_v20 }
0x1371   :  { %6025 = vpow2.f32 %v3919_v30 }
0x1372   :  { %v3964_v27 = vsel %vm3884_vm12, %v3846_v33, %v4908_v44  ;;  %v3850_v61 = vpop.f32.mrf.mxu1 }
0x1373   :  { %v3979_v28 = vpack.c.bf16 %v3964_v27, %v3963_v16  ;;  %v3851_v3 = vadd.f32 %v5649_v17, %v3850_v61  ;;  %v5668_v17 = vpop.permute.xlu1 %5667 }
0x1374   :  { %v5669_v44 = vunpack.i.l.bf16 %v5668_v17 }
0x1375   :  { %v3902_v25 = vmin.f32 %v3851_v3, 0.0  ;;  %4931 = vmatmul.msk.bf16.vlgmr.msra.gmra.mxu0 %vm1257_vm2, %v3979_v28  ;;  %vm3886_vm14 = vcmp.gt.f32.partialorder %v3851_v3, 0.0 }
0x1377   :  { %v3921_v32 = vmul.f32 1.442695, %v3902_v25  ;;  %v6026_v47 = vpop.eup %6025 }
0x1378   :  { %v4909_v0 = vadd.f32 -1.0, %v6026_v47 }
0x1379   :  { %6027 = vpow2.f32 %v3921_v32  ;;  %v5670_v32 = vunpack.i.h.bf16 %v5668_v17 }
0x137a   :  { %v3853_v42 = vpop.f32.mrf.mxu1  ;;  %v3965_v41 = vsel %vm3885_vm13, %v3849_v40, %v4909_v0 }
0x137b   :  { %v3854_v1 = vadd.f32 %v5653_v62, %v3853_v42 }
0x137d   :  { %v3903_v54 = vmin.f32 %v3854_v1, 0.0  ;;  %vm3887_vm15 = vcmp.gt.f32.partialorder %v3854_v1, 0.0 }
0x137f   :  { %v6028_v7 = vpop.eup %6027  ;;  %v3923_v56 = vmul.f32 1.442695, %v3903_v54 }
0x1380   :  { %v4910_v13 = vadd.f32 -1.0, %v6028_v7  ;;  %v5673_v7 = vpop.permute.xlu2 %5672 }
0x1381   :  { %6029 = vpow2.f32 %v3923_v56 }
0x1382   :  { %v3966_v49 = vsel %vm3886_vm14, %v3851_v3, %v4910_v13  ;;  %v3855_v8 = vpop.f32.mrf.mxu1 }
0x1383   :  { %v3980_v2 = vpack.c.bf16 %v3966_v49, %v3965_v41  ;;  %v3856_v36 = vadd.f32 %v5654_v23, %v3855_v8  ;;  %v5674_v23 = vunpack.i.l.bf16 %v5673_v7 }
0x1385   :  { %v3904_v39 = vmin.f32 %v3856_v36, 0.0  ;;  %4932 = vmatmul.msk.bf16.gmra.mxu0 %vm1257_vm2, %v3980_v2  ;;  %vm3888_vm10 = vcmp.gt.f32.partialorder %v3856_v36, 0.0 }
0x1387   :  { %v3925_v45 = vmul.f32 1.442695, %v3904_v39  ;;  %v6030_v53 = vpop.eup %6029 }
0x1388   :  { %v4911_v58 = vadd.f32 -1.0, %v6030_v53 }
0x1389   :  { %6031 = vpow2.f32 %v3925_v45  ;;  %v5675_v45 = vunpack.i.h.bf16 %v5673_v7 }
0x138a   :  { %v3858_v50 = vpop.f32.mrf.mxu1  ;;  %v3967_v57 = vsel %vm3887_vm15, %v3854_v1, %v4911_v58  ;;  %vm4198_vm15 = vcmask 326656  }
0x138b   :  { %v3859_v55 = vadd.f32 %v5658_v34, %v3858_v50 }
0x138d   :  { %v3905_v26 = vmin.f32 %v3859_v55, 0.0  ;;  %vm3889_vm3 = vcmp.gt.f32.partialorder %v3859_v55, 0.0 }
0x138f   :  { %v6032_v19 = vpop.eup %6031  ;;  %v3927_v52 = vmul.f32 1.442695, %v3905_v26 }
0x1390   :  { %v4912_v4 = vadd.f32 -1.0, %v6032_v19  ;;  %v5678_v19 = vpop.permute.xlu1 %5677 }
0x1391   :  { %6033 = vpow2.f32 %v3927_v52 }
0x1392   :  { %v3968_v48 = vsel %vm3888_vm10, %v3856_v36, %v4912_v4  ;;  %v3860_v29 = vpop.f32.mrf.mxu1 }
0x1393   :  { %v3981_v37 = vpack.c.bf16 %v3968_v48, %v3967_v57  ;;  %v3861_v10 = vadd.f32 %v5659_v5, %v3860_v29  ;;  %v5679_v5 = vunpack.i.l.bf16 %v5678_v19 }
0x1395   :  { %v3906_v12 = vmin.f32 %v3861_v10, 0.0  ;;  %4933 = vmatmul.msk.bf16.gmra.mxu0 %vm1257_vm2, %v3981_v37  ;;  %vm3890_vm4 = vcmp.gt.f32.partialorder %v3861_v10, 0.0 }
0x1397   :  { %v3929_v15 = vmul.f32 1.442695, %v3906_v12  ;;  %v6034_v18 = vpop.eup %6033  ;;  %v5680_v12 = vunpack.i.h.bf16 %v5678_v19 }
0x1398   :  { %v4913_v31 = vadd.f32 -1.0, %v6034_v18 }
0x1399   :  { %6035 = vpow2.f32 %v3929_v15 }
0x139a   :  { %v3863_v63 = vpop.f32.mrf.mxu1  ;;  %v3969_v60 = vsel %vm3889_vm3, %v3859_v55, %v4913_v31 }
0x139b   :  { %v3864_v11 = vadd.f32 %v5664_v38, %v3863_v63 }
0x139d   :  { %v3907_v6 = vmin.f32 %v3864_v11, 0.0  ;;  %vm3891_vm5 = vcmp.gt.f32.partialorder %v3864_v11, 0.0 }
0x139f   :  { %v6036_v33 = vpop.eup %6035  ;;  %v3931_v21 = vmul.f32 1.442695, %v3907_v6 }
0x13a0   :  { %v4914_v43 = vadd.f32 -1.0, %v6036_v33 }
0x13a1   :  { %6037 = vpow2.f32 %v3931_v21 }
0x13a2   :  { %v3970_v14 = vsel %vm3890_vm4, %v3861_v10, %v4914_v43  ;;  %v3865_v22 = vpop.f32.mrf.mxu1 }
0x13a3   :  { %v3982_v40 = vpack.c.bf16 %v3970_v14, %v3969_v60  ;;  %v3866_v46 = vadd.f32 %v5665_v35, %v3865_v22 }
0x13a5   :  { %v3908_v9 = vmin.f32 %v3866_v46, 0.0  ;;  %4934 = vmatmul.msk.bf16.gmra.mxu0 %vm1257_vm2, %v3982_v40  ;;  %vm3892_vm6 = vcmp.gt.f32.partialorder %v3866_v46, 0.0 }
0x13a7   :  { %v3933_v20 = vmul.f32 1.442695, %v3908_v9  ;;  %v6038_v16 = vpop.eup %6037 }
0x13a8   :  { %v4915_v28 = vadd.f32 -1.0, %v6038_v16 }
0x13a9   :  { %6039 = vpow2.f32 %v3933_v20 }
0x13aa   :  { %v3868_v30 = vpop.f32.mrf.mxu1  ;;  %v3971_v62 = vsel %vm3891_vm5, %v3864_v11, %v4915_v28 }
0x13ab   :  { %v3869_v27 = vadd.f32 %v5669_v44, %v3868_v30 }
0x13ad   :  { %v3909_v61 = vmin.f32 %v3869_v27, 0.0  ;;  %vm3893_vm8 = vcmp.gt.f32.partialorder %v3869_v27, 0.0 }
0x13af   :  { %v6040_v3 = vpop.eup %6039  ;;  %v3935_v59 = vmul.f32 1.442695, %v3909_v61 }
0x13b0   :  { %v4916_v25 = vadd.f32 -1.0, %v6040_v3 }
0x13b1   :  { %6041 = vpow2.f32 %v3935_v59 }
0x13b2   :  { %v3972_v42 = vsel %vm3892_vm6, %v3866_v46, %v4916_v25  ;;  %v3870_v47 = vpop.f32.mrf.mxu1 }
0x13b3   :  { %v3983_v1 = vpack.c.bf16 %v3972_v42, %v3971_v62  ;;  %v3871_v54 = vadd.f32 %v5670_v32, %v3870_v47 }
0x13b5   :  { %v3910_v0 = vmin.f32 %v3871_v54, 0.0  ;;  %4935 = vmatmul.msk.bf16.gmra.mxu0 %vm1257_vm2, %v3983_v1  ;;  %vm3894_vm9 = vcmp.gt.f32.partialorder %v3871_v54, 0.0 }
0x13b7   :  { %v3937_v13 = vmul.f32 1.442695, %v3910_v0  ;;  %v6042_v41 = vpop.eup %6041 }
0x13b8   :  { %v4917_v2 = vadd.f32 -1.0, %v6042_v41 }
0x13b9   :  { %6043 = vpow2.f32 %v3937_v13  ;;  %v5147_v13 = vld [vmem:[#allocation2 + $0x398] sm:$0xff]  }
0x13ba   :  { %v3873_v56 = vpop.f32.mrf.mxu1  ;;  %v3973_v34 = vsel %vm3893_vm8, %v3869_v27, %v4917_v2  ;;  %v5132_v41 = vunpack.c.h.bf16 %v5147_v13 }
0x13bb   :  { %v3874_v49 = vadd.f32 %v5674_v23, %v3873_v56  ;;  %v6106_v23 = vmov 16   ;;  %v5131_v56 = vunpack.c.l.bf16 %v5147_v13 }
0x13bc   :  { %5681 = vset.pattern.permute.xlu2 %v6106_v23 }
0x13bd   :  { %v3911_v8 = vmin.f32 %v3874_v49, 0.0  ;;  %vm3895_vm11 = vcmp.gt.f32.partialorder %v3874_v49, 0.0 }
0x13bf   :  { %v6044_v36 = vpop.eup %6043  ;;  %v3939_v51 = vmul.f32 1.442695, %v3911_v8  ;;  %v5682_v8 = vpack.i.bf16 %v5132_v41, %v5131_v56 }
0x13c0   :  { %v4918_v39 = vadd.f32 -1.0, %v6044_v36 }
0x13c1   :  { %6045 = vpow2.f32 %v3939_v51  ;;  %5683 = vperm.xlu2 %5681, %v5682_v8  }
0x13c2   :  { %v3974_v50 = vsel %vm3894_vm9, %v3871_v54, %v4918_v39  ;;  %v3875_v53 = vpop.f32.mrf.mxu1  ;;  %v5069_v39 = vld [vmem:[#allocation2 + $0x370] sm:$0xff] }
0x13c3   :  { %v3984_v55 = vpack.c.bf16 %v3974_v50, %v3973_v34  ;;  %v3876_v26 = vadd.f32 %v5675_v45, %v3875_v53  ;;  %v4182_v34 = vld [vmem:[#allocation2 + $0x390] sm:$0xf]  ;;  %v6107_v50 = vmov 17  }
0x13c4   :  { %5687 = vset.pattern.permute.xlu0 %v6107_v50  ;;  %v4192_v53 = vunpack.c.l.b16 %v4182_v34 }
0x13c5   :  { %v3912_v58 = vmin.f32 %v3876_v26, 0.0  ;;  %4936 = vmatmul.msk.bf16.gmra.mxu0 %vm1257_vm2, %v3984_v55  ;;  %vm3896_vm0 = vcmp.gt.f32.partialorder %v3876_v26, 0.0  ;;  %5689 = vperm.xlu0 %5687, %v5682_v8  }
0x13c7   :  { %v3941_v4 = vmul.f32 1.442695, %v3912_v58  ;;  %v6046_v57 = vpop.eup %6045  ;;  %v4195_v58 = vpack.c.b16 %v4192_v53, %v4192_v53 }
0x13c8   :  { %v4919_v37 = vadd.f32 -1.0, %v6046_v57 }
0x13c9   :  { %6047 = vpow2.f32 %v3941_v4  ;;  %v4203_v4 = vsel %vm1790_vm7, %v4195_v58, 0 }
0x13ca   :  { %v3878_v52 = vpop.f32.mrf.mxu1  ;;  %v3975_v38 = vsel %vm3895_vm11, %v3874_v49, %v4919_v37  ;;  %4210 = vmatpush.bf16.msrb.mxu2 %v4203_v4 }
0x13cb   :  { %v3879_v48 = vadd.f32 %v5679_v5, %v3878_v52 }
0x13cd   :  { %v3913_v29 = vmin.f32 %v3879_v48, 0.0  ;;  %vm3897_vm12 = vcmp.gt.f32.partialorder %v3879_v48, 0.0 }
0x13cf   :  { %v6048_v10 = vpop.eup %6047  ;;  %v3943_v15 = vmul.f32 1.442695, %v3913_v29 }
0x13d0   :  { %v4920_v24 = vadd.f32 -1.0, %v6048_v10 }
0x13d1   :  { %6049 = vpow2.f32 %v3943_v15 }
0x13d2   :  { %v3976_v63 = vsel %vm3896_vm0, %v3876_v26, %v4920_v24  ;;  %v3880_v18 = vpop.f32.mrf.mxu1 }
0x13d3   :  { %v3985_v11 = vpack.c.bf16 %v3976_v63, %v3975_v38  ;;  %v3881_v6 = vadd.f32 %v5680_v12, %v3880_v18 }
0x13d5   :  { %v3914_v31 = vmin.f32 %v3881_v6, 0.0  ;;  %4937 = vmatmul.msk.bf16.gmra.mxu0 %vm1257_vm2, %v3985_v11  ;;  %vm3898_vm13 = vcmp.gt.f32.partialorder %v3881_v6, 0.0  ;;  %v5070_v11 = vld [vmem:[#allocation2 + $0x378] sm:$0xff] }
0x13d7   :  { %v3945_v33 = vmul.f32 1.442695, %v3914_v31  ;;  %v6050_v35 = vpop.eup %6049  ;;  %v5071_v31 = vld [vmem:[#allocation2 + $0x380] sm:$0xff] }
0x13d8   :  { %v4921_v43 = vadd.f32 -1.0, %v6050_v35 }
0x13d9   :  { %6051 = vpow2.f32 %v3945_v33 }
0x13da   :  { %v3977_v14 = vsel %vm3897_vm12, %v3879_v48, %v4921_v43 }
0x13df   :  { %v6052_v21 = vpop.eup %6051 }
0x13e0   :  { %v4922_v60 = vadd.f32 -1.0, %v6052_v21 }
0x13e2   :  { %v3978_v22 = vsel %vm3898_vm13, %v3881_v6, %v4922_v60  ;;  %v5072_v6 = vld [vmem:[#allocation2 + $0x388] sm:$0xff] }
0x13e3   :  { %v3986_v40 = vpack.c.bf16 %v3978_v22, %v3977_v14  ;;  %4211 = vmatpush.bf16.msrb.mxu2 %v5072_v6 }
0x13e5   :  { %4938 = vmatmul.msk.bf16.gmra.mxu0 %vm1257_vm2, %v3986_v40 }
0x13e7   :  { %4212 = vmatpush.bf16.msrb.mxu2 %v5071_v31 }
0x13f2   :  { %v4036_v46 = vpop.f32.mrf.mxu0 }
0x13fa   :  { %v4038_v9 = vpop.f32.mrf.mxu0 }
0x13fb   :  { %v4076_v20 = vpack.c.bf16 %v4038_v9, %v4036_v46 }
0x1402   :  { %v4041_v17 = vpop.f32.mrf.mxu0 }
0x140a   :  { %v4043_v44 = vpop.f32.mrf.mxu0 }
0x140b   :  { %v4077_v30 = vpack.c.bf16 %v4043_v44, %v4041_v17 }
0x1412   :  { %v4046_v16 = vpop.f32.mrf.mxu0 }
0x141a   :  { %v4048_v27 = vpop.f32.mrf.mxu0 }
0x141b   :  { %v4078_v61 = vpack.c.bf16 %v4048_v27, %v4046_v16  ;;  %v5684_v45 = vpop.permute.xlu2 %5683 }
0x141c   :  { %v5685_v51 = vunpack.i.l.bf16 %v5684_v45  ;;  %v5686_v5 = vunpack.i.h.bf16 %v5684_v45 }
0x1422   :  { %v4051_v28 = vpop.f32.mrf.mxu0 }
0x142a   :  { %v4053_v3 = vpop.f32.mrf.mxu0 }
0x142b   :  { %v4079_v25 = vpack.c.bf16 %v4053_v3, %v4051_v28 }
0x1432   :  { %v4056_v32 = vpop.f32.mrf.mxu0 }
0x1437   :  { %v5690_v33 = vpop.permute.xlu0 %5689 }
0x1438   :  { %v5691_v35 = vunpack.i.l.bf16 %v5690_v33  ;;  %v5692_v14 = vunpack.i.h.bf16 %v5690_v33 }
0x143a   :  { %v4058_v59 = vpop.f32.mrf.mxu0 }
0x143b   :  { %v4080_v36 = vpack.c.bf16 %v4058_v59, %v4056_v32 }
0x1442   :  { %v4061_v62 = vpop.f32.mrf.mxu0 }
0x144a   :  { %v4063_v42 = vpop.f32.mrf.mxu0 }
0x144b   :  { %v4081_v2 = vpack.c.bf16 %v4063_v42, %v4061_v62 }
0x1452   :  { %v4066_v47 = vpop.f32.mrf.mxu0 }
0x145a   :  { %v4068_v1 = vpop.f32.mrf.mxu0 }
0x145b   :  { %v4082_v49 = vpack.c.bf16 %v4068_v1, %v4066_v47 }
0x1462   :  { %v4071_v54 = vpop.f32.mrf.mxu0 }
0x146a   :  { %v4073_v0 = vpop.f32.mrf.mxu0 }
0x146b   :  { %v4083_v7 = vpack.c.bf16 %v4073_v0, %v4071_v54 }
0x146d   :  { %4106 = vmatpush.bf16.msra.mxu3 %v4083_v7 }
0x1471   :  { %4107 = vmatpush.bf16.msra.mxu3 %v4082_v49 }
0x1475   :  { %4108 = vmatpush.bf16.msra.mxu3 %v4081_v2 }
0x1479   :  { %4109 = vmatpush.bf16.msra.mxu3 %v4080_v36 }
0x147d   :  { %4110 = vmatpush.bf16.msra.mxu3 %v4079_v25 }
0x1481   :  { %4111 = vmatpush.bf16.msra.mxu3 %v4078_v61 }
0x1485   :  { %4112 = vmatpush.bf16.msra.mxu3 %v4077_v30 }
0x1489   :  { %4113 = vmatpush.bf16.msra.mxu3 %v4076_v20 }
0x148c   :  { %4114 = vmatmul.bf16.vlgmr.msra.gmra.mxu3 %v5069_v39 }
0x150f   :  { %v4115_v55 = vpop.f32.mrf.mxu3 }
0x1510   :  { %v4116_v26 = vadd.f32 %v5685_v51, %v4115_v55 }
0x1512   :  { %v4122_v19 = vmin.f32 %v4116_v26, 0.0  ;;  %vm4120_vm2 = vcmp.gt.f32.partialorder %v4116_v26, 0.0 }
0x1514   :  { %v4124_v52 = vmul.f32 1.442695, %v4122_v19 }
0x1516   :  { %6053 = vpow2.f32 %v4124_v52 }
0x1517   :  { %v4117_v57 = vpop.f32.mrf.mxu3 }
0x1518   :  { %v4118_v48 = vadd.f32 %v5686_v5, %v4117_v57 }
0x151a   :  { %v4123_v29 = vmin.f32 %v4118_v48, 0.0  ;;  %vm4121_vm14 = vcmp.gt.f32.partialorder %v4118_v48, 0.0 }
0x151c   :  { %v4126_v37 = vmul.f32 1.442695, %v4123_v29  ;;  %v6054_v10 = vpop.eup %6053 }
0x151d   :  { %v4943_v24 = vadd.f32 -1.0, %v6054_v10 }
0x151e   :  { %6055 = vpow2.f32 %v4126_v37 }
0x151f   :  { %v4130_v38 = vsel %vm4120_vm2, %v4116_v26, %v4943_v24 }
0x1524   :  { %v6056_v12 = vpop.eup %6055 }
0x1525   :  { %v4944_v15 = vadd.f32 -1.0, %v6056_v12 }
0x1527   :  { %v4131_v63 = vsel %vm4121_vm14, %v4118_v48, %v4944_v15 }
0x1528   :  { %v4132_v18 = vpack.c.bf16 %v4131_v63, %v4130_v38 }
0x152a   :  { %4158 = vmatpush.bf16.msrb.mxu3 %v4132_v18 }
0x152d   :  { %4949 = vmatmul.msk.bf16.vlgmr.msrb.gmra.mxu3 %vm246_vm1, %v5070_v11 }
0x15b0   :  { %v4160_v43 = vpop.f32.mrf.mxu3 }
0x15b1   :  { %v4161_v21 = vadd.f32 %v5691_v35, %v4160_v43 }
0x15b3   :  { %v4167_v60 = vmin.f32 %v4161_v21, 0.0  ;;  %vm4165_vm1 = vcmp.gt.f32.partialorder %v4161_v21, 0.0 }
0x15b5   :  { %v4169_v22 = vmul.f32 1.442695, %v4167_v60 }
0x15b7   :  { %6057 = vpow2.f32 %v4169_v22 }
0x15b8   :  { %v4162_v40 = vpop.f32.mrf.mxu3 }
0x15b9   :  { %v4163_v46 = vadd.f32 %v5692_v14, %v4162_v40 }
0x15bb   :  { %v4168_v9 = vmin.f32 %v4163_v46, 0.0  ;;  %vm4166_vm7 = vcmp.gt.f32.partialorder %v4163_v46, 0.0 }
0x15bd   :  { %v4171_v20 = vmul.f32 1.442695, %v4168_v9  ;;  %v6058_v17 = vpop.eup %6057 }
0x15be   :  { %v4950_v44 = vadd.f32 -1.0, %v6058_v17 }
0x15bf   :  { %6059 = vpow2.f32 %v4171_v20 }
0x15c0   :  { %v4175_v27 = vsel %vm4165_vm1, %v4161_v21, %v4950_v44 }
0x15c5   :  { %v6060_v30 = vpop.eup %6059 }
0x15c6   :  { %v4951_v16 = vadd.f32 -1.0, %v6060_v30 }
0x15c8   :  { %v4176_v61 = vsel %vm4166_vm7, %v4163_v46, %v4951_v16 }
0x15c9   :  { %v4177_v28 = vpack.c.bf16 %v4176_v61, %v4175_v27 }
0x15cb   :  { %4960 = vmatmul.msk.bf16.vlgmr.msrb.gmra.mxu2 %vm4198_vm15, %v4177_v28 }
0x164e   :  { %v4214_v3 = vpop.f32.mrf.mxu2 }
0x164f   :  { %4219 = vst [vmem:[%s6838_s2] sm:$0xff] %v4214_v3 }
0x1656   :  { %v4216_v25 = vpop.f32.mrf.mxu2 }
0x1657   :  { %4220 = vst [vmem:[%s6838_s2 + $0x8] sm:$0xff] %v4216_v25 }
0x1658   :  { %4225 = vsyncpa [#allocation3], 1 }

</bundles_post_ra>
